<compile_context>
chip_gen: v6e
topology: v6e:2x2x1
jax: 0.10.0
libtpu: 0.0.40
codegen_flags: <defaults>
</compile_context>

<pallas_src>
import numpy as np
import jax
import jax.numpy as jnp
from jax import lax
from jax.experimental import pallas as pl
from jax.experimental.pallas import tpu as pltpu

GAUSSIAN_FILTER = True
NUM_CLASSES = 20      # 19 semantic classes + reservation channel at index 5
RESERVE_CH = 5


# ---------------------------------------------------------------------------
# Deterministic parameter init: reproduce
#   n = zeros((7,7,7)); n[3,3,3] = 1; k = scipy.ndimage.gaussian_filter(n, sigma=1)
# Since the delta is separable, k == g1d (x) g1d (x) g1d; we only need g1d.
# ---------------------------------------------------------------------------
def gaussian1d_weights(sigma=1.0, truncate=4.0, size=7):
    radius = int(truncate * sigma + 0.5)
    x = np.arange(-radius, radius + 1, dtype=np.float64)
    w1 = np.exp(-0.5 * (x / sigma) ** 2)
    w1 /= w1.sum()
    delta = np.zeros(size, dtype=np.float64)
    delta[size // 2] = 1.0
    padded = np.pad(delta, radius, mode="symmetric")   # == scipy 'reflect'
    g = np.array([np.dot(padded[i:i + 2 * radius + 1], w1) for i in range(size)])
    return g.astype(np.float32)


def band_matrix(n, g1d):
    """Banded matrix M with M[x, w] = g1d[x - w + 3] for |x - w| <= 3 (symmetric).

    out = in @ M  is the 1-D 'same' zero-padded correlation along the last axis.
    """
    m = np.zeros((n, n), np.float32)
    for x in range(n):
        lo, hi = max(0, x - 3), min(n, x + 4)
        for w in range(lo, hi):
            m[x, w] = g1d[x - w + 3]
    return m


# ---------------------------------------------------------------------------
# Kernel 1: per-voxel softmax, clamp, reservation, reward (logsumexp^2) and
# gather of the true-class probability at the (shifted) target class.
#   pred block: (C, TR, 128)  -- channels on a leading dim (VPU reductions)
#   tgt  block: (TR, 128) int32
#   outputs   : gathered prob / reservation / raw reward, each (TR, 128)
# ---------------------------------------------------------------------------
def make_softmax_gather_kernel(num_classes):
    def kernel(pred_ref, tgt_ref, gath_ref, resv_ref, rew_ref):
        x = pred_ref[...]                       # (C, TR, 128) f32
        x1 = x[1:]                              # original channels 1..C-1
        t = tgt_ref[...]                        # (TR, 128) int32

        # softmax over channels 1..C-1 (channel 0 is forced to -99999 in the
        # reference, so exp(ch0 - m) == 0 exactly and can be dropped).
        m = jnp.max(x1, axis=0)                 # (TR, 128)
        e = jnp.exp(x1 - m[None])               # (C-1, TR, 128)
        s = jnp.sum(e, axis=0)                  # (TR, 128)
        inv_s = 1.0 / s

        # gather(true_pred, shifted_targets) == prob[t] for t != 5, prob[6] for
        # t == 5. Void voxels (t == 0) get the clamp floor 1e-7 (same as the
        # reference's clamped prob[:, 0]); they are masked out of the loss.
        t_eff = jnp.where(t == RESERVE_CH, RESERVE_CH + 1, t)
        g_e = jnp.zeros(t.shape, jnp.float32)
        for c in range(1, num_classes):
            g_e = jnp.where(t_eff == c, e[c - 1], g_e)

        gath_ref[...] = jnp.maximum(g_e * inv_s, jnp.float32(1e-7))
        resv_ref[...] = jnp.maximum(e[RESERVE_CH - 1] * inv_s, jnp.float32(1e-7))

        # reward = (logsumexp over channels {1..4, 6..C-1})^2, reusing the
        # softmax exponentials: lse = m + log(S - e[ch5]).
        lse = m + jnp.log(s - e[RESERVE_CH - 1])
        rew_ref[...] = lse * lse

    return kernel


# ---------------------------------------------------------------------------
# Kernel 2 (+3, fused): separable 7x7x7 gaussian filter of the reward volume
# followed by the masked log reduction, one batch element per grid step.
#   volume blocks: (D, H, W) per batch element
#   band_w (W,W) / band_h (H,H): banded matrices for the lane / sublane passes
#   scratch: zero-padded (D+6, H, W) VMEM buffer
#   output : per-batch (sum, count) partials in SMEM (combined in the wrapper),
#            so the batch grid axis stays "parallel" (megacore-safe).
# ---------------------------------------------------------------------------
def make_conv_loss_kernel(g1d):
    g_taps = [float(v) for v in g1d]

    def kernel(rew_ref, gath_ref, resv_ref, tgt_ref, bandw_ref, bandh_ref,
               out_ref, pad_scr):
        D, H, W = rew_ref.shape

        # Zero only the 6 D-halo rows, every step (cheap; avoids any
        # cross-step scratch state so "parallel" semantics are safe).
        pad_scr[pl.ds(0, 3), :, :] = jnp.zeros((3, H, W), jnp.float32)
        pad_scr[pl.ds(D + 3, 3), :, :] = jnp.zeros((3, H, W), jnp.float32)

        x = rew_ref[...]                              # (D, H, W)

        # --- W (lane) pass: banded matmul on the MXU (zero 'same' boundary) ---
        t = jnp.dot(x.reshape(D * H, W), bandw_ref[...],
                    preferred_element_type=jnp.float32).reshape(D, H, W)

        # --- H (sublane) pass: batched banded matmul on the MXU ---
        bh = jnp.broadcast_to(bandh_ref[...], (D, H, H))
        t = jnp.einsum("dhy,dyw->dhw", bh, t,
                       preferred_element_type=jnp.float32)

        # --- D (leading-dim) pass: 7-tap shift-accumulate, zero-padded scratch ---
        pad_scr[pl.ds(3, D), :, :] = t
        rw = g_taps[0] * pad_scr[pl.ds(0, D), :, :]
        for a in range(1, 7):
            rw = rw + g_taps[a] * pad_scr[pl.ds(a, D), :, :]

        # --- fused masked log reduction (per-batch partials) ---
        valid = tgt_ref[...] != 0
        val = jnp.log(gath_ref[...] + resv_ref[...] / rw)
        out_ref[0, 0] = jnp.sum(jnp.where(valid, val, jnp.float32(0.0)))
        out_ref[0, 1] = jnp.sum(valid.astype(jnp.float32))

    return kernel


# ---------------------------------------------------------------------------
# Wrapper
# ---------------------------------------------------------------------------
def gambler_loss(pred, targets, g1d, *, tile_rows=256):
    B, C, D, H, W = pred.shape
    assert C == NUM_CLASSES
    N = D * H * W
    assert N % 128 == 0, "voxel count per batch element must be a multiple of 128"
    R = N // 128

    pred = pred.astype(jnp.float32)
    targets = targets.astype(jnp.int32)

    # lane/sublane-dense views (trivial reshapes, no data movement)
    pred4 = pred.reshape(B, C, R, 128)
    tgt3 = targets.reshape(B, R, 128)

    tr = min(tile_rows, R)
    assert R % tr == 0 and (tr % 8 == 0 or tr == R)
    grid1 = (B, R // tr)

    out_sd = jax.ShapeDtypeStruct((B, R, 128), jnp.float32)
    vox_spec = pl.BlockSpec((None, tr, 128), lambda b, i: (b, i, 0))
    gath, resv, rew = pl.pallas_call(
        make_softmax_gather_kernel(C),
        out_shape=(out_sd, out_sd, out_sd),
        grid=grid1,
        in_specs=[pl.BlockSpec((None, C, tr, 128), lambda b, i: (b, 0, i, 0)),
                  vox_spec],
        out_specs=(vox_spec, vox_spec, vox_spec),
        compiler_params=pltpu.CompilerParams(
            dimension_semantics=("parallel", "parallel")),
    )(pred4, tgt3)

    if GAUSSIAN_FILTER:
        band_w = jnp.asarray(band_matrix(W, g1d))
        band_h = jnp.asarray(band_matrix(H, g1d))
        vol = lambda a: a.reshape(B, D, H, W)
        vspec = pl.BlockSpec((None, D, H, W), lambda b: (b, 0, 0, 0))
        partials = pl.pallas_call(
            make_conv_loss_kernel(g1d),
            out_shape=jax.ShapeDtypeStruct((B, 2), jnp.float32),
            grid=(B,),
            in_specs=[vspec, vspec, vspec, vspec,
                      pl.BlockSpec((W, W), lambda b: (0, 0)),
                      pl.BlockSpec((H, H), lambda b: (0, 0))],
            out_specs=pl.BlockSpec((1, 2), lambda b: (b, 0),
                                   memory_space=pltpu.MemorySpace.SMEM),
            scratch_shapes=[pltpu.VMEM((D + 6, H, W), jnp.float32)],
            compiler_params=pltpu.CompilerParams(
                dimension_semantics=("parallel",)),
        )(vol(rew), vol(gath), vol(resv), targets, band_w, band_h)
        return -(jnp.sum(partials[:, 0]) / jnp.sum(partials[:, 1]))

    # (unfiltered fallback, not exercised in this script)
    val = jnp.log(gath + resv / rew)
    valid = (tgt3 != 0).astype(jnp.float32)
    return -jnp.sum(val * valid) / jnp.sum(valid)


# ---------------------------------------------------------------------------
# Pure-JAX reference (mirrors the PyTorch forward, wrong_sample=False)
# ---------------------------------------------------------------------------
def gambler_loss_ref(pred, targets, g1d):
    pred = pred.astype(jnp.float32)
    pred = pred.at[:, 0].set(-99999.0)
    prob = jax.nn.softmax(pred, axis=1)
    prob = jnp.maximum(prob, 1e-7)
    true_pred = jnp.concatenate([prob[:, :5], prob[:, 6:]], axis=1)
    reservation = prob[:, 5]
    reward = jax.nn.logsumexp(
        jnp.concatenate([pred[:, 1:5], pred[:, 6:]], axis=1), axis=1) ** 2
    if GAUSSIAN_FILTER:
        g = np.asarray(g1d, np.float64)
        k3d = (g[:, None, None] * g[None, :, None] * g[None, None, :]).astype(np.float32)
        w = jnp.asarray(k3d).reshape(1, 1, 7, 7, 7)
        reward = lax.conv_general_dilated(
            reward[:, None], w, window_strides=(1, 1, 1),
            padding=[(3, 3)] * 3,
            dimension_numbers=("NCDHW", "OIDHW", "NCDHW"))[:, 0]
    reservation = reservation / reward
    mask = targets == 0
    shifted = targets - (targets > 5).astype(jnp.int32)
    gl = jnp.take_along_axis(true_pred, shifted[:, None], axis=1)[:, 0]
    gl = gl + reservation
    vals = jnp.log(gl)
    valid = (~mask).astype(jnp.float32)
    return -jnp.sum(vals * valid) / jnp.sum(valid)


if __name__ == "__main__":
    key = jax.random.PRNGKey(0)
    B, C, D, H, W = 2, NUM_CLASSES, 8, 8, 128
    k1, k2 = jax.random.split(key)
    pred = jax.random.normal(k1, (B, C, D, H, W), dtype=jnp.float32)
    targets = jax.random.randint(k2, (B, D, H, W), 0, NUM_CLASSES, dtype=jnp.int32)

    g1d = gaussian1d_weights()

    loss = jax.block_until_ready(gambler_loss(pred, targets, g1d))
    ref = jax.block_until_ready(gambler_loss_ref(pred, targets, g1d))
    np.testing.assert_allclose(np.asarray(loss), np.asarray(ref),
                               rtol=1e-3, atol=1e-3)
    print("KERNEL_OK")
</pallas_src>

<mosaic_0001>
module attributes {stable_mosaic.version = 11 : i64} {
  func.func @kernel(%arg0: i32, %arg1: i32, %arg2: memref<1x20x64x128xf32, #tpu.memory_space<vmem>>, %arg3: memref<1x64x128xi32, #tpu.memory_space<vmem>>, %arg4: memref<1x64x128xf32, #tpu.memory_space<vmem>>, %arg5: memref<1x64x128xf32, #tpu.memory_space<vmem>>, %arg6: memref<1x64x128xf32, #tpu.memory_space<vmem>>) attributes {dimension_semantics = [#tpu.dimension_semantics<parallel>, #tpu.dimension_semantics<parallel>], iteration_bounds = array<i64: 2, 1>, scalar_prefetch = 0 : i64, scratch_operands = 0 : i64, tpu.core_type = #tpu.core_type<tc>, window_params = [{transform_indices = @transform_0, window_bounds = array<i64: 1, 20, 64, 128>}, {transform_indices = @transform_1, window_bounds = array<i64: 1, 64, 128>}, {transform_indices = @transform_2, window_bounds = array<i64: 1, 64, 128>}, {transform_indices = @transform_3, window_bounds = array<i64: 1, 64, 128>}, {transform_indices = @transform_4, window_bounds = array<i64: 1, 64, 128>}]} {
    %c0 = arith.constant 0 : index
    %c0_0 = arith.constant 0 : index
    %c0_1 = arith.constant 0 : index
    %c0_2 = arith.constant 0 : index
    %0 = vector.load %arg2[%c0, %c0_0, %c0_1, %c0_2] : memref<1x20x64x128xf32, #tpu.memory_space<vmem>>, vector<1x20x64x128xf32>
    %1 = vector.shape_cast %0 : vector<1x20x64x128xf32> to vector<20x64x128xf32>
    %2 = vector.extract_strided_slice %1 {offsets = [1, 0, 0], sizes = [19, 64, 128], strides = [1, 1, 1]} : vector<20x64x128xf32> to vector<19x64x128xf32>
    %c0_3 = arith.constant 0 : index
    %c0_4 = arith.constant 0 : index
    %c0_5 = arith.constant 0 : index
    %3 = vector.load %arg3[%c0_3, %c0_4, %c0_5] : memref<1x64x128xi32, #tpu.memory_space<vmem>>, vector<1x64x128xi32>
    %4 = vector.shape_cast %3 : vector<1x64x128xi32> to vector<64x128xi32>
    %cst = arith.constant dense<0xFF800000> : vector<64x128xf32>
    %5 = vector.multi_reduction <maximumf>, %2, %cst [0] : vector<19x64x128xf32> to vector<64x128xf32>
    %6 = vector.shape_cast %5 : vector<64x128xf32> to vector<1x64x128xf32>
    %7 = vector.broadcast %6 : vector<1x64x128xf32> to vector<19x64x128xf32>
    %8 = arith.subf %2, %7 : vector<19x64x128xf32>
    %9 = math.exp %8 : vector<19x64x128xf32>
    %cst_6 = arith.constant dense<0.000000e+00> : vector<64x128xf32>
    %10 = vector.multi_reduction <add>, %9, %cst_6 [0] : vector<19x64x128xf32> to vector<64x128xf32>
    %cst_7 = arith.constant 1.000000e+00 : f32
    %11 = vector.broadcast %cst_7 : f32 to vector<64x128xf32>
    %12 = arith.divf %11, %10 : vector<64x128xf32>
    %c5_i32 = arith.constant 5 : i32
    %13 = vector.broadcast %c5_i32 : i32 to vector<64x128xi32>
    %14 = arith.cmpi eq, %4, %13 : vector<64x128xi32>
    %c6_i32 = arith.constant 6 : i32
    %15 = vector.broadcast %c6_i32 : i32 to vector<64x128xi32>
    %16 = arith.select %14, %15, %4 : vector<64x128xi1>, vector<64x128xi32>
    %cst_8 = arith.constant 0.000000e+00 : f32
    %17 = vector.broadcast %cst_8 : f32 to vector<64x128xf32>
    %c1_i32 = arith.constant 1 : i32
    %18 = vector.broadcast %c1_i32 : i32 to vector<64x128xi32>
    %19 = arith.cmpi eq, %16, %18 : vector<64x128xi32>
    %20 = vector.extract_strided_slice %9 {offsets = [0, 0, 0], sizes = [1, 64, 128], strides = [1, 1, 1]} : vector<19x64x128xf32> to vector<1x64x128xf32>
    %21 = vector.shape_cast %20 : vector<1x64x128xf32> to vector<64x128xf32>
    %22 = arith.select %19, %21, %17 : vector<64x128xi1>, vector<64x128xf32>
    %c2_i32 = arith.constant 2 : i32
    %23 = vector.broadcast %c2_i32 : i32 to vector<64x128xi32>
    %24 = arith.cmpi eq, %16, %23 : vector<64x128xi32>
    %25 = vector.extract_strided_slice %9 {offsets = [1, 0, 0], sizes = [1, 64, 128], strides = [1, 1, 1]} : vector<19x64x128xf32> to vector<1x64x128xf32>
    %26 = vector.shape_cast %25 : vector<1x64x128xf32> to vector<64x128xf32>
    %27 = arith.select %24, %26, %22 : vector<64x128xi1>, vector<64x128xf32>
    %c3_i32 = arith.constant 3 : i32
    %28 = vector.broadcast %c3_i32 : i32 to vector<64x128xi32>
    %29 = arith.cmpi eq, %16, %28 : vector<64x128xi32>
    %30 = vector.extract_strided_slice %9 {offsets = [2, 0, 0], sizes = [1, 64, 128], strides = [1, 1, 1]} : vector<19x64x128xf32> to vector<1x64x128xf32>
    %31 = vector.shape_cast %30 : vector<1x64x128xf32> to vector<64x128xf32>
    %32 = arith.select %29, %31, %27 : vector<64x128xi1>, vector<64x128xf32>
    %c4_i32 = arith.constant 4 : i32
    %33 = vector.broadcast %c4_i32 : i32 to vector<64x128xi32>
    %34 = arith.cmpi eq, %16, %33 : vector<64x128xi32>
    %35 = vector.extract_strided_slice %9 {offsets = [3, 0, 0], sizes = [1, 64, 128], strides = [1, 1, 1]} : vector<19x64x128xf32> to vector<1x64x128xf32>
    %36 = vector.shape_cast %35 : vector<1x64x128xf32> to vector<64x128xf32>
    %37 = arith.select %34, %36, %32 : vector<64x128xi1>, vector<64x128xf32>
    %c5_i32_9 = arith.constant 5 : i32
    %38 = vector.broadcast %c5_i32_9 : i32 to vector<64x128xi32>
    %39 = arith.cmpi eq, %16, %38 : vector<64x128xi32>
    %40 = vector.extract_strided_slice %9 {offsets = [4, 0, 0], sizes = [1, 64, 128], strides = [1, 1, 1]} : vector<19x64x128xf32> to vector<1x64x128xf32>
    %41 = vector.shape_cast %40 : vector<1x64x128xf32> to vector<64x128xf32>
    %42 = arith.select %39, %41, %37 : vector<64x128xi1>, vector<64x128xf32>
    %c6_i32_10 = arith.constant 6 : i32
    %43 = vector.broadcast %c6_i32_10 : i32 to vector<64x128xi32>
    %44 = arith.cmpi eq, %16, %43 : vector<64x128xi32>
    %45 = vector.extract_strided_slice %9 {offsets = [5, 0, 0], sizes = [1, 64, 128], strides = [1, 1, 1]} : vector<19x64x128xf32> to vector<1x64x128xf32>
    %46 = vector.shape_cast %45 : vector<1x64x128xf32> to vector<64x128xf32>
    %47 = arith.select %44, %46, %42 : vector<64x128xi1>, vector<64x128xf32>
    %c7_i32 = arith.constant 7 : i32
    %48 = vector.broadcast %c7_i32 : i32 to vector<64x128xi32>
    %49 = arith.cmpi eq, %16, %48 : vector<64x128xi32>
    %50 = vector.extract_strided_slice %9 {offsets = [6, 0, 0], sizes = [1, 64, 128], strides = [1, 1, 1]} : vector<19x64x128xf32> to vector<1x64x128xf32>
    %51 = vector.shape_cast %50 : vector<1x64x128xf32> to vector<64x128xf32>
    %52 = arith.select %49, %51, %47 : vector<64x128xi1>, vector<64x128xf32>
    %c8_i32 = arith.constant 8 : i32
    %53 = vector.broadcast %c8_i32 : i32 to vector<64x128xi32>
    %54 = arith.cmpi eq, %16, %53 : vector<64x128xi32>
    %55 = vector.extract_strided_slice %9 {offsets = [7, 0, 0], sizes = [1, 64, 128], strides = [1, 1, 1]} : vector<19x64x128xf32> to vector<1x64x128xf32>
    %56 = vector.shape_cast %55 : vector<1x64x128xf32> to vector<64x128xf32>
    %57 = arith.select %54, %56, %52 : vector<64x128xi1>, vector<64x128xf32>
    %c9_i32 = arith.constant 9 : i32
    %58 = vector.broadcast %c9_i32 : i32 to vector<64x128xi32>
    %59 = arith.cmpi eq, %16, %58 : vector<64x128xi32>
    %60 = vector.extract_strided_slice %9 {offsets = [8, 0, 0], sizes = [1, 64, 128], strides = [1, 1, 1]} : vector<19x64x128xf32> to vector<1x64x128xf32>
    %61 = vector.shape_cast %60 : vector<1x64x128xf32> to vector<64x128xf32>
    %62 = arith.select %59, %61, %57 : vector<64x128xi1>, vector<64x128xf32>
    %c10_i32 = arith.constant 10 : i32
    %63 = vector.broadcast %c10_i32 : i32 to vector<64x128xi32>
    %64 = arith.cmpi eq, %16, %63 : vector<64x128xi32>
    %65 = vector.extract_strided_slice %9 {offsets = [9, 0, 0], sizes = [1, 64, 128], strides = [1, 1, 1]} : vector<19x64x128xf32> to vector<1x64x128xf32>
    %66 = vector.shape_cast %65 : vector<1x64x128xf32> to vector<64x128xf32>
    %67 = arith.select %64, %66, %62 : vector<64x128xi1>, vector<64x128xf32>
    %c11_i32 = arith.constant 11 : i32
    %68 = vector.broadcast %c11_i32 : i32 to vector<64x128xi32>
    %69 = arith.cmpi eq, %16, %68 : vector<64x128xi32>
    %70 = vector.extract_strided_slice %9 {offsets = [10, 0, 0], sizes = [1, 64, 128], strides = [1, 1, 1]} : vector<19x64x128xf32> to vector<1x64x128xf32>
    %71 = vector.shape_cast %70 : vector<1x64x128xf32> to vector<64x128xf32>
    %72 = arith.select %69, %71, %67 : vector<64x128xi1>, vector<64x128xf32>
    %c12_i32 = arith.constant 12 : i32
    %73 = vector.broadcast %c12_i32 : i32 to vector<64x128xi32>
    %74 = arith.cmpi eq, %16, %73 : vector<64x128xi32>
    %75 = vector.extract_strided_slice %9 {offsets = [11, 0, 0], sizes = [1, 64, 128], strides = [1, 1, 1]} : vector<19x64x128xf32> to vector<1x64x128xf32>
    %76 = vector.shape_cast %75 : vector<1x64x128xf32> to vector<64x128xf32>
    %77 = arith.select %74, %76, %72 : vector<64x128xi1>, vector<64x128xf32>
    %c13_i32 = arith.constant 13 : i32
    %78 = vector.broadcast %c13_i32 : i32 to vector<64x128xi32>
    %79 = arith.cmpi eq, %16, %78 : vector<64x128xi32>
    %80 = vector.extract_strided_slice %9 {offsets = [12, 0, 0], sizes = [1, 64, 128], strides = [1, 1, 1]} : vector<19x64x128xf32> to vector<1x64x128xf32>
    %81 = vector.shape_cast %80 : vector<1x64x128xf32> to vector<64x128xf32>
    %82 = arith.select %79, %81, %77 : vector<64x128xi1>, vector<64x128xf32>
    %c14_i32 = arith.constant 14 : i32
    %83 = vector.broadcast %c14_i32 : i32 to vector<64x128xi32>
    %84 = arith.cmpi eq, %16, %83 : vector<64x128xi32>
    %85 = vector.extract_strided_slice %9 {offsets = [13, 0, 0], sizes = [1, 64, 128], strides = [1, 1, 1]} : vector<19x64x128xf32> to vector<1x64x128xf32>
    %86 = vector.shape_cast %85 : vector<1x64x128xf32> to vector<64x128xf32>
    %87 = arith.select %84, %86, %82 : vector<64x128xi1>, vector<64x128xf32>
    %c15_i32 = arith.constant 15 : i32
    %88 = vector.broadcast %c15_i32 : i32 to vector<64x128xi32>
    %89 = arith.cmpi eq, %16, %88 : vector<64x128xi32>
    %90 = vector.extract_strided_slice %9 {offsets = [14, 0, 0], sizes = [1, 64, 128], strides = [1, 1, 1]} : vector<19x64x128xf32> to vector<1x64x128xf32>
    %91 = vector.shape_cast %90 : vector<1x64x128xf32> to vector<64x128xf32>
    %92 = arith.select %89, %91, %87 : vector<64x128xi1>, vector<64x128xf32>
    %c16_i32 = arith.constant 16 : i32
    %93 = vector.broadcast %c16_i32 : i32 to vector<64x128xi32>
    %94 = arith.cmpi eq, %16, %93 : vector<64x128xi32>
    %95 = vector.extract_strided_slice %9 {offsets = [15, 0, 0], sizes = [1, 64, 128], strides = [1, 1, 1]} : vector<19x64x128xf32> to vector<1x64x128xf32>
    %96 = vector.shape_cast %95 : vector<1x64x128xf32> to vector<64x128xf32>
    %97 = arith.select %94, %96, %92 : vector<64x128xi1>, vector<64x128xf32>
    %c17_i32 = arith.constant 17 : i32
    %98 = vector.broadcast %c17_i32 : i32 to vector<64x128xi32>
    %99 = arith.cmpi eq, %16, %98 : vector<64x128xi32>
    %100 = vector.extract_strided_slice %9 {offsets = [16, 0, 0], sizes = [1, 64, 128], strides = [1, 1, 1]} : vector<19x64x128xf32> to vector<1x64x128xf32>
    %101 = vector.shape_cast %100 : vector<1x64x128xf32> to vector<64x128xf32>
    %102 = arith.select %99, %101, %97 : vector<64x128xi1>, vector<64x128xf32>
    %c18_i32 = arith.constant 18 : i32
    %103 = vector.broadcast %c18_i32 : i32 to vector<64x128xi32>
    %104 = arith.cmpi eq, %16, %103 : vector<64x128xi32>
    %105 = vector.extract_strided_slice %9 {offsets = [17, 0, 0], sizes = [1, 64, 128], strides = [1, 1, 1]} : vector<19x64x128xf32> to vector<1x64x128xf32>
    %106 = vector.shape_cast %105 : vector<1x64x128xf32> to vector<64x128xf32>
    %107 = arith.select %104, %106, %102 : vector<64x128xi1>, vector<64x128xf32>
    %c19_i32 = arith.constant 19 : i32
    %108 = vector.broadcast %c19_i32 : i32 to vector<64x128xi32>
    %109 = arith.cmpi eq, %16, %108 : vector<64x128xi32>
    %110 = vector.extract_strided_slice %9 {offsets = [18, 0, 0], sizes = [1, 64, 128], strides = [1, 1, 1]} : vector<19x64x128xf32> to vector<1x64x128xf32>
    %111 = vector.shape_cast %110 : vector<1x64x128xf32> to vector<64x128xf32>
    %112 = arith.select %109, %111, %107 : vector<64x128xi1>, vector<64x128xf32>
    %113 = arith.mulf %112, %12 : vector<64x128xf32>
    %cst_11 = arith.constant 1.000000e-07 : f32
    %114 = vector.broadcast %cst_11 : f32 to vector<64x128xf32>
    %115 = arith.maximumf %113, %114 : vector<64x128xf32>
    %c0_12 = arith.constant 0 : index
    %c0_13 = arith.constant 0 : index
    %c0_14 = arith.constant 0 : index
    %116 = vector.load %arg4[%c0_12, %c0_13, %c0_14] : memref<1x64x128xf32, #tpu.memory_space<vmem>>, vector<1x64x128xf32>
    %117 = vector.shape_cast %116 : vector<1x64x128xf32> to vector<64x128xf32>
    %118 = vector.shape_cast %115 : vector<64x128xf32> to vector<1x64x128xf32>
    tpu.vector_store %arg4[%c0_12, %c0_13, %c0_14], %118 {strides = array<i32>} : memref<1x64x128xf32, #tpu.memory_space<vmem>>, vector<1x64x128xf32>,
    %119 = vector.extract_strided_slice %9 {offsets = [4, 0, 0], sizes = [1, 64, 128], strides = [1, 1, 1]} : vector<19x64x128xf32> to vector<1x64x128xf32>
    %120 = vector.shape_cast %119 : vector<1x64x128xf32> to vector<64x128xf32>
    %121 = arith.mulf %120, %12 : vector<64x128xf32>
    %cst_15 = arith.constant 1.000000e-07 : f32
    %122 = vector.broadcast %cst_15 : f32 to vector<64x128xf32>
    %123 = arith.maximumf %121, %122 : vector<64x128xf32>
    %c0_16 = arith.constant 0 : index
    %c0_17 = arith.constant 0 : index
    %c0_18 = arith.constant 0 : index
    %124 = vector.load %arg5[%c0_16, %c0_17, %c0_18] : memref<1x64x128xf32, #tpu.memory_space<vmem>>, vector<1x64x128xf32>
    %125 = vector.shape_cast %124 : vector<1x64x128xf32> to vector<64x128xf32>
    %126 = vector.shape_cast %123 : vector<64x128xf32> to vector<1x64x128xf32>
    tpu.vector_store %arg5[%c0_16, %c0_17, %c0_18], %126 {strides = array<i32>} : memref<1x64x128xf32, #tpu.memory_space<vmem>>, vector<1x64x128xf32>,
    %127 = vector.extract_strided_slice %9 {offsets = [4, 0, 0], sizes = [1, 64, 128], strides = [1, 1, 1]} : vector<19x64x128xf32> to vector<1x64x128xf32>
    %128 = vector.shape_cast %127 : vector<1x64x128xf32> to vector<64x128xf32>
    %129 = arith.subf %10, %128 : vector<64x128xf32>
    %130 = math.log %129 : vector<64x128xf32>
    %131 = arith.addf %5, %130 : vector<64x128xf32>
    %132 = arith.mulf %131, %131 : vector<64x128xf32>
    %c0_19 = arith.constant 0 : index
    %c0_20 = arith.constant 0 : index
    %c0_21 = arith.constant 0 : index
    %133 = vector.load %arg6[%c0_19, %c0_20, %c0_21] : memref<1x64x128xf32, #tpu.memory_space<vmem>>, vector<1x64x128xf32>
    %134 = vector.shape_cast %133 : vector<1x64x128xf32> to vector<64x128xf32>
    %135 = vector.shape_cast %132 : vector<64x128xf32> to vector<1x64x128xf32>
    tpu.vector_store %arg6[%c0_19, %c0_20, %c0_21], %135 {strides = array<i32>} : memref<1x64x128xf32, #tpu.memory_space<vmem>>, vector<1x64x128xf32>,
    return
  }
  func.func @transform_0(%arg0: i32, %arg1: i32) -> (i32, i32, i32, i32) {
    %c0_i32 = arith.constant 0 : i32
    %c0_i32_0 = arith.constant 0 : i32
    %c0_i32_1 = arith.constant 0 : i32
    return %arg0, %c0_i32, %arg1, %c0_i32_0 : i32, i32, i32, i32
  }
  func.func @transform_1(%arg0: i32, %arg1: i32) -> (i32, i32, i32) {
    %c0_i32 = arith.constant 0 : i32
    %c0_i32_0 = arith.constant 0 : i32
    return %arg0, %arg1, %c0_i32 : i32, i32, i32
  }
  func.func @transform_2(%arg0: i32, %arg1: i32) -> (i32, i32, i32) {
    %c0_i32 = arith.constant 0 : i32
    %c0_i32_0 = arith.constant 0 : i32
    return %arg0, %arg1, %c0_i32 : i32, i32, i32
  }
  func.func @transform_3(%arg0: i32, %arg1: i32) -> (i32, i32, i32) {
    %c0_i32 = arith.constant 0 : i32
    %c0_i32_0 = arith.constant 0 : i32
    return %arg0, %arg1, %c0_i32 : i32, i32, i32
  }
  func.func @transform_4(%arg0: i32, %arg1: i32) -> (i32, i32, i32) {
    %c0_i32 = arith.constant 0 : i32
    %c0_i32_0 = arith.constant 0 : i32
    return %arg0, %arg1, %c0_i32 : i32, i32, i32
  }
}

</mosaic_0001>

<bundles_post_ra>
// kernel: tpu_custom_call.1
= control target key start
LH: loop header
LB: loop body
LE: loop exit
PB: predicated region body
PF: predicated region fallthrough
CT: control target
= control target key end

     0   :  { %s4880_s0 = inlined_call_operand.hbm [shape: f32[2,20,64,128], index: 0, kind: input, shape index: {}]   ;;  %s4881_s1 = inlined_call_operand.hbm [shape: s32[2,64,128], index: 1, kind: input, shape index: {}]   ;;  %s4882_s2 = inlined_call_operand.hbm [shape: f32[2,64,128], index: 2, kind: output, shape index: {0}]   ;;  %s4883_s3 = inlined_call_operand.hbm [shape: f32[2,64,128], index: 3, kind: output, shape index: {1}]   ;;  %s4884_s4 = inlined_call_operand.hbm [shape: f32[2,64,128], index: 4, kind: output, shape index: {2}]  }
   0x1   :  { %5043 = sst [smem:[#allocation122_spill]] %s4880_s0 }
   0x2   :  { %10 = vsyncpa [#allocation3], 0 }
   0x3   :  { %12 = vsyncpa [#allocation3 + $0x1], 0 }
   0x4   :  { %13 = vsyncpa [#allocation6], 0 }
   0x5   :  { %15 = vsyncpa [#allocation6 + $0x1], 0 }
   0x6   :  { %16 = vsyncpa [#allocation4], 0 }
   0x7   :  { %18 = vsyncpa [#allocation4 + $0x1], 0 }
   0x8   :  { %19 = vsyncpa [#allocation9], 0 }
   0x9   :  { %21 = vsyncpa [#allocation9 + $0x1], 0  ;;  %s2578_s15 = smov 0   ;;  %s2580_s16 = smov 0  }
   0xa   :  { %s2582_s17 = smov 0   ;;  %s2584_s18 = smov 0  }
   0xb   :  { %s2586_s19 = smov 0   ;;  %s2588_s20 = smov 0  }
   0xc LB: > { %s2609_s21 = sadd.s32 4294967295, %s2542_s20   ;;  %s4885_s22 = sadd.s32 4294967294, %s2542_s20   ;;  %s2542_s20 = sphi %s2588_s20, %s27_s20   ;;  %s2538_s19 = sphi %s2586_s19, %s5384_s19   ;;  %s2534_s18 = sphi %s2584_s18, %s5383_s18   ;;  %s2530_s17 = sphi %s2582_s17, %s5382_s17   ;;  %s2526_s16 = sphi %s2580_s16, %s5381_s16   ;;  %s2522_s15 = sphi %s2578_s15, %s5380_s15  }
   0xd   : > { %s39_s23 = sadd.s32 1, %s2538_s19  ;;  %s48_s24 = sadd.s32 1, %s2530_s17 }
   0xe   : > { %p41_p0 = scmp.ge.s32.totalorder %s39_s23, 2  ;;  %p55_p1 = scmp.ne.s32.totalorder %s2530_s17, %s2526_s16 }
   0xf   : > { %p56_p2 = scmp.eq.s32.totalorder %s2542_s20, 0  ;;  %p61_p3 = scmp.ne.s32.totalorder %s2526_s16, %s2522_s15 }
  0x10   : > { %s5386_s23 = smov (%p41_p0, %s39_s23), 0  ;;  %p62_p5 = scmp.eq.s32.totalorder %s2609_s21, 0 }
  0x11   : > { %5044 = sst [smem:[#allocation15_spill]] %s5386_s23  ;;  %p2621_p4 = por %p56_p2, %p55_p1 }
  0x12   : > { %s43_s26 = ssub.s32 %s2538_s19, %s5386_s23  ;;  %p115_p6 = scmp.eq.s32.totalorder %s2609_s21, 1 }
  0x13   : > { %p46_p7 = scmp.eq.s32.totalorder %s43_s26, 0  ;;  %p2629_p8 = por %p62_p5, %p61_p3 }
  0x14   : > { %p2633_p9 = por %p115_p6, %p55_p1  ;;  %p121_p10 = scmp.eq.s32.totalorder %s4885_s22, 1 }
  0x15   : > { %s2640_s29 = scalar_select %p46_p7, %s2530_s17, %s48_s24  }
  0x16   : > { %p2642_p11 = por %p121_p10, %p61_p3  ;;  %p1886_p12 = scmp.ge.s32.totalorder %s2542_s20, 2 }
  0x17   : > { %5048 = sst [smem:[#allocation16_spill]] %s2640_s29  ;;  %p1941_p13 = scmp.lt.s32.totalorder %s2542_s20, 2 }
  0x18   : > { %s2649_s5 = sand.u32 1, %s2530_s17   ;;  %s1912_s7 = smul.u32 20480, %s2538_s19 }
  0x19   : > { %s1911_s6 = smul.u32 1280, %s2649_s5  ;;  %p2655_p0 = pnand %p1941_p13, %p2621_p4 }
  0x1a   : > { %s5051_s0 = sld [smem:[#allocation122_spill]]  ;;  %p1891_p1 = scmp.ge.s32.totalorder %s2542_s20, 1 }
  0x1b   : > { %s201_s12 = scalar_lea.vmem [#allocation2], %s1911_s6  ;;  %s198_s14 = scalar_lea.sflag [#allocation3], %s2649_s5 }
  0x1c   : > { %s210_s13 = sshll.u32 %s201_s12, 4  ;;  %p2348_p2 = pneg %p2655_p0  ;;  %s211_s13 = int_to_ptr.vmem [resolvable:$true] %s210_s13 }
  0x1d   : > { %s2359_s24 = scalar_lea.vmem %s211_s13, 20480  ;;  %s2544_s25 = smov [#allocation2]  }
  0x1e   : > { %p2360_p3 = scmp.ne.s32.totalorder %s211_s13, %s2359_s24  ;;  %s2364_s26 = sshll.u32 %s2544_s25, 4  ;;  %s2365_s26 = int_to_ptr.vmem [resolvable:$false] %s2364_s26 }
  0x1f   : > { %s2366_s9 = scalar_lea.vmem %s2365_s26, 40960  ;;  %p2367_p6 = scmp.lt.s32.totalorder %s211_s13, %s2365_s26 }
  0x20   : > { %s209_s11 = scalar_lea.hbm %s5051_s0, %s1912_s7  ;;  %p2362_p4 = pnand %p2360_p3, %p2348_p2 }
  0x21   : > { %p2368_p7 = scmp.lt.s32.totalorder %s2366_s9, %s2359_s24 }
  0x22   : > { %p2363_p5 = pneg %p2362_p4 }
  0x23   : > { %p2369_p10 = por %p2368_p7, %p2367_p6 }
  0x25   : > { %p2370_p13 = pnand %p2369_p10, %p2363_p5 }
  0x27   : > { %2373 = shalt.err (!%p2370_p13)
}
  0x28   : > { %s2545_s6 = smov 128   ;;  %s2546_s7 = smov 8  }
  0x29   : > { %1927 = dma.hbm_to_vmem [thread:$0]  (!%p2655_p0), %s209_s11, 20480, %s211_s13, %s198_s14, %s2545_s6, %s2545_s6, %s2546_s7  }
  0x2a   : > { %p241_p3 = scmp.lt.s32.totalorder %s2542_s20, 3  ;;  %s1888_s10 = sshll.u32 %s2649_s5, 6 }
  0x2b   : > { %s1907_s12 = sshll.u32 %s2538_s19, 10  ;;  %s224_s22 = scalar_lea.vmem [#allocation5], %s1888_s10 }
  0x2c   : > { %p2676_p4 = pnand %p1891_p1, %p241_p3  ;;  %s232_s9 = scalar_lea.hbm %s4881_s1, %s1907_s12 }
  0x2d   : > { %s233_s0 = sshll.u32 %s224_s22, 4  ;;  %s221_s23 = scalar_lea.sflag [#allocation6], %s2649_s5  ;;  %s234_s0 = int_to_ptr.vmem [resolvable:$true] %s233_s0 }
  0x2e   : > { %s2387_s29 = scalar_lea.vmem %s234_s0, 1024  ;;  %s2547_s11 = smov [#allocation5]  }
  0x2f   : > { %p2388_p5 = scmp.ne.s32.totalorder %s234_s0, %s2387_s29  ;;  %s2392_s13 = sshll.u32 %s2547_s11, 4  ;;  %s2393_s13 = int_to_ptr.vmem [resolvable:$false] %s2392_s13 }
  0x30   : > { %s2394_s14 = scalar_lea.vmem %s2393_s13, 2048  ;;  %p2395_p1 = scmp.lt.s32.totalorder %s234_s0, %s2393_s13 }
  0x31   : > { %p2390_p6 = pnand %p2388_p5, %p2348_p2  ;;  %p2396_p10 = scmp.lt.s32.totalorder %s2394_s14, %s2387_s29 }
  0x33   : > { %p2391_p7 = pneg %p2390_p6  ;;  %p2397_p13 = por %p2396_p10, %p2395_p1 }
  0x35   : > { %p2398_p3 = pnand %p2397_p13, %p2391_p7 }
  0x37   : > { %2401 = shalt.err (!%p2398_p3)
}
  0x38   : > { %1930 = dma.hbm_to_vmem [thread:$0]  (!%p2655_p0), %s232_s9, 1024, %s234_s0, %s221_s23, %s2545_s6, %s2545_s6, %s2546_s7  }
  0x39   : > { %245 = sbr.rel (%p2676_p4) target bundleno = 432 (0x1b0), region = 28 }
  0x3e   : > { %s2692_s22 = sand.u32 1, %s2526_s16  }
  0x3f   : > { %s1913_s5 = smul.u32 1280, %s2692_s22  ;;  %s248_s10 = scalar_lea.sflag [#allocation3], %s2692_s22 }
  0x41   : > { %s2696_s12 = scalar_lea.vmem [#allocation2], %s1913_s5 }
  0x42   : > { %2505 = dma.done.wait (%p2629_p8), %s248_s10, 20480  }
  0x43   : > { %2507 = vsyncadd (%p2629_p8), %s248_s10, 4294946816  ;;  %s2703_s0 = sshll.u32 %s2692_s22, 6  ;;  %s257_s23 = scalar_lea.sflag [#allocation6], %s2692_s22 }
  0x44   : > { %s2707_s29 = scalar_lea.vmem [#allocation5], %s2703_s0 }
  0x45   : > { %2509 = dma.done.wait (%p2629_p8), %s257_s23, 1024  }
  0x46   : > { %2511 = vsyncadd (%p2629_p8), %s257_s23, 4294966272  ;;  %v2714_v0 = vld [vmem:[%s2696_s12 + $0x40] sm:$0xff]  ;;  %v2736_v9 = vld [vmem:[%s2696_s12 + $0x48] sm:$0xff]  ;;  %s3550_s27 = scalar_lea.vmem [#allocation8], %s2703_s0  ;;  %s4252_s8 = scalar_lea.vmem [#allocation7], %s2703_s0 }
  0x47   : > { %v2717_v1 = vld [vmem:[%s2696_s12 + $0x80] sm:$0xff]  ;;  %v2739_v10 = vld [vmem:[%s2696_s12 + $0x88] sm:$0xff]  ;;  %v2770_v24 = vld [vmem:[%s2696_s12 + $0x50] sm:$0xff]  ;;  %s1685_s6 = sshll.u32 %s3550_s27, 4  ;;  %s1646_s7 = sand.u32 1, %s2609_s21   ;;  %s4571_s6 = int_to_ptr.vmem [resolvable:$true] %s1685_s6 }
  0x48   : > { %v2720_v2 = vld [vmem:[%s2696_s12 + $0xc0] sm:$0xff]  ;;  %v465_v3 = vmax.f32 %v2714_v0, %v2717_v1  ;;  %v2743_v12 = vld [vmem:[%s2696_s12 + $0xc8] sm:$0xff]  ;;  %v483_v13 = vmax.f32 %v2736_v9, %v2739_v10  ;;  %v2775_v27 = vld [vmem:[%s2696_s12 + $0x90] sm:$0xff]  ;;  %s4569_s24 = sshll.u32 %s2534_s18, 10  ;;  %s4620_s9 = scalar_lea.sflag [#allocation9], %s1646_s7 }
  0x49   : > { %v2725_v4 = vld [vmem:[%s2696_s12 + $0x100] sm:$0xff]  ;;  %v2751_v15 = vld [vmem:[%s2696_s12 + $0x108] sm:$0xff]  ;;  %v2778_v28 = vld [vmem:[%s2696_s12 + $0xd0] sm:$0xff]  ;;  %v501_v31 = vmax.f32 %v2770_v24, %v2775_v27  ;;  %s4595_s26 = scalar_lea.hbm %s4883_s3, %s4569_s24  ;;  %s2402_s11 = scalar_lea.vmem %s4571_s6, 1024 }
  0x4a   : > { %v466_v5 = vmax.f32 %v465_v3, %v2720_v2  ;;  %v2729_v6 = vld [vmem:[%s2696_s12 + $0x140] sm:$0xff]  ;;  %v484_v17 = vmax.f32 %v483_v13, %v2743_v12  ;;  %v2759_v19 = vld [vmem:[%s2696_s12 + $0x148] sm:$0xff]  ;;  %v2791_v34 = vld [vmem:[%s2696_s12 + $0x110] sm:$0xff]  ;;  %p2403_p8 = scmp.ne.s32.totalorder %s4571_s6, %s2402_s11  ;;  %s2548_s13 = smov [#allocation8]  }
  0x4b   : > { %v2733_v8 = vld [vmem:[%s2696_s12 + $0x180] sm:$0xff]  ;;  %v2767_v23 = vld [vmem:[%s2696_s12 + $0x188] sm:$0xff]  ;;  %v502_v37 = vmax.f32 %v501_v31, %v2778_v28  ;;  %v2803_v40 = vld [vmem:[%s2696_s12 + $0x150] sm:$0xff]  ;;  %s2406_s14 = sshll.u32 %s2548_s13, 4  ;;  %s2407_s14 = int_to_ptr.vmem [resolvable:$false] %s2406_s14 }
  0x4c   : > { %v467_v7 = vmax.f32 %v466_v5, %v2725_v4  ;;  %v2748_v14 = vld [vmem:[%s2696_s12 + $0x1c0] sm:$0xff]  ;;  %v485_v21 = vmax.f32 %v484_v17, %v2751_v15  ;;  %v2784_v30 = vld [vmem:[%s2696_s12 + $0x1c8] sm:$0xff]  ;;  %v2812_v43 = vld [vmem:[%s2696_s12 + $0x190] sm:$0xff]  ;;  %p2404_p0 = pnand %p2403_p8, %p2633_p9  ;;  %s2408_s5 = scalar_lea.vmem %s2407_s14, 2048 }
  0x4d   : > { %v2756_v18 = vld [vmem:[%s2696_s12 + $0x200] sm:$0xff]  ;;  %v2797_v36 = vld [vmem:[%s2696_s12 + $0x208] sm:$0xff]  ;;  %v503_v44 = vmax.f32 %v502_v37, %v2791_v34  ;;  %v2818_v47 = vld [vmem:[%s2696_s12 + $0x58] sm:$0xff]  ;;  %p2409_p4 = scmp.lt.s32.totalorder %s4571_s6, %s2407_s14  ;;  %p2410_p5 = scmp.lt.s32.totalorder %s2408_s5, %s2402_s11 }
  0x4e   : > { %v468_v11 = vmax.f32 %v467_v7, %v2729_v6  ;;  %v2764_v22 = vld [vmem:[%s2696_s12 + $0x240] sm:$0xff]  ;;  %v486_v26 = vmax.f32 %v485_v21, %v2759_v19  ;;  %v2809_v42 = vld [vmem:[%s2696_s12 + $0x248] sm:$0xff]  ;;  %5053 = vst [vmem:[#allocation17_spill] sm:$0xff] %v2818_v47  ;;  %v2821_v48 = vld [vmem:[%s2696_s12 + $0x98] sm:$0xff]  ;;  %p2405_p2 = pneg %p2404_p0 }
  0x4f   : > { %v2781_v29 = vld [vmem:[%s2696_s12 + $0x280] sm:$0xff]  ;;  %5054 = vst [vmem:[#allocation18_spill] sm:$0xff] %v2821_v48  ;;  %v2824_v49 = vld [vmem:[%s2696_s12 + $0xd8] sm:$0xff]  ;;  %v2830_v51 = vld [vmem:[%s2696_s12 + $0x288] sm:$0xff]  ;;  %v504_v52 = vmax.f32 %v503_v44, %v2803_v40  ;;  %v519_v53 = vmax.f32 %v2818_v47, %v2821_v48  ;;  %p2411_p6 = por %p2410_p5, %p2409_p4 }
  0x50   : > { %v469_v16 = vmax.f32 %v468_v11, %v2733_v8  ;;  %v487_v33 = vmax.f32 %v486_v26, %v2767_v23  ;;  %v2794_v35 = vld [vmem:[%s2696_s12 + $0x2c0] sm:$0xff]  ;;  %5055 = vst [vmem:[#allocation19_spill] sm:$0xff] %v2824_v49  ;;  %v2838_v56 = vld [vmem:[%s2696_s12 + $0x1d0] sm:$0xff]  ;;  %v2841_v57 = vld [vmem:[%s2696_s12 + $0x118] sm:$0xff] }
  0x51   : > { %v2806_v41 = vld [vmem:[%s2696_s12 + $0x300] sm:$0xff]  ;;  %5056 = vst [vmem:[#allocation20_spill] sm:$0xff] %v2841_v57  ;;  %v2847_v59 = vld [vmem:[%s2696_s12 + $0x2c8] sm:$0xff]  ;;  %v505_v60 = vmax.f32 %v504_v52, %v2812_v43  ;;  %v520_v61 = vmax.f32 %v519_v53, %v2824_v49  ;;  %v2854_v3 = vld [vmem:[%s2696_s12 + $0x210] sm:$0xff]  ;;  %p2412_p7 = pnand %p2411_p6, %p2405_p2 }
  0x52   : > { %v470_v20 = vmax.f32 %v469_v16, %v2748_v14  ;;  %v488_v39 = vmax.f32 %v487_v33, %v2784_v30  ;;  %v2827_v50 = vld [vmem:[%s2696_s12 + $0x340] sm:$0xff]  ;;  %5057 = vst [vmem:[#allocation21_spill] sm:$0xff] %v2854_v3  ;;  %v2857_v5 = vld [vmem:[%s2696_s12 + $0x158] sm:$0xff]  ;;  %v2863_v11 = vld [vmem:[%s2696_s12 + $0x308] sm:$0xff] }
  0x53   : > { %v2844_v58 = vld [vmem:[%s2696_s12 + $0x380] sm:$0xff]  ;;  %5058 = vst [vmem:[#allocation22_spill] sm:$0xff] %v2857_v5  ;;  %v2866_v13 = vld [vmem:[%s2696_s12 + $0x250] sm:$0xff]  ;;  %v506_v16 = vmax.f32 %v505_v60, %v2838_v56  ;;  %v521_v17 = vmax.f32 %v520_v61, %v2841_v57  ;;  %v2885_v33 = vld [vmem:[%s2696_s12 + $0x348] sm:$0xff] }
  0x54   : > { %v471_v25 = vmax.f32 %v470_v20, %v2756_v18  ;;  %v489_v46 = vmax.f32 %v488_v39, %v2797_v36  ;;  %v2860_v7 = vld [vmem:[%s2696_s12 + $0x3c0] sm:$0xff]  ;;  %5059 = vst [vmem:[#allocation23_spill] sm:$0xff] %v2866_v13  ;;  %v2897_v52 = vld [vmem:[%s2696_s12 + $0x290] sm:$0xff]  ;;  %v2900_v53 = vld [vmem:[%s2696_s12 + $0x1d8] sm:$0xff] }
  0x55   : > { %v2876_v26 = vld [vmem:[%s2696_s12 + $0x60] sm:$0xff]  ;;  %v507_v37 = vmax.f32 %v506_v16, %v2854_v3  ;;  %5064 = vst [vmem:[#allocation28_spill] sm:$0xff] %v2897_v52  ;;  %5065 = vst [vmem:[#allocation29_spill] sm:$0xff] %v2900_v53  ;;  %v2909_v60 = vld [vmem:[%s2696_s12 + $0x388] sm:$0xff] }
  0x56   : > { %v472_v32 = vmax.f32 %v471_v25, %v2764_v22  ;;  %v490_v55 = vmax.f32 %v489_v46, %v2809_v42  ;;  %v2873_v25 = vld [vmem:[%s2696_s12 + $0x198] sm:$0xff]  ;;  %5061 = vst [vmem:[#allocation25_spill] sm:$0xff] %v2876_v26  ;;  %v2879_v31 = vld [vmem:[%s2696_s12 + $0xa0] sm:$0xff]  ;;  %v310_v49 = vld [vmem:[%s2696_s12 + $0x68] sm:$0xff] }
  0x57   : > { %5060 = vst [vmem:[#allocation24_spill] sm:$0xff] %v2873_v25  ;;  %5062 = vst [vmem:[#allocation26_spill] sm:$0xff] %v2879_v31  ;;  %v2890_v39 = vld [vmem:[%s2696_s12 + $0xe0] sm:$0xff]  ;;  %v537_v44 = vmax.f32 %v2876_v26, %v2879_v31  ;;  %v508_v61 = vmax.f32 %v507_v37, %v2866_v13  ;;  %v2929_v26 = vld [vmem:[%s2696_s12 + $0x3c8] sm:$0xff] }
  0x58   : > { %v473_v38 = vmax.f32 %v472_v32, %v2781_v29  ;;  %v491_v63 = vmax.f32 %v490_v55, %v2830_v51  ;;  %v2882_v32 = vld [vmem:[%s2696_s12 + $0x400] sm:$0xff]  ;;  %5063 = vst [vmem:[#allocation27_spill] sm:$0xff] %v2890_v39  ;;  %v2963_v3 = vld [vmem:[%s2696_s12 + $0x298] sm:$0xff] }
  0x59   : > { %v2906_v55 = vld [vmem:[%s2696_s12 + $0x440] sm:$0xff]  ;;  %5073 = vst [vmem:[#allocation37_spill] sm:$0xff] %v2963_v3 }
  0x5a   : > { %v474_v45 = vmax.f32 %v473_v38, %v2794_v35  ;;  %v492_v21 = vmax.f32 %v491_v63, %v2847_v59  ;;  %v522_v38 = vmax.f32 %v521_v17, %v2857_v5  ;;  %v538_v63 = vmax.f32 %v537_v44, %v2890_v39  ;;  %v2923_v31 = vld [vmem:[%s2696_s12 + $0x160] sm:$0xff]  ;;  %v2940_v5 = vld [vmem:[%s2696_s12 + $0x258] sm:$0xff] }
  0x5b   : > { %5068 = vst [vmem:[#allocation32_spill] sm:$0xff] %v2923_v31  ;;  %v2926_v37 = vld [vmem:[%s2696_s12 + $0x480] sm:$0xff]  ;;  %v509_v44 = vmax.f32 %v508_v61, %v2897_v52  ;;  %5070 = vst [vmem:[#allocation34_spill] sm:$0xff] %v2940_v5  ;;  %v2959_v52 = vld [vmem:[%s2696_s12 + $0x350] sm:$0xff] }
  0x5c   : > { %v475_v54 = vmax.f32 %v474_v45, %v2806_v41  ;;  %v493_v46 = vmax.f32 %v492_v21, %v2863_v11  ;;  %v2920_v21 = vld [vmem:[%s2696_s12 + $0x218] sm:$0xff]  ;;  %v2943_v57 = vld [vmem:[%s2696_s12 + $0x1a0] sm:$0xff]  ;;  %5072 = vst [vmem:[#allocation36_spill] sm:$0xff] %v2959_v52 }
  0x5d   : > { %5067 = vst [vmem:[#allocation31_spill] sm:$0xff] %v2920_v21  ;;  %5071 = vst [vmem:[#allocation35_spill] sm:$0xff] %v2943_v57  ;;  %v2947_v48 = vld [vmem:[%s2696_s12 + $0x4c0] sm:$0xff] }
  0x5e   : > { %v476_v62 = vmax.f32 %v475_v54, %v2827_v50  ;;  %v2903_v54 = vld [vmem:[%s2696_s12 + $0x120] sm:$0xff]  ;;  %v494_v17 = vmax.f32 %v493_v46, %v2885_v33 }
  0x5f   : > { %5066 = vst [vmem:[#allocation30_spill] sm:$0xff] %v2903_v54  ;;  %v539_v46 = vmax.f32 %v538_v63, %v2903_v54  ;;  %v318_v54 = vld [vmem:[%s2696_s12 + $0xa8] sm:$0xff] }
  0x60   : > { %v477_v20 = vmax.f32 %v476_v62, %v2844_v58  ;;  %v523_v62 = vmax.f32 %v522_v38, %v2873_v25  ;;  %v2932_v38 = vld [vmem:[%s2696_s12 + $0x310] sm:$0xff]  ;;  %v495_v25 = vmax.f32 %v494_v17, %v2909_v60  ;;  %v555_v47 = vmax.f32 %v310_v49, %v318_v54 }
  0x61   : > { %5069 = vst [vmem:[#allocation33_spill] sm:$0xff] %v2932_v38  ;;  %v540_v63 = vmax.f32 %v539_v46, %v2923_v31  ;;  %v326_v46 = vld [vmem:[%s2696_s12 + $0xe8] sm:$0xff] }
  0x62   : > { %v478_v45 = vmax.f32 %v477_v20, %v2860_v7  ;;  %v2917_v20 = vld [vmem:[%s2696_s12 + $0x2d0] sm:$0xff]  ;;  %v496_v17 = vmax.f32 %v495_v25, %v2929_v26 }
  0x63   : > { %v510_v61 = vmax.f32 %v509_v44, %v2917_v20 }
  0x64   : > { %v479_v16 = vmax.f32 %v478_v45, %v2882_v32  ;;  %v524_v45 = vmax.f32 %v523_v62, %v2900_v53  ;;  %v2955_v53 = vld [vmem:[%s2696_s12 + $0x408] sm:$0xff] }
  0x65   : > { %v511_v13 = vmax.f32 %v510_v61, %v2932_v38  ;;  %v497_v25 = vmax.f32 %v496_v17, %v2955_v53 }
  0x66   : > { %v480_v39 = vmax.f32 %v479_v16, %v2906_v55  ;;  %v525_v62 = vmax.f32 %v524_v45, %v2920_v21  ;;  %v541_v45 = vmax.f32 %v540_v63, %v2943_v57  ;;  %v3030_v57 = vld [vmem:[%s2696_s12 + $0x390] sm:$0xff] }
  0x67   : > { %v2980_v54 = vmax.f32 %v511_v13, %v2959_v52  ;;  %v3045_v52 = vld [vmem:[%s2696_s12 + $0x4c8] sm:$0xff] }
  0x68   : > { %v481_v16 = vmax.f32 %v480_v39, %v2926_v37  ;;  %v2966_v44 = vmax.f32 %v525_v62, %v2940_v5  ;;  %v2974_v39 = vld [vmem:[%s2696_s12 + $0x1e0] sm:$0xff]  ;;  %v2984_v62 = vmax.f32 %v555_v47, %v326_v46 }
  0x69   : > { %5075 = vst [vmem:[#allocation39_spill] sm:$0xff] %v2974_v39 }
  0x6a   : > { %v2971_v31 = vmax.f32 %v481_v16, %v2947_v48  ;;  %v527_v61 = vmax.f32 %v2966_v44, %v2963_v3  ;;  %v334_v3 = vld [vmem:[%s2696_s12 + $0x128] sm:$0xff] }
  0x6c   : > { %5074 = vst [vmem:[#allocation38_spill] sm:$0xff] %v2971_v31  ;;  %v609_v49 = vsub.f32 %v2714_v0, %v2971_v31  ;;  %v617_v63 = vsub.f32 %v2717_v1, %v2971_v31  ;;  %v625_v16 = vsub.f32 %v2720_v2, %v2971_v31  ;;  %v633_v17 = vsub.f32 %v2725_v4, %v2971_v31 }
  0x6d   : > { %v2993_v0 = vmax.f32 %v541_v45, %v2974_v39  ;;  %v641_v13 = vsub.f32 %v2729_v6, %v2971_v31  ;;  %v649_v47 = vsub.f32 %v2733_v8, %v2971_v31  ;;  %v657_v44 = vsub.f32 %v2748_v14, %v2971_v31 }
  0x6e   : > { %v665_v1 = vsub.f32 %v2756_v18, %v2971_v31  ;;  %v673_v2 = vsub.f32 %v2764_v22, %v2971_v31  ;;  %v681_v4 = vsub.f32 %v2781_v29, %v2971_v31  ;;  %v689_v45 = vsub.f32 %v2794_v35, %v2971_v31  ;;  %v3018_v29 = vld [vmem:[%s2696_s12 + $0x448] sm:$0xff] }
  0x6f   : > { %v697_v6 = vsub.f32 %v2806_v41, %v2971_v31  ;;  %v705_v8 = vsub.f32 %v2827_v50, %v2971_v31  ;;  %v713_v14 = vsub.f32 %v2844_v58, %v2971_v31  ;;  %v721_v18 = vsub.f32 %v2860_v7, %v2971_v31 }
  0x70   : > { %v761_v22 = vmul.f32 1.442695, %v609_v49  ;;  %v729_v35 = vsub.f32 %v2882_v32, %v2971_v31  ;;  %v777_v46 = vmul.f32 1.442695, %v617_v63  ;;  %v793_v41 = vmul.f32 1.442695, %v625_v16 }
  0x71   : > { %v809_v39 = vmul.f32 1.442695, %v633_v17  ;;  %v737_v50 = vsub.f32 %v2906_v55, %v2971_v31  ;;  %v745_v58 = vsub.f32 %v2926_v37, %v2971_v31  ;;  %v825_v7 = vmul.f32 1.442695, %v641_v13  ;;  %v3027_v49 = vld [vmem:[%s2696_s12 + $0x488] sm:$0xff]  ;;  %v3033_v32 = vld [vmem:[%s2696_s12 + $0x2d8] sm:$0xff] }
  0x72   : > { %1995 = vpow2.f32 %v761_v22  ;;  %v753_v63 = vsub.f32 %v2947_v48, %v2971_v31  ;;  %v841_v16 = vmul.f32 1.442695, %v649_v47  ;;  %v498_v17 = vmax.f32 %v497_v25, %v3018_v29  ;;  %v3039_v55 = vld [vmem:[%s2696_s12 + $0x220] sm:$0xff]  ;;  %v311_v37 = vld [vmem:[%s2696_s12 + $0x70] sm:$0xff] }
  0x73   : > { %1997 = vpow2.f32 %v777_v46  ;;  %v319_v22 = vld [vmem:[%s2696_s12 + $0xb0] sm:$0xff]  ;;  %v857_v13 = vmul.f32 1.442695, %v657_v44  ;;  %v873_v5 = vmul.f32 1.442695, %v665_v1  ;;  %v513_v1 = vmax.f32 %v2980_v54, %v3030_v57 }
  0x74   : > { %1999 = vpow2.f32 %v793_v41  ;;  %v889_v21 = vmul.f32 1.442695, %v673_v2  ;;  %v905_v48 = vmul.f32 1.442695, %v681_v4  ;;  %v921_v47 = vmul.f32 1.442695, %v689_v45 }
  0x75   : > { %2001 = vpow2.f32 %v809_v39  ;;  %v937_v46 = vmul.f32 1.442695, %v697_v6  ;;  %v953_v25 = vmul.f32 1.442695, %v705_v8  ;;  %v969_v31 = vmul.f32 1.442695, %v713_v14 }
  0x76   : > { %2003 = vpow2.f32 %v825_v7  ;;  %v985_v38 = vmul.f32 1.442695, %v721_v18  ;;  %v499_v41 = vmax.f32 %v498_v17, %v3027_v49  ;;  %v3049_v44 = vld [vmem:[%s2696_s12 + $0x3d0] sm:$0xff]  ;;  %v3054_v2 = vmax.f32 %v527_v61, %v3033_v32  ;;  %v3057_v39 = vld [vmem:[%s2696_s12 + $0x318] sm:$0xff]  ;;  %v3060_v4 = vld [vmem:[%s2696_s12 + $0x260] sm:$0xff] }
  0x77   : > { %2005 = vpow2.f32 %v841_v16  ;;  %v543_v45 = vmax.f32 %v2993_v0, %v3039_v55  ;;  %v342_v6 = vld [vmem:[%s2696_s12 + $0x168] sm:$0xff]  ;;  %v557_v8 = vmax.f32 %v2984_v62, %v334_v3  ;;  %v573_v14 = vmax.f32 %v311_v37, %v319_v22  ;;  %v327_v61 = vld [vmem:[%s2696_s12 + $0xf0] sm:$0xff] }
  0x78   : > { %2007 = vpow2.f32 %v857_v13  ;;  %v1001_v18 = vmul.f32 1.442695, %v729_v35  ;;  %v1017_v7 = vmul.f32 1.442695, %v737_v50  ;;  %v3067_v54 = vmax.f32 %v499_v41, %v3045_v52 }
  0x79   : > { %2009 = vpow2.f32 %v873_v5  ;;  %v1033_v16 = vmul.f32 1.442695, %v745_v58  ;;  %v1049_v17 = vmul.f32 1.442695, %v753_v63  ;;  %v3071_v13 = vmax.f32 %v513_v1, %v3049_v44 }
  0x7a   : > { %5076 = vst [vmem:[#allocation40_spill] sm:$0xff] %v3067_v54  ;;  %2011 = vpow2.f32 %v889_v21  ;;  %v529_v0 = vmax.f32 %v3054_v2, %v3057_v39  ;;  %v3076_v3 = vmax.f32 %v543_v45, %v3060_v4  ;;  %v3078_v5 = vmax.f32 %v557_v8, %v342_v6  ;;  %v3136_v6 = vld [vmem:[%s2696_s12 + $0x410] sm:$0xff] }
  0x7b   : > { %2013 = vpow2.f32 %v905_v48  ;;  %v610_v62 = vsub.f32 %v2736_v9, %v3067_v54  ;;  %v618_v21 = vsub.f32 %v2739_v10, %v3067_v54  ;;  %v3084_v35 = vmax.f32 %v573_v14, %v327_v61  ;;  %v3142_v61 = vld [vmem:[%s2696_s12 + $0x358] sm:$0xff] }
  0x7c   : > { %2015 = vpow2.f32 %v921_v47  ;;  %v626_v50 = vsub.f32 %v2743_v12, %v3067_v54  ;;  %v634_v58 = vsub.f32 %v2751_v15, %v3067_v54  ;;  %v642_v63 = vsub.f32 %v2759_v19, %v3067_v54 }
  0x7d   : > { %2017 = vpow2.f32 %v937_v46  ;;  %v650_v37 = vsub.f32 %v2767_v23, %v3067_v54  ;;  %v658_v9 = vsub.f32 %v2784_v30, %v3067_v54  ;;  %v666_v10 = vsub.f32 %v2797_v36, %v3067_v54 }
  0x7e   : > { %2019 = vpow2.f32 %v953_v25  ;;  %v674_v12 = vsub.f32 %v2809_v42, %v3067_v54  ;;  %v682_v15 = vsub.f32 %v2830_v51, %v3067_v54  ;;  %v690_v19 = vsub.f32 %v2847_v59, %v3067_v54 }
  0x7f   : > { %v3098_v22 = vpop.eup %1995  ;;  %2021 = vpow2.f32 %v969_v31  ;;  %v698_v23 = vsub.f32 %v2863_v11, %v3067_v54  ;;  %v706_v30 = vsub.f32 %v2885_v33, %v3067_v54  ;;  %v714_v36 = vsub.f32 %v2909_v60, %v3067_v54 }
  0x80   : > { %5077 = vst [vmem:[#allocation41_spill] sm:$0xff] %v3098_v22  ;;  %v3106_v48 = vpop.eup %1997  ;;  %2023 = vpow2.f32 %v985_v38  ;;  %v722_v51 = vsub.f32 %v2929_v26, %v3067_v54  ;;  %v763_v59 = vmul.f32 1.442695, %v610_v62  ;;  %v730_v11 = vsub.f32 %v2955_v53, %v3067_v54 }
  0x81   : > { %5078 = vst [vmem:[#allocation42_spill] sm:$0xff] %v3106_v48  ;;  %v3114_v31 = vpop.eup %1999  ;;  %2025 = vpow2.f32 %v1001_v18  ;;  %v1065_v42 = vadd.f32 %v3106_v48, %v3098_v22  ;;  %v779_v60 = vmul.f32 1.442695, %v618_v21  ;;  %v795_v25 = vmul.f32 1.442695, %v626_v50  ;;  %v3210_v48 = vld [vmem:[%s2696_s12 + $0x228] sm:$0xff] }
  0x82   : > { %5079 = vst [vmem:[#allocation43_spill] sm:$0xff] %v3114_v31  ;;  %v3120_v38 = vpop.eup %2001  ;;  %2027 = vpow2.f32 %v1017_v7  ;;  %v811_v1 = vmul.f32 1.442695, %v634_v58  ;;  %v827_v45 = vmul.f32 1.442695, %v642_v63  ;;  %v3150_v58 = vld [vmem:[%s2696_s12 + $0x450] sm:$0xff]  ;;  %v530_v26 = vmax.f32 %v529_v0, %v3142_v61 }
  0x83   : > { %5080 = vst [vmem:[#allocation44_spill] sm:$0xff] %v3120_v38  ;;  %v3126_v47 = vpop.eup %2003  ;;  %2029 = vpow2.f32 %v1033_v16  ;;  %v1066_v46 = vadd.f32 %v3114_v31, %v1065_v42  ;;  %v843_v18 = vmul.f32 1.442695, %v650_v37  ;;  %v859_v7 = vmul.f32 1.442695, %v658_v9  ;;  %v3145_v16 = vld [vmem:[%s2696_s12 + $0x2a0] sm:$0xff] }
  0x84   : > { %5081 = vst [vmem:[#allocation45_spill] sm:$0xff] %v3126_v47  ;;  %v3131_v41 = vpop.eup %2005  ;;  %2031 = vpow2.f32 %v1049_v17  ;;  %v875_v62 = vmul.f32 1.442695, %v666_v10  ;;  %v891_v21 = vmul.f32 1.442695, %v674_v12  ;;  %v3153_v63 = vld [vmem:[%s2696_s12 + $0x398] sm:$0xff]  ;;  %v545_v2 = vmax.f32 %v3076_v3, %v3145_v16 }
  0x85   : > { %5082 = vst [vmem:[#allocation46_spill] sm:$0xff] %v3131_v41  ;;  %v3138_v8 = vpop.eup %2007  ;;  %v1067_v14 = vadd.f32 %v3120_v38, %v1066_v46  ;;  %2033 = vpow2.f32 %v763_v59  ;;  %v907_v50 = vmul.f32 1.442695, %v682_v15  ;;  %v923_v9 = vmul.f32 1.442695, %v690_v19  ;;  %v3161_v46 = vld [vmem:[%s2696_s12 + $0x1a8] sm:$0xff] }
  0x86   : > { %5083 = vst [vmem:[#allocation47_spill] sm:$0xff] %v3138_v8  ;;  %v3147_v17 = vpop.eup %2009  ;;  %2035 = vpow2.f32 %v779_v60  ;;  %v3158_v59 = vmul.f32 1.442695, %v698_v23  ;;  %5086 = vst [vmem:[#allocation50_spill] sm:$0xff] %v3161_v46  ;;  %v335_v10 = vld [vmem:[%s2696_s12 + $0x130] sm:$0xff]  ;;  %v515_v23 = vmax.f32 %v3071_v13, %v3136_v6  ;;  %v3194_v13 = vld [vmem:[%s2696_s12 + $0x3d8] sm:$0xff]  ;;  %v559_v0 = vmax.f32 %v3078_v5, %v3161_v46 }
  0x87   : > { %5084 = vst [vmem:[#allocation48_spill] sm:$0xff] %v3147_v17  ;;  %v3155_v42 = vpop.eup %2011  ;;  %v1068_v37 = vadd.f32 %v3126_v47, %v1067_v14  ;;  %2037 = vpow2.f32 %v795_v25  ;;  %v955_v15 = vmul.f32 1.442695, %v706_v30  ;;  %v3166_v60 = vmul.f32 1.442695, %v714_v36  ;;  %v3182_v30 = vld [vmem:[%s2696_s12 + $0x2e0] sm:$0xff] }
  0x88   : > { %5085 = vst [vmem:[#allocation49_spill] sm:$0xff] %v3155_v42  ;;  %v3164_v12 = vpop.eup %2013  ;;  %2039 = vpow2.f32 %v811_v1  ;;  %v3168_v53 = vmul.f32 1.442695, %v722_v51  ;;  %v3173_v25 = vmul.f32 1.442695, %v730_v11  ;;  %5089 = vst [vmem:[#allocation53_spill] sm:$0xff] %v3182_v30  ;;  %v531_v38 = vmax.f32 %v530_v26, %v3153_v63 }
  0x89   : > { %5087 = vst [vmem:[#allocation51_spill] sm:$0xff] %v3164_v12  ;;  %v3170_v14 = vpop.eup %2015  ;;  %v1069_v19 = vadd.f32 %v3131_v41, %v1068_v37  ;;  %v3185_v36 = vld [vmem:[%s2696_s12 + $0x1e8] sm:$0xff]  ;;  %v343_v51 = vld [vmem:[%s2696_s12 + $0x170] sm:$0xff]  ;;  %2041 = vpow2.f32 %v827_v45  ;;  %v575_v37 = vmax.f32 %v3084_v35, %v335_v10  ;;  %v516_v45 = vmax.f32 %v515_v23, %v3150_v58  ;;  %v3207_v31 = vld [vmem:[%s2696_s12 + $0x320] sm:$0xff] }
  0x8a   : > { %5088 = vst [vmem:[#allocation52_spill] sm:$0xff] %v3170_v14  ;;  %5090 = vst [vmem:[#allocation54_spill] sm:$0xff] %v3185_v36  ;;  %v3188_v1 = vpop.eup %2017  ;;  %v3191_v11 = vld [vmem:[%s2696_s12 + $0x490] sm:$0xff]  ;;  %2043 = vpow2.f32 %v843_v18  ;;  %v546_v35 = vmax.f32 %v545_v2, %v3182_v30  ;;  %v560_v18 = vmax.f32 %v559_v0, %v3185_v36  ;;  %v3228_v46 = vmax.f32 %v531_v38, %v3194_v13  ;;  %v3233_v2 = vld [vmem:[%s2696_s12 + $0x360] sm:$0xff] }
  0x8b   : > { %5091 = vst [vmem:[#allocation55_spill] sm:$0xff] %v3188_v1  ;;  %v3201_v33 = vpop.eup %2019  ;;  %v1070_v41 = vadd.f32 %v3138_v8, %v1069_v19  ;;  %v351_v3 = vld [vmem:[%s2696_s12 + $0x1b0] sm:$0xff]  ;;  %2045 = vpow2.f32 %v859_v7  ;;  %v576_v10 = vmax.f32 %v575_v37, %v343_v51  ;;  %v517_v23 = vmax.f32 %v516_v45, %v3191_v11  ;;  %v3225_v8 = vld [vmem:[%s2696_s12 + $0x418] sm:$0xff]  ;;  %v3237_v0 = vld [vmem:[%s2696_s12 + $0x268] sm:$0xff] }
  0x8c   : > { %5092 = vst [vmem:[#allocation56_spill] sm:$0xff] %v3201_v33  ;;  %v3213_v22 = vpop.eup %2021  ;;  %v3216_v5 = vld [vmem:[%s2696_s12 + $0x4d0] sm:$0xff]  ;;  %2047 = vpow2.f32 %v875_v62  ;;  %v547_v51 = vmax.f32 %v546_v35, %v3207_v31  ;;  %v5097_v38 = vsub.f32 %v3018_v29, %v3067_v54  ;;  %v5100_v35 = vsub.f32 %v3027_v49, %v3067_v54 }
  0x8d   : > { %5093 = vst [vmem:[#allocation57_spill] sm:$0xff] %v3213_v22  ;;  %v3220_v19 = vpop.eup %2023  ;;  %v1071_v26 = vadd.f32 %v3147_v17, %v1070_v41  ;;  %2049 = vpow2.f32 %v891_v21  ;;  %v561_v41 = vmax.f32 %v560_v18, %v3210_v48  ;;  %v577_v62 = vmax.f32 %v576_v10, %v351_v3  ;;  %v359_v36 = vld [vmem:[%s2696_s12 + $0x1f0] sm:$0xff] }
  0x8e   : > { %5094 = vst [vmem:[#allocation58_spill] sm:$0xff] %v3220_v19  ;;  %v3230_v7 = vpop.eup %2025  ;;  %2051 = vpow2.f32 %v907_v50  ;;  %v1019_v17 = vmul.f32 1.442695, %v5097_v38  ;;  %v3247_v21 = vmax.f32 %v517_v23, %v3216_v5  ;;  %v1035_v3 = vmul.f32 1.442695, %v5100_v35 }
  0x8f   : > { %5095 = vst [vmem:[#allocation59_spill] sm:$0xff] %v3230_v7  ;;  %v3240_v37 = vpop.eup %2027  ;;  %v1072_v45 = vadd.f32 %v3155_v42, %v1071_v26  ;;  %2053 = vpow2.f32 %v923_v9  ;;  %v5101_v18 = vsub.f32 %v3045_v52, %v3067_v54  ;;  %v3265_v23 = vmax.f32 %v547_v51, %v3233_v2 }
  0x90   : > { %5096 = vst [vmem:[#allocation60_spill] sm:$0xff] %v3240_v37  ;;  %5098 = vst [vmem:[#allocation61_spill] sm:$0xff] %v3247_v21  ;;  %v3250_v30 = vpop.eup %2029  ;;  %2055 = vpow2.f32 %v3158_v59  ;;  %v3268_v9 = vmax.f32 %v561_v41, %v3237_v0  ;;  %v611_v52 = vsub.f32 %v2770_v24, %v3247_v21  ;;  %v619_v38 = vsub.f32 %v2775_v27, %v3247_v21 }
  0x91   : > { %5099 = vst [vmem:[#allocation62_spill] sm:$0xff] %v3250_v30  ;;  %v1051_v10 = vmul.f32 1.442695, %v5101_v18  ;;  %v3260_v29 = vpop.eup %2031  ;;  %v1073_v26 = vadd.f32 %v3164_v12, %v1072_v45  ;;  %2057 = vpow2.f32 %v955_v15  ;;  %v3276_v35 = vmax.f32 %v577_v62, %v359_v36 }
  0x92   : > { %5102 = vst [vmem:[#allocation63_spill] sm:$0xff] %v3260_v29  ;;  %v3270_v49 = vpop.eup %2033  ;;  %2059 = vpow2.f32 %v3166_v60  ;;  %v627_v51 = vsub.f32 %v2778_v28, %v3247_v21  ;;  %v635_v15 = vsub.f32 %v2791_v34, %v3247_v21  ;;  %v643_v27 = vsub.f32 %v2803_v40, %v3247_v21  ;;  %v5108_v40 = vld [vmem:[#allocation23_spill] sm:$0xff] }
  0x93   : > { %5103 = vst [vmem:[#allocation64_spill] sm:$0xff] %v3270_v49  ;;  %v3278_v45 = vpop.eup %2035  ;;  %v1074_v59 = vadd.f32 %v3170_v14, %v1073_v26  ;;  %2061 = vpow2.f32 %v3168_v53  ;;  %v651_v36 = vsub.f32 %v2812_v43, %v3247_v21  ;;  %v659_v34 = vsub.f32 %v2838_v56, %v3247_v21  ;;  %v5107_v53 = vld [vmem:[#allocation21_spill] sm:$0xff]  ;;  %v5109_v43 = vld [vmem:[#allocation28_spill] sm:$0xff] }
  0x94   : > { %5104 = vst [vmem:[#allocation65_spill] sm:$0xff] %v3278_v45  ;;  %v3286_v41 = vpop.eup %2037  ;;  %v1083_v24 = vadd.f32 %v3278_v45, %v3270_v49  ;;  %2063 = vpow2.f32 %v3173_v25  ;;  %v667_v62 = vsub.f32 %v5107_v53, %v3247_v21  ;;  %v675_v26 = vsub.f32 %v5108_v40, %v3247_v21  ;;  %v5111_v25 = vld [vmem:[#allocation33_spill] sm:$0xff]  ;;  %v5113_v40 = vld [vmem:[#allocation36_spill] sm:$0xff] }
  0x95   : > { %5105 = vst [vmem:[#allocation66_spill] sm:$0xff] %v3286_v41  ;;  %v3295_v60 = vpop.eup %2039  ;;  %v1075_v28 = vadd.f32 %v3188_v1, %v1074_v59  ;;  %2065 = vpow2.f32 %v1019_v17  ;;  %v683_v50 = vsub.f32 %v5109_v43, %v3247_v21  ;;  %v691_v56 = vsub.f32 %v2917_v20, %v3247_v21  ;;  %v3411_v1 = vld [vmem:[%s2696_s12 + $0x420] sm:$0xff]  ;;  %v328_v14 = vld [vmem:[%s2696_s12 + $0xf8] sm:$0xff] }
  0x96   : > { %5106 = vst [vmem:[#allocation67_spill] sm:$0xff] %v3295_v60  ;;  %v1084_v18 = vadd.f32 %v3286_v41, %v1083_v24  ;;  %v3308_v54 = vpop.eup %2041  ;;  %2067 = vpow2.f32 %v1035_v3  ;;  %v699_v53 = vsub.f32 %v5111_v25, %v3247_v21  ;;  %v707_v41 = vsub.f32 %v5113_v40, %v3247_v21 }
  0x97   : > { %5110 = vst [vmem:[#allocation21_spill] sm:$0xff] %v3308_v54  ;;  %v1076_v59 = vadd.f32 %v3201_v33, %v1075_v28  ;;  %v3315_v17 = vpop.eup %2043  ;;  %2069 = vpow2.f32 %v1051_v10  ;;  %v715_v43 = vsub.f32 %v3030_v57, %v3247_v21  ;;  %v723_v20 = vsub.f32 %v3049_v44, %v3247_v21 }
  0x98   : > { %5112 = vst [vmem:[#allocation23_spill] sm:$0xff] %v3315_v17  ;;  %v1085_v24 = vadd.f32 %v3295_v60, %v1084_v18  ;;  %v3322_v45 = vpop.eup %2045  ;;  %v765_v28 = vmul.f32 1.442695, %v611_v52  ;;  %v781_v25 = vmul.f32 1.442695, %v619_v38  ;;  %v731_v18 = vsub.f32 %v3136_v6, %v3247_v21  ;;  %v3351_v6 = vld [vmem:[%s2696_s12 + $0x458] sm:$0xff] }
  0x99   : > { %5114 = vst [vmem:[#allocation28_spill] sm:$0xff] %v3322_v45  ;;  %v1077_v3 = vadd.f32 %v3213_v22, %v1076_v59  ;;  %v3327_v49 = vpop.eup %2047  ;;  %v797_v40 = vmul.f32 1.442695, %v627_v51  ;;  %v813_v60 = vmul.f32 1.442695, %v635_v15 }
  0x9a   : > { %5115 = vst [vmem:[#allocation33_spill] sm:$0xff] %v3327_v49  ;;  %v1086_v10 = vadd.f32 %v3308_v54, %v1085_v24  ;;  %v3332_v33 = vpop.eup %2049  ;;  %2071 = vpow2.f32 %v765_v28  ;;  %v829_v51 = vmul.f32 1.442695, %v643_v27  ;;  %v861_v44 = vmul.f32 1.442695, %v659_v34  ;;  %v3354_v27 = vld [vmem:[%s2696_s12 + $0x3a0] sm:$0xff] }
  0x9b   : > { %5116 = vst [vmem:[#allocation36_spill] sm:$0xff] %v3332_v33  ;;  %v1078_v57 = vadd.f32 %v3220_v19, %v1077_v3  ;;  %v3339_v52 = vpop.eup %2051  ;;  %2073 = vpow2.f32 %v781_v25  ;;  %v845_v3 = vmul.f32 1.442695, %v651_v36  ;;  %v925_v36 = vmul.f32 1.442695, %v691_v56  ;;  %v3375_v19 = vld [vmem:[%s2696_s12 + $0x3e0] sm:$0xff] }
  0x9c   : > { %5117 = vst [vmem:[#allocation68_spill] sm:$0xff] %v3339_v52  ;;  %v1087_v38 = vadd.f32 %v3315_v17, %v1086_v10  ;;  %v3344_v15 = vpop.eup %2053  ;;  %2075 = vpow2.f32 %v797_v40  ;;  %v877_v10 = vmul.f32 1.442695, %v667_v62  ;;  %v893_v17 = vmul.f32 1.442695, %v675_v26 }
  0x9d   : > { %5118 = vst [vmem:[#allocation69_spill] sm:$0xff] %v3344_v15  ;;  %v1079_v24 = vadd.f32 %v3230_v7, %v1078_v57  ;;  %v3347_v28 = vpop.eup %2055  ;;  %2077 = vpow2.f32 %v813_v60  ;;  %v909_v40 = vmul.f32 1.442695, %v683_v50  ;;  %v941_v34 = vmul.f32 1.442695, %v699_v53  ;;  %v3360_v7 = vld [vmem:[%s2696_s12 + $0x498] sm:$0xff] }
  0x9e   : > { %5119 = vst [vmem:[#allocation70_spill] sm:$0xff] %v3347_v28  ;;  %v1088_v59 = vadd.f32 %v3322_v45, %v1087_v38  ;;  %v3356_v25 = vpop.eup %2057  ;;  %2079 = vpow2.f32 %v829_v51  ;;  %v957_v26 = vmul.f32 1.442695, %v707_v41  ;;  %v973_v38 = vmul.f32 1.442695, %v715_v43  ;;  %v3366_v45 = vld [vmem:[%s2696_s12 + $0x2a8] sm:$0xff] }
  0x9f   : > { %5120 = vst [vmem:[#allocation71_spill] sm:$0xff] %v3356_v25  ;;  %v1080_v57 = vadd.f32 %v3240_v37, %v1079_v24  ;;  %v3362_v60 = vpop.eup %2059  ;;  %v3369_v24 = vld [vmem:[%s2696_s12 + $0x230] sm:$0xff]  ;;  %2081 = vpow2.f32 %v845_v3  ;;  %v989_v53 = vmul.f32 1.442695, %v723_v20  ;;  %v1005_v37 = vmul.f32 1.442695, %v731_v18 }
  0xa0   : > { %5121 = vst [vmem:[#allocation72_spill] sm:$0xff] %v3362_v60  ;;  %v1089_v62 = vadd.f32 %v3327_v49, %v1088_v59  ;;  %v3371_v50 = vpop.eup %2061  ;;  %v3378_v59 = vld [vmem:[%s2696_s12 + $0x2e8] sm:$0xff]  ;;  %2083 = vpow2.f32 %v861_v44  ;;  %v5124_v51 = vmax.f32 %v3228_v46, %v3225_v8  ;;  %v549_v3 = vmax.f32 %v3265_v23, %v3354_v27  ;;  %v3390_v20 = vld [vmem:[%s2696_s12 + $0x270] sm:$0xff]  ;;  %v312_v18 = vld [vmem:[%s2696_s12 + $0x78] sm:$0xff] }
  0xa1   : > { %5122 = vst [vmem:[#allocation73_spill] sm:$0xff] %v3371_v50  ;;  %v1081_v56 = vadd.f32 %v3250_v30, %v1080_v57  ;;  %v3380_v41 = vpop.eup %2063  ;;  %v320_v57 = vld [vmem:[%s2696_s12 + $0xb8] sm:$0xff]  ;;  %2085 = vpow2.f32 %v877_v10  ;;  %v563_v46 = vmax.f32 %v3268_v9, %v3366_v45  ;;  %v579_v23 = vmax.f32 %v3276_v35, %v3369_v24  ;;  %v3420_v9 = vld [vmem:[%s2696_s12 + $0x328] sm:$0xff] }
  0xa2   : > { %5123 = vst [vmem:[#allocation74_spill] sm:$0xff] %v3380_v41  ;;  %v1090_v43 = vadd.f32 %v3332_v33, %v1089_v62  ;;  %v534_v49 = vmax.f32 %v5124_v51, %v3351_v6  ;;  %v3394_v30 = vpop.eup %2065  ;;  %v3400_v44 = vld [vmem:[%s2696_s12 + $0x4d8] sm:$0xff]  ;;  %2087 = vpow2.f32 %v893_v17  ;;  %v3414_v10 = vmax.f32 %v549_v3, %v3375_v19 }
  0xa3   : > { %5125 = vst [vmem:[#allocation75_spill] sm:$0xff] %v3394_v30  ;;  %v3397_v62 = vadd.f32 %v3260_v29, %v1081_v56  ;;  %v3406_v51 = vpop.eup %2067  ;;  %v3423_v35 = vmax.f32 %v563_v46, %v3378_v59  ;;  %v3426_v29 = vld [vmem:[%s2696_s12 + $0x2b0] sm:$0xff]  ;;  %v3429_v17 = vmax.f32 %v579_v23, %v3390_v20  ;;  %v5129_v3 = vsub.f32 %v3150_v58, %v3247_v21 }
  0xa4   : > { %5127 = vst [vmem:[#allocation77_spill] sm:$0xff] %v3406_v51  ;;  %v1091_v33 = vadd.f32 %v3339_v52, %v1090_v43  ;;  %v535_v22 = vmax.f32 %v534_v49, %v3360_v7  ;;  %v3416_v56 = vpop.eup %2069  ;;  %v591_v49 = vmax.f32 %v312_v18, %v320_v57  ;;  %v5131_v46 = vsub.f32 %v3191_v11, %v3247_v21 }
  0xa5   : > { %5126 = vst [vmem:[#allocation76_spill] sm:$0xff] %v3397_v62  ;;  %5128 = vst [vmem:[#allocation78_spill] sm:$0xff] %v3416_v56  ;;  %2089 = vrcp.f32 %v3397_v62  ;;  %v1021_v52 = vmul.f32 1.442695, %v5129_v3  ;;  %v5132_v23 = vsub.f32 %v3216_v5, %v3247_v21  ;;  %v5135_v5 = vld [vmem:[#allocation17_spill] sm:$0xff]  ;;  %v5136_v3 = vld [vmem:[#allocation18_spill] sm:$0xff] }
  0xa6   : > { %v1092_v43 = vadd.f32 %v3344_v15, %v1091_v33  ;;  %2091 = vpow2.f32 %v909_v40  ;;  %v3436_v62 = vmax.f32 %v535_v22, %v3400_v44  ;;  %v1037_v12 = vmul.f32 1.442695, %v5131_v46  ;;  %v5147_v15 = vld [vmem:[#allocation37_spill] sm:$0xff] }
  0xa7   : > { %2093 = vpow2.f32 %v925_v36  ;;  %v1053_v18 = vmul.f32 1.442695, %v5132_v23  ;;  %v3447_v40 = vpop.eup %2071  ;;  %v3460_v23 = vmax.f32 %v591_v49, %v328_v14  ;;  %v5138_v36 = vld [vmem:[#allocation19_spill] sm:$0xff]  ;;  %v5141_v14 = vld [vmem:[#allocation22_spill] sm:$0xff] }
  0xa8   : > { %5130 = vst [vmem:[#allocation79_spill] sm:$0xff] %v3436_v62  ;;  %5133 = vst [vmem:[#allocation80_spill] sm:$0xff] %v3447_v40  ;;  %v1093_v58 = vadd.f32 %v3347_v28, %v1092_v43  ;;  %2095 = vpow2.f32 %v941_v34  ;;  %v3454_v11 = vpop.eup %2073  ;;  %v612_v57 = vsub.f32 %v5135_v5, %v3436_v62  ;;  %v620_v46 = vsub.f32 %v5136_v3, %v3436_v62  ;;  %v5140_v5 = vld [vmem:[#allocation20_spill] sm:$0xff] }
  0xa9   : > { %5134 = vst [vmem:[#allocation81_spill] sm:$0xff] %v3454_v11  ;;  %2097 = vpow2.f32 %v957_v26  ;;  %v3462_v33 = vpop.eup %2075  ;;  %v1101_v43 = vadd.f32 %v3454_v11, %v3447_v40  ;;  %v628_v22 = vsub.f32 %v5138_v36, %v3436_v62  ;;  %v636_v21 = vsub.f32 %v5140_v5, %v3436_v62  ;;  %v5142_v3 = vld [vmem:[#allocation24_spill] sm:$0xff]  ;;  %v5143_v11 = vld [vmem:[#allocation29_spill] sm:$0xff] }
  0xaa   : > { %5137 = vst [vmem:[#allocation17_spill] sm:$0xff] %v3462_v33  ;;  %v1094_v34 = vadd.f32 %v3356_v25, %v1093_v58  ;;  %2099 = vpow2.f32 %v973_v38  ;;  %v3469_v26 = vpop.eup %2077  ;;  %v644_v49 = vsub.f32 %v5141_v14, %v3436_v62  ;;  %v652_v28 = vsub.f32 %v5142_v3, %v3436_v62  ;;  %v5146_v25 = vld [vmem:[#allocation34_spill] sm:$0xff] }
  0xab   : > { %5139 = vst [vmem:[#allocation18_spill] sm:$0xff] %v3469_v26  ;;  %2101 = vpow2.f32 %v989_v53  ;;  %v1102_v58 = vadd.f32 %v3462_v33, %v1101_v43  ;;  %v660_v36 = vsub.f32 %v5143_v11, %v3436_v62  ;;  %v3481_v40 = vpop.eup %2079  ;;  %v5145_v53 = vld [vmem:[#allocation31_spill] sm:$0xff]  ;;  %v676_v14 = vsub.f32 %v5146_v25, %v3436_v62 }
  0xac   : > { %v1095_v38 = vadd.f32 %v3362_v60, %v1094_v34  ;;  %2103 = vpow2.f32 %v1005_v37  ;;  %5144 = vst [vmem:[#allocation19_spill] sm:$0xff] %v3481_v40  ;;  %v668_v5 = vsub.f32 %v5145_v53, %v3436_v62  ;;  %v684_v3 = vsub.f32 %v5147_v15, %v3436_v62  ;;  %v3489_v42 = vpop.eup %2081 }
  0xad   : > { %2105 = vpow2.f32 %v1021_v52  ;;  %5148 = vst [vmem:[#allocation20_spill] sm:$0xff] %v3489_v42  ;;  %v1103_v34 = vadd.f32 %v3469_v26, %v1102_v58  ;;  %v692_v11 = vsub.f32 %v3033_v32, %v3436_v62  ;;  %v3495_v52 = vpop.eup %2083  ;;  %v700_v43 = vsub.f32 %v3057_v39, %v3436_v62 }
  0xae   : > { %v1096_v37 = vadd.f32 %v3371_v50, %v1095_v38  ;;  %2107 = vpow2.f32 %v1037_v12  ;;  %5149 = vst [vmem:[#allocation22_spill] sm:$0xff] %v3495_v52  ;;  %v708_v25 = vsub.f32 %v3142_v61, %v3436_v62  ;;  %v716_v15 = vsub.f32 %v3153_v63, %v3436_v62  ;;  %v3503_v38 = vpop.eup %2085 }
  0xaf   : > { %2109 = vpow2.f32 %v1053_v18  ;;  %5150 = vst [vmem:[#allocation24_spill] sm:$0xff] %v3503_v38  ;;  %v1104_v58 = vadd.f32 %v3481_v40, %v1103_v34  ;;  %v724_v32 = vsub.f32 %v3194_v13, %v3436_v62  ;;  %v767_v18 = vmul.f32 1.442695, %v612_v57  ;;  %v3509_v53 = vpop.eup %2087 }
  0xb0   : > { %v1097_v12 = vadd.f32 %v3380_v41, %v1096_v37  ;;  %5151 = vst [vmem:[#allocation29_spill] sm:$0xff] %v3509_v53  ;;  %v732_v39 = vsub.f32 %v3225_v8, %v3436_v62  ;;  %v783_v61 = vmul.f32 1.442695, %v620_v46  ;;  %v799_v26 = vmul.f32 1.442695, %v628_v22  ;;  %v3518_v41 = vld [vmem:[%s2696_s12 + $0x460] sm:$0xff] }
  0xb1   : > { %v815_v33 = vmul.f32 1.442695, %v636_v21  ;;  %v1105_v37 = vadd.f32 %v3489_v42, %v1104_v58  ;;  %2111 = vpow2.f32 %v767_v18  ;;  %v831_v34 = vmul.f32 1.442695, %v644_v49 }
  0xb2   : > { %v3513_v63 = vpop.eup %2089  ;;  %v1098_v50 = vadd.f32 %v3394_v30, %v1097_v12  ;;  %v740_v8 = vsub.f32 %v3351_v6, %v3436_v62  ;;  %2113 = vpow2.f32 %v783_v61  ;;  %v847_v21 = vmul.f32 1.442695, %v652_v28 }
  0xb3   : > { %v3520_v13 = vpop.eup %2091  ;;  %v1569_v57 = vmul.f32 %v3513_v63, %v3126_v47  ;;  %v1106_v49 = vadd.f32 %v3495_v52, %v1105_v37  ;;  %v748_v12 = vsub.f32 %v3360_v7, %v3436_v62  ;;  %2115 = vpow2.f32 %v799_v26 }
  0xb4   : > { %5152 = vst [vmem:[#allocation31_spill] sm:$0xff] %v3520_v13  ;;  %v3526_v22 = vpop.eup %2093  ;;  %v1099_v46 = vadd.f32 %v3406_v51, %v1098_v50  ;;  %2117 = vpow2.f32 %v815_v33  ;;  %v863_v6 = vmul.f32 1.442695, %v660_v36  ;;  %v5155_v28 = vmax.f32 %v3414_v10, %v3411_v1 }
  0xb5   : > { %5153 = vst [vmem:[#allocation34_spill] sm:$0xff] %v3526_v22  ;;  %v3532_v58 = vpop.eup %2095  ;;  %v1577_v18 = vmax.f32 %v1569_v57, 1e-07  ;;  %v1107_v7 = vadd.f32 %v3503_v38, %v1106_v49  ;;  %2119 = vpow2.f32 %v831_v34  ;;  %v879_v26 = vmul.f32 1.442695, %v668_v5  ;;  %v3545_v57 = vld [vmem:[%s2696_s12 + $0x4a0] sm:$0xff] }
  0xb6   : > { %5154 = vst [vmem:[#allocation37_spill] sm:$0xff] %v3532_v58  ;;  %v552_v61 = vmax.f32 %v5155_v28, %v3518_v41  ;;  %v3538_v50 = vpop.eup %2097  ;;  %v3541_v37 = vadd.f32 %v3416_v56, %v1099_v46  ;;  %v756_v10 = vsub.f32 %v3400_v44, %v3436_v62  ;;  %2121 = vpow2.f32 %v847_v21  ;;  %v3556_v28 = vld [vmem:[%s2696_s12 + $0x4e0] sm:$0xff]  ;;  %v3559_v34 = vld [vmem:[%s2696_s12 + $0x368] sm:$0xff]  ;;  %v3569_v44 = vld [vmem:[%s2696_s12 + $0x138] sm:$0xff] }
  0xb7   : > { %5156 = vst [vmem:[#allocation82_spill] sm:$0xff] %v3538_v50  ;;  %v3547_v33 = vpop.eup %2099  ;;  %1585 = vst [vmem:[%s3550_s27] sm:$0xff] %v1577_v18  ;;  %v895_v36 = vmul.f32 1.442695, %v676_v14  ;;  %v911_v46 = vmul.f32 1.442695, %v684_v3  ;;  %v1108_v49 = vadd.f32 %v3509_v53, %v1107_v7  ;;  %v3566_v18 = vld [vmem:[%s2696_s12 + $0x2f0] sm:$0xff]  ;;  %v5162_v7 = vmax.f32 %v3423_v35, %v3420_v9 }
  0xb8   : > { %5157 = vst [vmem:[#allocation83_spill] sm:$0xff] %v3541_v37  ;;  %5158 = vst [vmem:[#allocation84_spill] sm:$0xff] %v3547_v33  ;;  %v3561_v5 = vpop.eup %2101  ;;  %2123 = vrcp.f32 %v3541_v37  ;;  %v927_v38 = vmul.f32 1.442695, %v692_v11  ;;  %v943_v52 = vmul.f32 1.442695, %v700_v43  ;;  %v553_v11 = vmax.f32 %v552_v61, %v3545_v57 }
  0xb9   : > { %5159 = vst [vmem:[#allocation85_spill] sm:$0xff] %v3561_v5  ;;  %v3571_v14 = vpop.eup %2103  ;;  %2125 = vpow2.f32 %v863_v6  ;;  %v959_v3 = vmul.f32 1.442695, %v708_v25  ;;  %v975_v21 = vmul.f32 1.442695, %v716_v15  ;;  %v1109_v37 = vadd.f32 %v3520_v13, %v1108_v49  ;;  %v3578_v43 = vld [vmem:[%s2696_s12 + $0x3a8] sm:$0xff] }
  0xba   : > { %5160 = vst [vmem:[#allocation86_spill] sm:$0xff] %v3571_v14  ;;  %v991_v62 = vmul.f32 1.442695, %v724_v32  ;;  %v3573_v42 = vpop.eup %2105  ;;  %2127 = vpow2.f32 %v879_v26  ;;  %v3584_v53 = vmax.f32 %v5162_v7, %v3559_v34  ;;  %v1007_v25 = vmul.f32 1.442695, %v732_v39  ;;  %v3589_v15 = vld [vmem:[%s2696_s12 + $0x330] sm:$0xff] }
  0xbb   : > { %5161 = vst [vmem:[#allocation87_spill] sm:$0xff] %v3573_v42  ;;  %v3586_v56 = vpop.eup %2107  ;;  %2129 = vpow2.f32 %v895_v36  ;;  %v5164_v32 = vmax.f32 %v3429_v17, %v3426_v29  ;;  %v3598_v61 = vld [vmem:[%s2696_s12 + $0x178] sm:$0xff]  ;;  %v593_v26 = vmax.f32 %v3460_v23, %v3569_v44  ;;  %v1110_v49 = vadd.f32 %v3526_v22, %v1109_v37  ;;  %v5176_v22 = vld [vmem:[#allocation39_spill] sm:$0xff] }
  0xbc   : > { %5163 = vst [vmem:[#allocation88_spill] sm:$0xff] %v3586_v56  ;;  %v3602_v35 = vpop.eup %2109  ;;  %2131 = vpow2.f32 %v911_v46  ;;  %v1023_v36 = vmul.f32 1.442695, %v740_v8  ;;  %v3606_v39 = vmax.f32 %v553_v11, %v3556_v28  ;;  %v1039_v7 = vmul.f32 1.442695, %v748_v12  ;;  %v5168_v8 = vld [vmem:[#allocation25_spill] sm:$0xff] }
  0xbd   : > { %v3595_v6 = vmax.f32 %v5164_v32, %v3566_v18  ;;  %5165 = vst [vmem:[#allocation89_spill] sm:$0xff] %v3602_v35  ;;  %2133 = vpow2.f32 %v927_v38  ;;  %v1055_v13 = vmul.f32 1.442695, %v756_v10  ;;  %v1111_v32 = vadd.f32 %v3532_v58, %v1110_v49  ;;  %v5169_v12 = vld [vmem:[#allocation26_spill] sm:$0xff]  ;;  %v5170_v46 = vld [vmem:[#allocation27_spill] sm:$0xff]  ;;  %v5173_v17 = vld [vmem:[#allocation32_spill] sm:$0xff] }
  0xbe   : > { %5166 = vst [vmem:[#allocation90_spill] sm:$0xff] %v3606_v39  ;;  %2135 = vpow2.f32 %v943_v52  ;;  %v3614_v51 = vmax.f32 %v593_v26, %v3598_v61  ;;  %v3616_v37 = vpop.eup %2111  ;;  %v613_v38 = vsub.f32 %v5168_v8, %v3606_v39  ;;  %v621_v10 = vsub.f32 %v5169_v12, %v3606_v39  ;;  %v5172_v26 = vld [vmem:[#allocation30_spill] sm:$0xff]  ;;  %v5175_v12 = vld [vmem:[#allocation35_spill] sm:$0xff] }
  0xbf   : > { %5167 = vst [vmem:[#allocation91_spill] sm:$0xff] %v3616_v37  ;;  %2137 = vpow2.f32 %v959_v3  ;;  %v629_v11 = vsub.f32 %v5170_v46, %v3606_v39  ;;  %v3624_v49 = vpop.eup %2113  ;;  %v1112_v52 = vadd.f32 %v3538_v50, %v1111_v32  ;;  %v637_v23 = vsub.f32 %v5172_v26, %v3606_v39 }
  0xc0   : > { %5171 = vst [vmem:[#allocation25_spill] sm:$0xff] %v3624_v49  ;;  %2139 = vpow2.f32 %v975_v21  ;;  %v645_v3 = vsub.f32 %v5173_v17, %v3606_v39  ;;  %v3631_v58 = vpop.eup %2115  ;;  %v1119_v8 = vadd.f32 %v3624_v49, %v3616_v37  ;;  %v653_v46 = vsub.f32 %v5175_v12, %v3606_v39 }
  0xc1   : > { %5174 = vst [vmem:[#allocation26_spill] sm:$0xff] %v3631_v58  ;;  %2141 = vpow2.f32 %v991_v62  ;;  %v661_v30 = vsub.f32 %v5176_v22, %v3606_v39  ;;  %v3639_v32 = vpop.eup %2117  ;;  %v1113_v21 = vadd.f32 %v3547_v33, %v1112_v52  ;;  %v669_v17 = vsub.f32 %v3039_v55, %v3606_v39  ;;  %v5178_v22 = vld [vmem:[#allocation53_spill] sm:$0xff] }
  0xc2   : > { %5177 = vst [vmem:[#allocation27_spill] sm:$0xff] %v3639_v32  ;;  %2143 = vpow2.f32 %v1007_v25  ;;  %v677_v62 = vsub.f32 %v3060_v4, %v3606_v39  ;;  %v3646_v26 = vpop.eup %2119  ;;  %v1120_v50 = vadd.f32 %v3631_v58, %v1119_v8  ;;  %v685_v12 = vsub.f32 %v3145_v16, %v3606_v39 }
  0xc3   : > { %2145 = vpow2.f32 %v1023_v36  ;;  %v693_v49 = vsub.f32 %v5178_v22, %v3606_v39  ;;  %v3653_v37 = vpop.eup %2121  ;;  %v1114_v25 = vadd.f32 %v3561_v5, %v1113_v21  ;;  %v701_v55 = vsub.f32 %v3207_v31, %v3606_v39 }
  0xc4   : > { %5179 = vst [vmem:[#allocation30_spill] sm:$0xff] %v3653_v37  ;;  %2147 = vpow2.f32 %v1039_v7  ;;  %v709_v4 = vsub.f32 %v3233_v2, %v3606_v39  ;;  %v1121_v52 = vadd.f32 %v3639_v32, %v1120_v50  ;;  %v717_v16 = vsub.f32 %v3354_v27, %v3606_v39 }
  0xc5   : > { %v3660_v36 = vpop.eup %2123  ;;  %2149 = vpow2.f32 %v1055_v13  ;;  %v725_v8 = vsub.f32 %v3375_v19, %v3606_v39  ;;  %v1115_v31 = vadd.f32 %v3571_v14, %v1114_v25  ;;  %v733_v2 = vsub.f32 %v3411_v1, %v3606_v39 }
  0xc6   : > { %5180 = vst [vmem:[#allocation32_spill] sm:$0xff] %v3660_v36  ;;  %v3667_v22 = vpop.eup %2125  ;;  %v1570_v7 = vmul.f32 %v3660_v36, %v3308_v54  ;;  %v741_v13 = vsub.f32 %v3518_v41, %v3606_v39  ;;  %v1122_v27 = vadd.f32 %v3646_v26, %v1121_v52  ;;  %v769_v21 = vmul.f32 1.442695, %v613_v38  ;;  %v3774_v36 = vld [vmem:[%s2696_s12 + $0x4e8] sm:$0xff]  ;;  %v3789_v54 = vld [vmem:[%s2696_s12 + $0x2b8] sm:$0xff] }
  0xc7   : > { %5181 = vst [vmem:[#allocation35_spill] sm:$0xff] %v3667_v22  ;;  %v3676_v50 = vpop.eup %2127  ;;  %v785_v19 = vmul.f32 1.442695, %v621_v10  ;;  %v801_v5 = vmul.f32 1.442695, %v629_v11  ;;  %v1116_v58 = vadd.f32 %v3573_v42, %v1115_v31  ;;  %v3731_v42 = vld [vmem:[%s2696_s12 + $0x1f8] sm:$0xff] }
  0xc8   : > { %5182 = vst [vmem:[#allocation39_spill] sm:$0xff] %v3676_v50  ;;  %v3679_v32 = vpop.eup %2129  ;;  %v1578_v33 = vmax.f32 %v1570_v7, 1e-07  ;;  %v817_v1 = vmul.f32 1.442695, %v637_v23  ;;  %v1123_v41 = vadd.f32 %v3653_v37, %v1122_v27  ;;  %2151 = vpow2.f32 %v769_v21 }
  0xc9   : > { %5183 = vst [vmem:[#allocation53_spill] sm:$0xff] %v3679_v32  ;;  %v3684_v14 = vpop.eup %2131  ;;  %v833_v38 = vmul.f32 1.442695, %v645_v3  ;;  %v1117_v11 = vadd.f32 %v3586_v56, %v1116_v58  ;;  %2153 = vpow2.f32 %v785_v19  ;;  %v849_v7 = vmul.f32 1.442695, %v653_v46  ;;  %v3697_v3 = vld [vmem:[%s2696_s12 + $0x3e8] sm:$0xff] }
  0xca   : > { %5184 = vst [vmem:[#allocation92_spill] sm:$0xff] %v3684_v14  ;;  %v3689_v10 = vpop.eup %2133  ;;  %1586 = vst [vmem:[%s3550_s27 + $0x8] sm:$0xff] %v1578_v33  ;;  %v865_v23 = vmul.f32 1.442695, %v661_v30  ;;  %v1124_v25 = vadd.f32 %v3667_v22, %v1123_v41  ;;  %2155 = vpow2.f32 %v801_v5  ;;  %v881_v27 = vmul.f32 1.442695, %v669_v17 }
  0xcb   : > { %5185 = vst [vmem:[#allocation93_spill] sm:$0xff] %v3689_v10  ;;  %v3693_v31 = vpop.eup %2135  ;;  %v897_v21 = vmul.f32 1.442695, %v677_v62  ;;  %v3702_v33 = vadd.f32 %v3602_v35, %v1117_v11  ;;  %2157 = vpow2.f32 %v817_v1  ;;  %v913_v58 = vmul.f32 1.442695, %v685_v12  ;;  %v3705_v30 = vld [vmem:[%s2696_s12 + $0x428] sm:$0xff] }
  0xcc   : > { %5186 = vst [vmem:[#allocation94_spill] sm:$0xff] %v3693_v31  ;;  %v3699_v52 = vpop.eup %2137  ;;  %v929_v46 = vmul.f32 1.442695, %v693_v49  ;;  %v3708_v19 = vld [vmem:[%s2696_s12 + $0x370] sm:$0xff]  ;;  %v1125_v5 = vadd.f32 %v3676_v50, %v1124_v25  ;;  %2159 = vpow2.f32 %v833_v38  ;;  %v945_v17 = vmul.f32 1.442695, %v701_v55 }
  0xcd   : > { %5187 = vst [vmem:[#allocation95_spill] sm:$0xff] %v3699_v52  ;;  %5188 = vst [vmem:[#allocation96_spill] sm:$0xff] %v3702_v33  ;;  %v3710_v41 = vpop.eup %2139  ;;  %v961_v62 = vmul.f32 1.442695, %v709_v4  ;;  %v3714_v56 = vld [vmem:[%s2696_s12 + $0x1b8] sm:$0xff]  ;;  %v457_v11 = vld [vmem:[%s2707_s29] sm:$0xff]  ;;  %2161 = vrcp.f32 %v3702_v33  ;;  %v5192_v4 = vmax.f32 %v3584_v53, %v3578_v43 }
  0xce   : > { %5189 = vst [vmem:[#allocation97_spill] sm:$0xff] %v3710_v41  ;;  %v3717_v1 = vpop.eup %2141  ;;  %v977_v49 = vmul.f32 1.442695, %v717_v16  ;;  %v993_v12 = vmul.f32 1.442695, %v725_v8  ;;  %v1126_v25 = vadd.f32 %v3679_v32, %v1125_v5  ;;  %2163 = vpow2.f32 %v849_v7  ;;  %v3728_v50 = vld [vmem:[%s2696_s12 + $0x3b0] sm:$0xff] }
  0xcf   : > { %5190 = vst [vmem:[#allocation98_spill] sm:$0xff] %v3717_v1  ;;  %v1009_v35 = vmul.f32 1.442695, %v733_v2  ;;  %v3720_v22 = vpop.eup %2143  ;;  %v1025_v55 = vmul.f32 1.442695, %v741_v13  ;;  %v568_v38 = vmax.f32 %v5192_v4, %v3697_v3  ;;  %2165 = vpow2.f32 %v865_v23  ;;  %v3736_v8 = vld [vmem:[%s2696_s12 + $0x468] sm:$0xff] }
  0xd0   : > { %5191 = vst [vmem:[#allocation99_spill] sm:$0xff] %v3720_v22  ;;  %v3733_v16 = vpop.eup %2145  ;;  %v5194_v2 = vmax.f32 %v3595_v6, %v3589_v15  ;;  %v595_v7 = vmax.f32 %v3614_v51, %v3714_v56  ;;  %vm1225_vm0 = vcmp.eq.s32.totalorder %v457_v11, 5  ;;  %v1127_v5 = vadd.f32 %v3684_v14, %v1126_v25  ;;  %v3749_v4 = vld [vmem:[%s2696_s12 + $0x3f0] sm:$0xff]  ;;  %v3752_v33 = vld [vmem:[%s2696_s12 + $0x238] sm:$0xff]  ;;  %v3759_v51 = vld [vmem:[%s2696_s12 + $0x4a8] sm:$0xff] }
  0xd1   : > { %5193 = vst [vmem:[#allocation100_spill] sm:$0xff] %v3733_v16  ;;  %v3744_v53 = vpop.eup %2147  ;;  %2167 = vpow2.f32 %v881_v27  ;;  %v569_v23 = vmax.f32 %v568_v38, %v3705_v30  ;;  %v3754_v6 = vsel %vm1225_vm0, 6, %v457_v11  ;;  %v3767_v14 = vld [vmem:[%s2696_s12 + $0x430] sm:$0xff]  ;;  %v3770_v11 = vld [vmem:[%s2696_s12 + $0x278] sm:$0xff] }
  0xd2   : > { %v584_v13 = vmax.f32 %v5194_v2, %v3708_v19  ;;  %5195 = vst [vmem:[#allocation101_spill] sm:$0xff] %v3744_v53  ;;  %v3756_v2 = vpop.eup %2149  ;;  %2169 = vpow2.f32 %v897_v21  ;;  %v596_v25 = vmax.f32 %v595_v7, %v3731_v42  ;;  %vm1241_vm1 = vcmp.eq.s32.totalorder %v3754_v6, 1  ;;  %v5196_v21 = vld [vmem:[#allocation41_spill] sm:$0xff] }
  0xd3   : > { %v1128_v27 = vadd.f32 %v3689_v10, %v1127_v5  ;;  %2171 = vpow2.f32 %v913_v58  ;;  %v570_v38 = vmax.f32 %v569_v23, %v3736_v8  ;;  %v1249_v37 = vsel %vm1241_vm1, %v5196_v21, 0.0  ;;  %v5197_v23 = vld [vmem:[#allocation42_spill] sm:$0xff]  ;;  %v3785_v21 = vld [vmem:[%s2696_s12 + $0x470] sm:$0xff] }
  0xd4   : > { %v585_v32 = vmax.f32 %v584_v13, %v3728_v50  ;;  %2173 = vpow2.f32 %v929_v46  ;;  %v597_v7 = vmax.f32 %v596_v25, %v3752_v33  ;;  %vm1257_vm2 = vcmp.eq.s32.totalorder %v3754_v6, 2 }
  0xd5   : > { %v1129_v58 = vadd.f32 %v3693_v31, %v1128_v27  ;;  %2175 = vpow2.f32 %v945_v17  ;;  %v571_v5 = vmax.f32 %v570_v38, %v3759_v51  ;;  %v1265_v10 = vsel %vm1257_vm2, %v5197_v23, %v1249_v37  ;;  %v3782_v60 = vpop.eup %2151 }
  0xd6   : > { %v586_v13 = vmax.f32 %v585_v32, %v3749_v4  ;;  %5198 = vst [vmem:[#allocation41_spill] sm:$0xff] %v3782_v60  ;;  %2177 = vpow2.f32 %v961_v62  ;;  %v3792_v32 = vmax.f32 %v597_v7, %v3770_v11  ;;  %vm1273_vm3 = vcmp.eq.s32.totalorder %v3754_v6, 3  ;;  %v3795_v25 = vpop.eup %2153 }
  0xd7   : > { %5199 = vst [vmem:[#allocation42_spill] sm:$0xff] %v3795_v25  ;;  %v1130_v17 = vadd.f32 %v3699_v52, %v1129_v58  ;;  %2179 = vpow2.f32 %v977_v49  ;;  %v5200_v37 = vsub.f32 %v3545_v57, %v3606_v39  ;;  %v3802_v27 = vmax.f32 %v571_v5, %v3774_v36  ;;  %v3804_v38 = vpop.eup %2155  ;;  %v5204_v49 = vld [vmem:[#allocation43_spill] sm:$0xff]  ;;  %v5208_v52 = vld [vmem:[#allocation50_spill] sm:$0xff] }
  0xd8   : > { %v587_v46 = vmax.f32 %v586_v13, %v3767_v14  ;;  %5202 = vst [vmem:[#allocation103_spill] sm:$0xff] %v3804_v38  ;;  %2181 = vpow2.f32 %v993_v12  ;;  %v5203_v13 = vsub.f32 %v3556_v28, %v3606_v39  ;;  %v1137_v58 = vadd.f32 %v3795_v25, %v3782_v60  ;;  %v3814_v57 = vpop.eup %2157  ;;  %v2332_v39 = vld [vmem:[%s2696_s12 + $0xa8] sm:$0xff] }
  0xd9   : > { %v1041_v62 = vmul.f32 1.442695, %v5200_v37  ;;  %5201 = vst [vmem:[#allocation102_spill] sm:$0xff] %v3802_v27  ;;  %v3812_v23 = vsel %vm1273_vm3, %v5204_v49, %v1265_v10  ;;  %5205 = vst [vmem:[#allocation43_spill] sm:$0xff] %v3814_v57  ;;  %v1131_v5 = vadd.f32 %v3710_v41, %v1130_v17  ;;  %2183 = vpow2.f32 %v1009_v35  ;;  %v3822_v12 = vpop.eup %2159  ;;  %v2334_v60 = vld [vmem:[%s2696_s12 + $0x128] sm:$0xff] }
  0xda   : > { %v1057_v7 = vmul.f32 1.442695, %v5203_v13  ;;  %v3818_v37 = vmax.f32 %v587_v46, %v3785_v21  ;;  %2185 = vpow2.f32 %v1025_v55  ;;  %v1138_v10 = vadd.f32 %v3804_v38, %v1137_v58  ;;  %v2331_v13 = vld [vmem:[%s2696_s12 + $0x68] sm:$0xff]  ;;  %v3829_v25 = vpop.eup %2161 }
  0xdb   : > { %v614_v49 = vsub.f32 %v2331_v13, %v3802_v27  ;;  %v622_v17 = vsub.f32 %v2332_v39, %v3802_v27  ;;  %5206 = vst [vmem:[#allocation104_spill] sm:$0xff] %v3829_v25  ;;  %v1132_v35 = vadd.f32 %v3717_v1, %v1131_v5  ;;  %2187 = vpow2.f32 %v1041_v62  ;;  %v2333_v46 = vld [vmem:[%s2696_s12 + $0xe8] sm:$0xff]  ;;  %v3836_v41 = vpop.eup %2163 }
  0xdc   : > { %v630_v28 = vsub.f32 %v2333_v46, %v3802_v27  ;;  %v638_v55 = vsub.f32 %v2334_v60, %v3802_v27  ;;  %5207 = vst [vmem:[#allocation105_spill] sm:$0xff] %v3836_v41  ;;  %v1571_v58 = vmul.f32 %v3829_v25, %v3481_v40  ;;  %v1139_v13 = vadd.f32 %v3814_v57, %v1138_v10  ;;  %v2335_v38 = vld [vmem:[%s2696_s12 + $0x168] sm:$0xff]  ;;  %v3845_v62 = vpop.eup %2165 }
  0xdd   : > { %v646_v39 = vsub.f32 %v2335_v38, %v3802_v27  ;;  %v654_v5 = vsub.f32 %v5208_v52, %v3802_v27  ;;  %5209 = vst [vmem:[#allocation50_spill] sm:$0xff] %v3845_v62  ;;  %v1133_v46 = vadd.f32 %v3720_v22, %v1132_v35  ;;  %2189 = vpow2.f32 %v1057_v7  ;;  %v5210_v60 = vld [vmem:[#allocation54_spill] sm:$0xff] }
  0xde   : > { %v662_v1 = vsub.f32 %v5210_v60, %v3802_v27  ;;  %v670_v31 = vsub.f32 %v3210_v48, %v3802_v27  ;;  %v3852_v25 = vpop.eup %2167  ;;  %v1579_v10 = vmax.f32 %v1571_v58, 1e-07  ;;  %v1140_v38 = vadd.f32 %v3822_v12, %v1139_v13 }
  0xdf   : > { %v678_v52 = vsub.f32 %v3237_v0, %v3802_v27  ;;  %v686_v57 = vsub.f32 %v3366_v45, %v3802_v27  ;;  %v3859_v40 = vpop.eup %2169  ;;  %v1134_v7 = vadd.f32 %v3733_v16, %v1133_v46  ;;  %v694_v35 = vsub.f32 %v3378_v59, %v3802_v27 }
  0xe0   : > { %5211 = vst [vmem:[#allocation54_spill] sm:$0xff] %v3859_v40  ;;  %v702_v48 = vsub.f32 %v3420_v9, %v3802_v27  ;;  %v710_v58 = vsub.f32 %v3559_v34, %v3802_v27  ;;  %v3868_v13 = vpop.eup %2171  ;;  %1587 = vst [vmem:[%s3550_s27 + $0x10] sm:$0xff] %v1579_v10  ;;  %v1141_v0 = vadd.f32 %v3836_v41, %v1140_v38  ;;  %v771_v16 = vmul.f32 1.442695, %v614_v49 }
  0xe1   : > { %v718_v45 = vsub.f32 %v3578_v43, %v3802_v27  ;;  %v726_v46 = vsub.f32 %v3697_v3, %v3802_v27  ;;  %v734_v59 = vsub.f32 %v3705_v30, %v3802_v27  ;;  %v3878_v60 = vpop.eup %2173  ;;  %v1135_v9 = vadd.f32 %v3744_v53, %v1134_v7 }
  0xe2   : > { %v742_v34 = vsub.f32 %v3736_v8, %v3802_v27  ;;  %v787_v10 = vmul.f32 1.442695, %v622_v17  ;;  %v3883_v22 = vpop.eup %2175  ;;  %v1142_v38 = vadd.f32 %v3845_v62, %v1141_v0  ;;  %v750_v43 = vsub.f32 %v3759_v51, %v3802_v27 }
  0xe3   : > { %v758_v3 = vsub.f32 %v3774_v36, %v3802_v27  ;;  %v803_v30 = vmul.f32 1.442695, %v630_v28  ;;  %v3890_v41 = vpop.eup %2177  ;;  %v3893_v7 = vadd.f32 %v3756_v2, %v1135_v9  ;;  %2191 = vpow2.f32 %v771_v16 }
  0xe4   : > { %5212 = vst [vmem:[#allocation106_spill] sm:$0xff] %v3890_v41  ;;  %v819_v8 = vmul.f32 1.442695, %v638_v55  ;;  %v835_v49 = vmul.f32 1.442695, %v646_v39  ;;  %v3895_v17 = vpop.eup %2179  ;;  %v1143_v0 = vadd.f32 %v3852_v25, %v1142_v38  ;;  %2193 = vpow2.f32 %v787_v10  ;;  %v3905_v38 = vld [vmem:[%s2696_s12 + $0x4b0] sm:$0xff] }
  0xe5   : > { %5213 = vst [vmem:[#allocation107_spill] sm:$0xff] %v3893_v7  ;;  %5214 = vst [vmem:[#allocation108_spill] sm:$0xff] %v3895_v17  ;;  %v851_v51 = vmul.f32 1.442695, %v654_v5  ;;  %v867_v62 = vmul.f32 1.442695, %v662_v1  ;;  %v3898_v53 = vpop.eup %2181  ;;  %2195 = vrcp.f32 %v3893_v7 }
  0xe6   : > { %5215 = vst [vmem:[#allocation109_spill] sm:$0xff] %v3898_v53  ;;  %v883_v36 = vmul.f32 1.442695, %v670_v31  ;;  %v899_v28 = vmul.f32 1.442695, %v678_v52  ;;  %v3901_v27 = vpop.eup %2183  ;;  %v1144_v16 = vadd.f32 %v3859_v40, %v1143_v0  ;;  %2197 = vpow2.f32 %v803_v30  ;;  %v3908_v5 = vld [vmem:[%s2696_s12 + $0x2f8] sm:$0xff] }
  0xe7   : > { %v915_v9 = vmul.f32 1.442695, %v686_v57  ;;  %5216 = vst [vmem:[#allocation110_spill] sm:$0xff] %v3901_v27  ;;  %v931_v55 = vmul.f32 1.442695, %v694_v35  ;;  %v3910_v1 = vpop.eup %2185  ;;  %2199 = vpow2.f32 %v819_v8  ;;  %v3916_v35 = vld [vmem:[%s2696_s12 + $0x4f0] sm:$0xff] }
  0xe8   : > { %v947_v39 = vmul.f32 1.442695, %v702_v48  ;;  %v963_v10 = vmul.f32 1.442695, %v710_v58  ;;  %v979_v31 = vmul.f32 1.442695, %v718_v45  ;;  %v3912_v57 = vpop.eup %2187  ;;  %v1145_v7 = vadd.f32 %v3868_v13, %v1144_v16 }
  0xe9   : > { %v995_v52 = vmul.f32 1.442695, %v726_v46  ;;  %2201 = vpow2.f32 %v835_v49  ;;  %v1011_v0 = vmul.f32 1.442695, %v734_v59  ;;  %v1027_v30 = vmul.f32 1.442695, %v742_v34 }
  0xea   : > { %2203 = vpow2.f32 %v851_v51  ;;  %v589_v48 = vmax.f32 %v3818_v37, %v3905_v38  ;;  %v3921_v40 = vld [vmem:[%s2696_s12 + $0x338] sm:$0xff]  ;;  %v5217_v58 = vmax.f32 %v3792_v32, %v3789_v54  ;;  %vm1289_vm4 = vcmp.eq.s32.totalorder %v3754_v6, 4  ;;  %v3930_v46 = vpop.eup %2189  ;;  %v2338_v16 = vld [vmem:[%s2696_s12 + $0xf0] sm:$0xff] }
  0xeb   : > { %v1146_v59 = vadd.f32 %v3878_v60, %v1145_v7  ;;  %2205 = vpow2.f32 %v867_v62  ;;  %v5218_v34 = vld [vmem:[#allocation44_spill] sm:$0xff]  ;;  %vm1305_vm5 = vcmp.eq.s32.totalorder %v3754_v6, 5  ;;  %v1043_v8 = vmul.f32 1.442695, %v750_v43 }
  0xec   : > { %v3927_v45 = vmax.f32 %v5217_v58, %v3908_v5  ;;  %v1297_v37 = vsel %vm1289_vm4, %v5218_v34, %v3812_v23  ;;  %2207 = vpow2.f32 %v883_v36  ;;  %v1059_v32 = vmul.f32 1.442695, %v758_v3  ;;  %v2336_v23 = vld [vmem:[%s2696_s12 + $0x70] sm:$0xff] }
  0xed   : > { %v3937_v49 = vmax.f32 %v589_v48, %v3916_v35  ;;  %v1147_v51 = vadd.f32 %v3883_v22, %v1146_v59  ;;  %2209 = vpow2.f32 %v899_v28  ;;  %v3943_v7 = vsel %vm1305_vm5, %v3126_v47, %v1297_v37  ;;  %v2337_v3 = vld [vmem:[%s2696_s12 + $0xb0] sm:$0xff] }
  0xee   : > { %2211 = vpow2.f32 %v915_v9  ;;  %v2339_v58 = vld [vmem:[%s2696_s12 + $0x130] sm:$0xff]  ;;  %vm1321_vm6 = vcmp.eq.s32.totalorder %v3754_v6, 6  ;;  %vm1337_vm7 = vcmp.eq.s32.totalorder %v3754_v6, 7  ;;  %vm1353_vm8 = vcmp.eq.s32.totalorder %v3754_v6, 8 }
  0xef   : > { %5219 = vst [vmem:[#allocation44_spill] sm:$0xff] %v3937_v49  ;;  %v615_v43 = vsub.f32 %v2336_v23, %v3937_v49  ;;  %v623_v36 = vsub.f32 %v2337_v3, %v3937_v49  ;;  %v631_v48 = vsub.f32 %v2338_v16, %v3937_v49  ;;  %v1148_v28 = vadd.f32 %v3890_v41, %v1147_v51  ;;  %v2340_v34 = vld [vmem:[%s2696_s12 + $0x170] sm:$0xff] }
  0xf0   : > { %2213 = vpow2.f32 %v931_v55  ;;  %v639_v59 = vsub.f32 %v2339_v58, %v3937_v49  ;;  %v647_v37 = vsub.f32 %v2340_v34, %v3937_v49  ;;  %v2341_v9 = vld [vmem:[%s2696_s12 + $0x1b0] sm:$0xff]  ;;  %v671_v3 = vsub.f32 %v3369_v24, %v3937_v49  ;;  %v3962_v16 = vpop.eup %2191 }
  0xf1   : > { %2215 = vpow2.f32 %v947_v39  ;;  %v655_v62 = vsub.f32 %v2341_v9, %v3937_v49  ;;  %v2342_v23 = vld [vmem:[%s2696_s12 + $0x1f0] sm:$0xff]  ;;  %v1149_v55 = vadd.f32 %v3895_v17, %v1148_v28  ;;  %v679_v51 = vsub.f32 %v3390_v20, %v3937_v49  ;;  %v3969_v58 = vpop.eup %2193 }
  0xf2   : > { %v663_v47 = vsub.f32 %v2342_v23, %v3937_v49  ;;  %2217 = vpow2.f32 %v963_v10  ;;  %v687_v39 = vsub.f32 %v3426_v29, %v3937_v49  ;;  %v695_v34 = vsub.f32 %v3566_v18, %v3937_v49  ;;  %v3977_v10 = vpop.eup %2195 }
  0xf3   : > { %2219 = vpow2.f32 %v979_v31  ;;  %v703_v24 = vsub.f32 %v3589_v15, %v3937_v49  ;;  %v711_v9 = vsub.f32 %v3708_v19, %v3937_v49  ;;  %v1150_v20 = vadd.f32 %v3898_v53, %v1149_v55  ;;  %v3984_v28 = vpop.eup %2197  ;;  %v3999_v53 = vld [vmem:[%s2696_s12 + $0x378] sm:$0xff] }
  0xf4   : > { %2221 = vpow2.f32 %v995_v52  ;;  %v1155_v29 = vadd.f32 %v3969_v58, %v3962_v16  ;;  %v719_v31 = vsub.f32 %v3728_v50, %v3937_v49  ;;  %5220 = vst [vmem:[#allocation111_spill] sm:$0xff] %v3984_v28  ;;  %v1572_v18 = vmul.f32 %v3977_v10, %v3646_v26  ;;  %v3992_v23 = vpop.eup %2199 }
  0xf5   : > { %2223 = vpow2.f32 %v1011_v0  ;;  %v727_v15 = vsub.f32 %v3749_v4, %v3937_v49  ;;  %v735_v19 = vsub.f32 %v3767_v14, %v3937_v49  ;;  %v1151_v52 = vadd.f32 %v3901_v27, %v1150_v20 }
  0xf6   : > { %2225 = vpow2.f32 %v1027_v30  ;;  %v1156_v55 = vadd.f32 %v3984_v28, %v1155_v29  ;;  %v743_v50 = vsub.f32 %v3785_v21, %v3937_v49  ;;  %v4002_v0 = vpop.eup %2201  ;;  %v1580_v4 = vmax.f32 %v1572_v18, 1e-07 }
  0xf7   : > { %2227 = vpow2.f32 %v1043_v8  ;;  %v751_v14 = vsub.f32 %v3905_v38, %v3937_v49  ;;  %v759_v30 = vsub.f32 %v3916_v35, %v3937_v49  ;;  %v4009_v20 = vpop.eup %2203  ;;  %v1152_v21 = vadd.f32 %v3910_v1, %v1151_v52 }
  0xf8   : > { %2229 = vpow2.f32 %v1059_v32  ;;  %v1157_v29 = vadd.f32 %v3992_v23, %v1156_v55  ;;  %v773_v27 = vmul.f32 1.442695, %v615_v43  ;;  %v4013_v17 = vpop.eup %2205  ;;  %1588 = vst [vmem:[%s3550_s27 + $0x18] sm:$0xff] %v1580_v4  ;;  %v789_v8 = vmul.f32 1.442695, %v623_v36 }
  0xf9   : > { %v805_v18 = vmul.f32 1.442695, %v631_v48  ;;  %v821_v28 = vmul.f32 1.442695, %v639_v59  ;;  %v5221_v38 = vmax.f32 %v3927_v45, %v3921_v40  ;;  %v4020_v49 = vpop.eup %2207  ;;  %v1153_v41 = vadd.f32 %v3912_v57, %v1152_v21 }
  0xfa   : > { %v1158_v32 = vadd.f32 %v4002_v0, %v1157_v29  ;;  %2231 = vpow2.f32 %v773_v27  ;;  %v837_v52 = vmul.f32 1.442695, %v647_v37  ;;  %v4024_v43 = vpop.eup %2209  ;;  %v853_v55 = vmul.f32 1.442695, %v655_v62 }
  0xfb   : > { %v602_v35 = vmax.f32 %v5221_v38, %v3999_v53  ;;  %5222 = vst [vmem:[#allocation112_spill] sm:$0xff] %v4024_v43  ;;  %2233 = vpow2.f32 %v789_v8  ;;  %v869_v36 = vmul.f32 1.442695, %v663_v47  ;;  %v885_v48 = vmul.f32 1.442695, %v671_v3  ;;  %v4026_v59 = vpop.eup %2211  ;;  %v4039_v3 = vld [vmem:[%s2696_s12 + $0x3b8] sm:$0xff] }
  0xfc   : > { %5223 = vst [vmem:[#allocation113_spill] sm:$0xff] %v4026_v59  ;;  %v4029_v45 = vadd.f32 %v3930_v46, %v1153_v41  ;;  %v1159_v4 = vadd.f32 %v4009_v20, %v1158_v32  ;;  %2235 = vpow2.f32 %v805_v18  ;;  %v901_v21 = vmul.f32 1.442695, %v679_v51 }
  0xfd   : > { %v4032_v38 = vpop.eup %2213  ;;  %2237 = vpow2.f32 %v821_v28  ;;  %v917_v27 = vmul.f32 1.442695, %v687_v39  ;;  %v933_v37 = vmul.f32 1.442695, %v695_v34  ;;  %v949_v29 = vmul.f32 1.442695, %v703_v24 }
  0xfe   : > { %5224 = vst [vmem:[#allocation114_spill] sm:$0xff] %v4029_v45  ;;  %5225 = vst [vmem:[#allocation115_spill] sm:$0xff] %v4032_v38  ;;  %v4034_v8 = vpop.eup %2215  ;;  %2239 = vrcp.f32 %v4029_v45  ;;  %v1160_v47 = vadd.f32 %v4013_v17, %v1159_v4  ;;  %v965_v62 = vmul.f32 1.442695, %v711_v9  ;;  %v981_v41 = vmul.f32 1.442695, %v719_v31 }
  0xff   : > { %5226 = vst [vmem:[#allocation116_spill] sm:$0xff] %v4034_v8  ;;  %v4041_v32 = vpop.eup %2217  ;;  %2241 = vpow2.f32 %v837_v52  ;;  %v997_v51 = vmul.f32 1.442695, %v727_v15  ;;  %v1013_v18 = vmul.f32 1.442695, %v735_v19  ;;  %v4051_v9 = vld [vmem:[%s2696_s12 + $0x3f8] sm:$0xff]  ;;  %v603_v52 = vmax.f32 %v602_v35, %v4039_v3 }
 0x100   : > { %5227 = vst [vmem:[#allocation117_spill] sm:$0xff] %v4041_v32  ;;  %v1029_v39 = vmul.f32 1.442695, %v743_v50  ;;  %v4043_v34 = vpop.eup %2219  ;;  %v1161_v24 = vadd.f32 %v4020_v49, %v1160_v47  ;;  %2243 = vpow2.f32 %v853_v55  ;;  %v4046_v28 = vmul.f32 1.442695, %v751_v14  ;;  %v5230_v15 = vld [vmem:[#allocation46_spill] sm:$0xff] }
 0x101   : > { %5228 = vst [vmem:[#allocation118_spill] sm:$0xff] %v4043_v34  ;;  %v4048_v45 = vmul.f32 1.442695, %v759_v30  ;;  %v4053_v31 = vpop.eup %2221  ;;  %2245 = vpow2.f32 %v869_v36  ;;  %v1329_v19 = vsel %vm1321_vm6, %v5230_v15, %v3943_v7  ;;  %v4065_v30 = vld [vmem:[%s2696_s12 + $0x438] sm:$0xff]  ;;  %v5232_v55 = vld [vmem:[#allocation47_spill] sm:$0xff]  ;;  %vm1369_vm9 = vcmp.eq.s32.totalorder %v3754_v6, 9 }
 0x102   : > { %5229 = vst [vmem:[#allocation119_spill] sm:$0xff] %v4053_v31  ;;  %v4061_v50 = vpop.eup %2223  ;;  %v1162_v14 = vadd.f32 %v4024_v43, %v1161_v24  ;;  %2247 = vpow2.f32 %v885_v48  ;;  %v1345_v36 = vsel %vm1337_vm7, %v5232_v55, %v1329_v19  ;;  %v604_v7 = vmax.f32 %v603_v52, %v4051_v9  ;;  %v5234_v4 = vld [vmem:[#allocation48_spill] sm:$0xff]  ;;  %v5236_v19 = vld [vmem:[#allocation49_spill] sm:$0xff]  ;;  %v5238_v52 = vld [vmem:[#allocation51_spill] sm:$0xff] }
 0x103   : > { %5231 = vst [vmem:[#allocation46_spill] sm:$0xff] %v4061_v50  ;;  %v4071_v35 = vpop.eup %2225  ;;  %2249 = vpow2.f32 %v901_v21  ;;  %v1361_v47 = vsel %vm1353_vm8, %v5234_v4, %v1345_v36  ;;  %vm1385_vm10 = vcmp.eq.s32.totalorder %v3754_v6, 10  ;;  %v4080_v15 = vld [vmem:[%s2696_s12 + $0x478] sm:$0xff]  ;;  %vm1401_vm11 = vcmp.eq.s32.totalorder %v3754_v6, 11 }
 0x104   : > { %5233 = vst [vmem:[#allocation47_spill] sm:$0xff] %v4071_v35  ;;  %v4076_v24 = vpop.eup %2227  ;;  %v1163_v48 = vadd.f32 %v4026_v59, %v1162_v14  ;;  %2251 = vpow2.f32 %v917_v27  ;;  %v1377_v55 = vsel %vm1369_vm9, %v5236_v19, %v1361_v47  ;;  %v605_v21 = vmax.f32 %v604_v7, %v4065_v30  ;;  %v4091_v27 = vld [vmem:[%s2696_s12 + $0x4b8] sm:$0xff]  ;;  %v5241_v7 = vld [vmem:[#allocation55_spill] sm:$0xff] }
 0x105   : > { %5235 = vst [vmem:[#allocation48_spill] sm:$0xff] %v4076_v24  ;;  %v4084_v43 = vpop.eup %2229  ;;  %2253 = vpow2.f32 %v933_v37  ;;  %v1393_v36 = vsel %vm1385_vm10, %v5238_v52, %v1377_v55  ;;  %vm1417_vm12 = vcmp.eq.s32.totalorder %v3754_v6, 12  ;;  %v5239_v14 = vld [vmem:[#allocation52_spill] sm:$0xff]  ;;  %vm1433_vm13 = vcmp.eq.s32.totalorder %v3754_v6, 13 }
 0x106   : > { %5237 = vst [vmem:[#allocation49_spill] sm:$0xff] %v4084_v43  ;;  %v1164_v4 = vadd.f32 %v4032_v38, %v1163_v48  ;;  %2255 = vpow2.f32 %v949_v29  ;;  %v1409_v59 = vsel %vm1401_vm11, %v5239_v14, %v1393_v36  ;;  %v606_v37 = vmax.f32 %v605_v21, %v4080_v15  ;;  %v4104_v29 = vld [vmem:[%s2696_s12 + $0x4f8] sm:$0xff]  ;;  %v5245_v21 = vld [vmem:[#allocation57_spill] sm:$0xff] }
 0x107   : > { %v4095_v47 = vpop.eup %2231  ;;  %2257 = vpow2.f32 %v965_v62  ;;  %v1425_v19 = vsel %vm1417_vm12, %v5241_v7, %v1409_v59  ;;  %vm1449_vm14 = vcmp.eq.s32.totalorder %v3754_v6, 14  ;;  %v5243_v52 = vld [vmem:[#allocation56_spill] sm:$0xff]  ;;  %vm1465_vm15 = vcmp.eq.s32.totalorder %v3754_v6, 15 }
 0x108   : > { %5240 = vst [vmem:[#allocation51_spill] sm:$0xff] %v4095_v47  ;;  %v4100_v55 = vpop.eup %2233  ;;  %v1165_v48 = vadd.f32 %v4034_v8, %v1164_v4  ;;  %2259 = vpow2.f32 %v981_v41  ;;  %v1441_v36 = vsel %vm1433_vm13, %v5243_v52, %v1425_v19  ;;  %v607_v59 = vmax.f32 %v606_v37, %v4091_v27  ;;  %v5247_v4 = vld [vmem:[#allocation58_spill] sm:$0xff] }
 0x109   : > { %5242 = vst [vmem:[#allocation52_spill] sm:$0xff] %v4100_v55  ;;  %v4108_v14 = vpop.eup %2235  ;;  %2261 = vpow2.f32 %v997_v51  ;;  %v1173_v62 = vadd.f32 %v4100_v55, %v4095_v47  ;;  %v1457_v7 = vsel %vm1449_vm14, %v5245_v21, %v1441_v36  ;;  %vm1481_vm0 = vcmp.eq.s32.totalorder %v3754_v6, 16  ;;  %v2345_v55 = vld [vmem:[%s2696_s12 + $0xf8] sm:$0xff] }
 0x10a   : > { %5244 = vst [vmem:[#allocation55_spill] sm:$0xff] %v4108_v14  ;;  %v4114_v38 = vpop.eup %2237  ;;  %v1166_v41 = vadd.f32 %v4041_v32, %v1165_v48  ;;  %2263 = vpow2.f32 %v1013_v18  ;;  %v1473_v19 = vsel %vm1465_vm15, %v5247_v4, %v1457_v7  ;;  %v4123_v37 = vmax.f32 %v607_v59, %v4104_v29  ;;  %v5251_v7 = vld [vmem:[#allocation59_spill] sm:$0xff] }
 0x10b   : > { %5246 = vst [vmem:[#allocation56_spill] sm:$0xff] %v4114_v38  ;;  %v4119_v52 = vpop.eup %2239  ;;  %2265 = vpow2.f32 %v1029_v39  ;;  %v1174_v51 = vadd.f32 %v4108_v14, %v1173_v62  ;;  %v2343_v62 = vld [vmem:[%s2696_s12 + $0x78] sm:$0xff]  ;;  %v4138_v4 = vsel %vm1481_vm0, %v5251_v7, %v1473_v19  ;;  %vm1497_vm1 = vcmp.eq.s32.totalorder %v3754_v6, 17 }
 0x10c   : > { %5248 = vst [vmem:[#allocation57_spill] sm:$0xff] %v4119_v52  ;;  %5249 = vst [vmem:[#allocation58_spill] sm:$0xff] %v4123_v37  ;;  %v4125_v36 = vpop.eup %2241  ;;  %v1573_v48 = vmul.f32 %v4119_v52, %v3822_v12  ;;  %v1167_v18 = vadd.f32 %v4043_v34, %v1166_v41  ;;  %2267 = vpow2.f32 %v4046_v28  ;;  %v616_v59 = vsub.f32 %v2343_v62, %v4123_v37  ;;  %v2344_v34 = vld [vmem:[%s2696_s12 + $0xb8] sm:$0xff] }
 0x10d   : > { %v4131_v21 = vpop.eup %2243  ;;  %2269 = vpow2.f32 %v4048_v45  ;;  %v1175_v39 = vadd.f32 %v4114_v38, %v1174_v51  ;;  %v624_v28 = vsub.f32 %v2344_v34, %v4123_v37  ;;  %v632_v45 = vsub.f32 %v2345_v55, %v4123_v37 }
 0x10e   : > { %5250 = vst [vmem:[#allocation120_spill] sm:$0xff] %v4131_v21  ;;  %v4140_v14 = vpop.eup %2245  ;;  %v1581_v32 = vmax.f32 %v1573_v48, 1e-07  ;;  %v1168_v41 = vadd.f32 %v4053_v31, %v1167_v18  ;;  %v640_v62 = vsub.f32 %v3569_v44, %v4123_v37  ;;  %v648_v19 = vsub.f32 %v3598_v61, %v4123_v37 }
 0x10f   : > { %5252 = vst [vmem:[#allocation59_spill] sm:$0xff] %v4140_v14  ;;  %v4147_v8 = vpop.eup %2247  ;;  %v1176_v51 = vadd.f32 %v4125_v36, %v1175_v39  ;;  %v656_v48 = vsub.f32 %v3714_v56, %v4123_v37  ;;  %v664_v55 = vsub.f32 %v3731_v42, %v4123_v37  ;;  %v672_v39 = vsub.f32 %v3752_v33, %v4123_v37 }
 0x110   : > { %v4156_v18 = vpop.eup %2249  ;;  %1589 = vst [vmem:[%s3550_s27 + $0x20] sm:$0xff] %v1581_v32  ;;  %v1169_v34 = vadd.f32 %v4061_v50, %v1168_v41  ;;  %v680_v44 = vsub.f32 %v3770_v11, %v4123_v37  ;;  %v688_v32 = vsub.f32 %v3789_v54, %v4123_v37  ;;  %v696_v7 = vsub.f32 %v3908_v5, %v4123_v37 }
 0x111   : > { %v4167_v61 = vpop.eup %2251  ;;  %v1177_v56 = vadd.f32 %v4131_v21, %v1176_v51  ;;  %v704_v42 = vsub.f32 %v3921_v40, %v4123_v37  ;;  %v712_v11 = vsub.f32 %v3999_v53, %v4123_v37  ;;  %v720_v50 = vsub.f32 %v4039_v3, %v4123_v37 }
 0x112   : > { %v4176_v41 = vpop.eup %2253  ;;  %v1170_v33 = vadd.f32 %v4071_v35, %v1169_v34  ;;  %v728_v51 = vsub.f32 %v4051_v9, %v4123_v37  ;;  %v736_v40 = vsub.f32 %v4065_v30, %v4123_v37  ;;  %v744_v21 = vsub.f32 %v4080_v15, %v4123_v37 }
 0x113   : > { %v4185_v54 = vpop.eup %2255  ;;  %v1178_v5 = vadd.f32 %v4140_v14, %v1177_v56  ;;  %v752_v34 = vsub.f32 %v4091_v27, %v4123_v37  ;;  %v760_v9 = vsub.f32 %v4104_v29, %v4123_v37  ;;  %v775_v35 = vmul.f32 1.442695, %v616_v59  ;;  %v458_v37 = vld [vmem:[%s2707_s29 + $0x8] sm:$0xff] }
 0x114   : > { %v4194_v53 = vpop.eup %2257  ;;  %v1171_v3 = vadd.f32 %v4076_v24, %v1170_v33  ;;  %v791_v31 = vmul.f32 1.442695, %v624_v28  ;;  %v807_v30 = vmul.f32 1.442695, %v632_v45  ;;  %v823_v14 = vmul.f32 1.442695, %v640_v62 }
 0x115   : > { %v4199_v38 = vpop.eup %2259  ;;  %v1179_v56 = vadd.f32 %v4147_v8, %v1178_v5  ;;  %v839_v47 = vmul.f32 1.442695, %v648_v19  ;;  %2271 = vpow2.f32 %v775_v35  ;;  %v855_v52 = vmul.f32 1.442695, %v656_v48 }
 0x116   : > { %v4202_v15 = vpop.eup %2261  ;;  %v4205_v27 = vadd.f32 %v4084_v43, %v1171_v3  ;;  %v871_v33 = vmul.f32 1.442695, %v664_v55  ;;  %2273 = vpow2.f32 %v791_v31  ;;  %v887_v59 = vmul.f32 1.442695, %v672_v39 }
 0x117   : > { %v4207_v24 = vpop.eup %2263  ;;  %v1180_v29 = vadd.f32 %v4156_v18, %v1179_v56  ;;  %v903_v28 = vmul.f32 1.442695, %v680_v44  ;;  %v919_v45 = vmul.f32 1.442695, %v688_v32  ;;  %v935_v62 = vmul.f32 1.442695, %v696_v7 }
 0x118   : > { %5253 = vst [vmem:[#allocation121_spill] sm:$0xff] %v4205_v27  ;;  %v4210_v5 = vpop.eup %2265  ;;  %2275 = vrcp.f32 %v4205_v27  ;;  %v951_v19 = vmul.f32 1.442695, %v704_v42  ;;  %v967_v48 = vmul.f32 1.442695, %v712_v11  ;;  %v5254_v7 = vld [vmem:[#allocation60_spill] sm:$0xff] }
 0x119   : > { %v4213_v3 = vpop.eup %2267  ;;  %v1181_v35 = vadd.f32 %v4167_v61, %v1180_v29  ;;  %2277 = vpow2.f32 %v807_v30  ;;  %v983_v55 = vmul.f32 1.442695, %v720_v50  ;;  %v999_v31 = vmul.f32 1.442695, %v728_v51  ;;  %v5256_v11 = vld [vmem:[#allocation63_spill] sm:$0xff]  ;;  %v5259_v29 = vld [vmem:[#allocation66_spill] sm:$0xff] }
 0x11a   : > { %v4217_v43 = vpop.eup %2269  ;;  %2279 = vpow2.f32 %v823_v14  ;;  %v1015_v39 = vmul.f32 1.442695, %v736_v40  ;;  %v1031_v44 = vmul.f32 1.442695, %v744_v21  ;;  %v4220_v32 = vmul.f32 1.442695, %v752_v34 }
 0x11b   : > { %v1182_v56 = vadd.f32 %v4176_v41, %v1181_v35  ;;  %2281 = vpow2.f32 %v839_v47  ;;  %v1505_v42 = vsel %vm1497_vm1, %v5254_v7, %v4138_v4  ;;  %v4226_v30 = vmul.f32 1.442695, %v760_v9  ;;  %v5255_v14 = vld [vmem:[#allocation62_spill] sm:$0xff]  ;;  %v5257_v40 = vld [vmem:[#allocation64_spill] sm:$0xff] }
 0x11c   : > { %vm1513_vm2 = vcmp.eq.s32.totalorder %v3754_v6, 18  ;;  %vm1529_vm3 = vcmp.eq.s32.totalorder %v3754_v6, 19  ;;  %vm1226_vm4 = vcmp.eq.s32.totalorder %v458_v37, 5  ;;  %2283 = vpow2.f32 %v855_v52  ;;  %v5258_v52 = vld [vmem:[#allocation65_spill] sm:$0xff] }
 0x11d   : > { %v1183_v50 = vadd.f32 %v4185_v54, %v1182_v56  ;;  %v1521_v21 = vsel %vm1513_vm2, %v5255_v14, %v1505_v42  ;;  %v4232_v47 = vsel %vm1226_vm4, 6, %v458_v37  ;;  %2285 = vpow2.f32 %v871_v33  ;;  %v5262_v42 = vld [vmem:[#allocation23_spill] sm:$0xff] }
 0x11e   : > { %v1537_v51 = vsel %vm1529_vm3, %v5256_v11, %v1521_v21  ;;  %vm1242_vm5 = vcmp.eq.s32.totalorder %v4232_v47, 1  ;;  %vm1258_vm6 = vcmp.eq.s32.totalorder %v4232_v47, 2  ;;  %2287 = vpow2.f32 %v887_v59  ;;  %v5260_v59 = vld [vmem:[#allocation67_spill] sm:$0xff]  ;;  %v5263_v11 = vld [vmem:[#allocation28_spill] sm:$0xff] }
 0x11f   : > { %v1184_v4 = vadd.f32 %v4194_v53, %v1183_v50  ;;  %v1545_v6 = vmul.f32 %v3513_v63, %v1537_v51  ;;  %v1250_v34 = vsel %vm1242_vm5, %v5257_v40, 0.0  ;;  %2289 = vpow2.f32 %v903_v28 }
 0x120   : > { %v1266_v9 = vsel %vm1258_vm6, %v5258_v52, %v1250_v34  ;;  %vm1274_vm7 = vcmp.eq.s32.totalorder %v4232_v47, 3  ;;  %vm1290_vm8 = vcmp.eq.s32.totalorder %v4232_v47, 4  ;;  %2291 = vpow2.f32 %v919_v45  ;;  %v5261_v45 = vld [vmem:[#allocation21_spill] sm:$0xff] }
 0x121   : > { %v1185_v37 = vadd.f32 %v4199_v38, %v1184_v4  ;;  %v1553_v33 = vmax.f32 %v1545_v6, 1e-07  ;;  %v1282_v35 = vsel %vm1274_vm7, %v5259_v29, %v1266_v9  ;;  %2293 = vpow2.f32 %v935_v62  ;;  %v5264_v6 = vld [vmem:[#allocation33_spill] sm:$0xff]  ;;  %v5265_v9 = vld [vmem:[#allocation36_spill] sm:$0xff] }
 0x122   : > { %v1298_v56 = vsel %vm1290_vm8, %v5260_v59, %v1282_v35  ;;  %vm1306_vm9 = vcmp.eq.s32.totalorder %v4232_v47, 5  ;;  %vm1322_vm10 = vcmp.eq.s32.totalorder %v4232_v47, 6  ;;  %v4248_v63 = vpop.eup %2271  ;;  %2295 = vpow2.f32 %v951_v19 }
 0x123   : > { %v1186_v28 = vadd.f32 %v4202_v15, %v1185_v37  ;;  %1561 = vst [vmem:[%s4252_s8] sm:$0xff] %v1553_v33  ;;  %v1314_v7 = vsel %vm1306_vm9, %v5261_v45, %v1298_v56  ;;  %vm1338_vm11 = vcmp.eq.s32.totalorder %v4232_v47, 7  ;;  %v4257_v62 = vpop.eup %2273  ;;  %2297 = vpow2.f32 %v967_v48  ;;  %v5267_v56 = vld [vmem:[#allocation69_spill] sm:$0xff] }
 0x124   : > { %v1330_v50 = vsel %vm1322_vm10, %v5262_v42, %v1314_v7  ;;  %vm1354_vm12 = vcmp.eq.s32.totalorder %v4232_v47, 8  ;;  %vm1370_vm13 = vcmp.eq.s32.totalorder %v4232_v47, 9  ;;  %2299 = vpow2.f32 %v983_v55 }
 0x125   : > { %v4262_v14 = vpop.eup %2275  ;;  %v1187_v19 = vadd.f32 %v4207_v24, %v1186_v28  ;;  %v1191_v21 = vadd.f32 %v4257_v62, %v4248_v63  ;;  %v1346_v51 = vsel %vm1338_vm11, %v5263_v11, %v1330_v50  ;;  %2301 = vpow2.f32 %v999_v31  ;;  %v5266_v31 = vld [vmem:[#allocation68_spill] sm:$0xff] }
 0x126   : > { %v4268_v4 = vpop.eup %2277  ;;  %v1574_v48 = vmul.f32 %v4262_v14, %v4002_v0  ;;  %v1362_v40 = vsel %vm1354_vm12, %v5264_v6, %v1346_v51  ;;  %vm1386_vm14 = vcmp.eq.s32.totalorder %v4232_v47, 10  ;;  %2303 = vpow2.f32 %v1015_v39  ;;  %v4304_v11 = vld [vmem:[%s2707_s29 + $0x18] sm:$0xff]  ;;  %v5271_v51 = vld [vmem:[#allocation71_spill] sm:$0xff] }
 0x127   : > { %v4274_v34 = vpop.eup %2279  ;;  %v1188_v55 = vadd.f32 %v4210_v5, %v1187_v19  ;;  %v1192_v52 = vadd.f32 %v4268_v4, %v1191_v21  ;;  %v1378_v37 = vsel %vm1370_vm13, %v5265_v9, %v1362_v40  ;;  %2305 = vpow2.f32 %v1031_v44  ;;  %v459_v44 = vld [vmem:[%s2707_s29 + $0x10] sm:$0xff]  ;;  %v5269_v19 = vld [vmem:[#allocation70_spill] sm:$0xff] }
 0x128   : > { %v4279_v33 = vpop.eup %2281  ;;  %v1582_v29 = vmax.f32 %v1574_v48, 1e-07  ;;  %v1394_v35 = vsel %vm1386_vm14, %v5266_v31, %v1378_v37  ;;  %vm1402_vm15 = vcmp.eq.s32.totalorder %v4232_v47, 11  ;;  %2307 = vpow2.f32 %v4220_v32  ;;  %v5275_v37 = vld [vmem:[#allocation73_spill] sm:$0xff] }
 0x129   : > { %v1189_v59 = vadd.f32 %v4213_v3, %v1188_v55  ;;  %v1193_v39 = vadd.f32 %v4274_v34, %v1192_v52  ;;  %v1410_v28 = vsel %vm1402_vm15, %v5267_v56, %v1394_v35  ;;  %v4287_v7 = vpop.eup %2283  ;;  %2309 = vpow2.f32 %v4226_v30  ;;  %v5273_v55 = vld [vmem:[#allocation72_spill] sm:$0xff] }
 0x12a   : > { %1590 = vst [vmem:[%s3550_s27 + $0x28] sm:$0xff] %v1582_v29  ;;  %vm1418_vm0 = vcmp.eq.s32.totalorder %v4232_v47, 12  ;;  %vm1434_vm1 = vcmp.eq.s32.totalorder %v4232_v47, 13  ;;  %vm1450_vm2 = vcmp.eq.s32.totalorder %v4232_v47, 14  ;;  %v4295_v42 = vpop.eup %2285  ;;  %vm1466_vm3 = vcmp.eq.s32.totalorder %v4232_v47, 15 }
 0x12b   : > { %v4298_v32 = vadd.f32 %v4217_v43, %v1189_v59  ;;  %v1194_v50 = vadd.f32 %v4279_v33, %v1193_v39  ;;  %v1426_v21 = vsel %vm1418_vm0, %v5269_v19, %v1410_v28  ;;  %v4306_v30 = vpop.eup %2287  ;;  %vm1482_vm4 = vcmp.eq.s32.totalorder %v4232_v47, 16  ;;  %v5277_v39 = vld [vmem:[#allocation74_spill] sm:$0xff] }
 0x12c   : > { %5270 = vst [vmem:[#allocation62_spill] sm:$0xff] %v4306_v30  ;;  %v1442_v48 = vsel %vm1434_vm1, %v5271_v51, %v1426_v21  ;;  %vm1498_vm5 = vcmp.eq.s32.totalorder %v4232_v47, 17  ;;  %vm1514_vm6 = vcmp.eq.s32.totalorder %v4232_v47, 18  ;;  %v4312_v6 = vpop.eup %2289  ;;  %vm1227_vm7 = vcmp.eq.s32.totalorder %v459_v44, 5 }
 0x12d   : > { %5268 = vst [vmem:[#allocation60_spill] sm:$0xff] %v4298_v32  ;;  %5272 = vst [vmem:[#allocation63_spill] sm:$0xff] %v4312_v6  ;;  %2311 = vrcp.f32 %v4298_v32  ;;  %v1195_v40 = vadd.f32 %v4287_v7, %v1194_v50  ;;  %v1458_v52 = vsel %vm1450_vm2, %v5273_v55, %v1442_v48  ;;  %v4319_v9 = vpop.eup %2291  ;;  %vm1530_vm8 = vcmp.eq.s32.totalorder %v4232_v47, 19  ;;  %v5279_v50 = vld [vmem:[#allocation75_spill] sm:$0xff] }
 0x12e   : > { %5274 = vst [vmem:[#allocation64_spill] sm:$0xff] %v4319_v9  ;;  %v1474_v29 = vsel %vm1466_vm3, %v5275_v37, %v1458_v52  ;;  %v4323_v31 = vsel %vm1227_vm7, 6, %v459_v44  ;;  %vm1228_vm9 = vcmp.eq.s32.totalorder %v4304_v11, 5  ;;  %v4326_v35 = vpop.eup %2293  ;;  %v5280_v44 = vld [vmem:[#allocation80_spill] sm:$0xff]  ;;  %v5283_v52 = vld [vmem:[#allocation81_spill] sm:$0xff]  ;;  %v5289_v47 = vld [vmem:[#allocation19_spill] sm:$0xff] }
 0x12f   : > { %5276 = vst [vmem:[#allocation65_spill] sm:$0xff] %v4326_v35  ;;  %v1196_v59 = vadd.f32 %v4295_v42, %v1195_v40  ;;  %v1490_v56 = vsel %vm1482_vm4, %v5277_v39, %v1474_v29  ;;  %vm1243_vm10 = vcmp.eq.s32.totalorder %v4323_v31, 1  ;;  %vm1259_vm11 = vcmp.eq.s32.totalorder %v4323_v31, 2  ;;  %v4332_v28 = vpop.eup %2295  ;;  %v5282_v40 = vld [vmem:[#allocation77_spill] sm:$0xff]  ;;  %v5284_v39 = vld [vmem:[#allocation78_spill] sm:$0xff] }
 0x130   : > { %5278 = vst [vmem:[#allocation66_spill] sm:$0xff] %v4332_v28  ;;  %v1506_v19 = vsel %vm1498_vm5, %v5279_v50, %v1490_v56  ;;  %v1251_v21 = vsel %vm1243_vm10, %v5280_v44, 0.0  ;;  %vm1275_vm12 = vcmp.eq.s32.totalorder %v4323_v31, 3  ;;  %vm1291_vm13 = vcmp.eq.s32.totalorder %v4323_v31, 4  ;;  %v4340_v51 = vpop.eup %2297  ;;  %v5285_v50 = vld [vmem:[#allocation17_spill] sm:$0xff] }
 0x131   : > { %5281 = vst [vmem:[#allocation67_spill] sm:$0xff] %v4340_v51  ;;  %v1197_v48 = vadd.f32 %v4306_v30, %v1196_v59  ;;  %v1522_v55 = vsel %vm1514_vm6, %v5282_v40, %v1506_v19  ;;  %v1267_v37 = vsel %vm1259_vm11, %v5283_v52, %v1251_v21  ;;  %vm1307_vm14 = vcmp.eq.s32.totalorder %v4323_v31, 5  ;;  %v4348_v29 = vpop.eup %2299  ;;  %v5287_v40 = vld [vmem:[#allocation32_spill] sm:$0xff]  ;;  %v5288_v52 = vld [vmem:[#allocation18_spill] sm:$0xff] }
 0x132   : > { %v1538_v56 = vsel %vm1530_vm8, %v5284_v39, %v1522_v55  ;;  %v1283_v44 = vsel %vm1275_vm12, %v5285_v50, %v1267_v37  ;;  %vm1323_vm15 = vcmp.eq.s32.totalorder %v4323_v31, 6  ;;  %vm1339_vm0 = vcmp.eq.s32.totalorder %v4323_v31, 7  ;;  %v4356_v59 = vpop.eup %2301  ;;  %v5300_v30 = vld [vmem:[#allocation82_spill] sm:$0xff] }
 0x133   : > { %5286 = vst [vmem:[#allocation21_spill] sm:$0xff] %v4356_v59  ;;  %v1198_v19 = vadd.f32 %v4312_v6, %v1197_v48  ;;  %v1546_v21 = vmul.f32 %v5287_v40, %v1538_v56  ;;  %v1299_v32 = vsel %vm1291_vm13, %v5288_v52, %v1283_v44  ;;  %vm1355_vm1 = vcmp.eq.s32.totalorder %v4323_v31, 8  ;;  %v4362_v27 = vpop.eup %2303  ;;  %v5290_v56 = vld [vmem:[#allocation20_spill] sm:$0xff]  ;;  %v5291_v40 = vld [vmem:[#allocation22_spill] sm:$0xff] }
 0x134   : > { %v1315_v55 = vsel %vm1307_vm14, %v5289_v47, %v1299_v32  ;;  %vm1371_vm2 = vcmp.eq.s32.totalorder %v4323_v31, 9  ;;  %vm1387_vm3 = vcmp.eq.s32.totalorder %v4323_v31, 10  ;;  %vm1403_vm4 = vcmp.eq.s32.totalorder %v4323_v31, 11  ;;  %v4368_v37 = vpop.eup %2305 }
 0x135   : > { %v1199_v48 = vadd.f32 %v4319_v9, %v1198_v19  ;;  %v1554_v39 = vmax.f32 %v1546_v21, 1e-07  ;;  %v1331_v50 = vsel %vm1323_vm15, %v5290_v56, %v1315_v55  ;;  %vm1419_vm5 = vcmp.eq.s32.totalorder %v4323_v31, 12  ;;  %v4373_v44 = vpop.eup %2307  ;;  %v5292_v21 = vld [vmem:[#allocation24_spill] sm:$0xff]  ;;  %v5293_v56 = vld [vmem:[#allocation29_spill] sm:$0xff] }
 0x136   : > { %v1347_v32 = vsel %vm1339_vm0, %v5291_v40, %v1331_v50  ;;  %vm1435_vm6 = vcmp.eq.s32.totalorder %v4323_v31, 13  ;;  %vm1451_vm7 = vcmp.eq.s32.totalorder %v4323_v31, 14  ;;  %vm1467_vm8 = vcmp.eq.s32.totalorder %v4323_v31, 15  ;;  %v4381_v52 = vpop.eup %2309  ;;  %v5294_v40 = vld [vmem:[#allocation31_spill] sm:$0xff] }
 0x137   : > { %v1200_v19 = vadd.f32 %v4326_v35, %v1199_v48  ;;  %1562 = vst [vmem:[%s4252_s8 + $0x8] sm:$0xff] %v1554_v39  ;;  %v1363_v55 = vsel %vm1355_vm1, %v5292_v21, %v1347_v32  ;;  %vm1483_vm10 = vcmp.eq.s32.totalorder %v4323_v31, 16  ;;  %vm1499_vm11 = vcmp.eq.s32.totalorder %v4323_v31, 17  ;;  %v5297_v35 = vld [vmem:[#allocation91_spill] sm:$0xff] }
 0x138   : > { %v1379_v50 = vsel %vm1371_vm2, %v5293_v56, %v1363_v55  ;;  %vm1515_vm12 = vcmp.eq.s32.totalorder %v4323_v31, 18  ;;  %vm1531_vm13 = vcmp.eq.s32.totalorder %v4323_v31, 19  ;;  %v4398_v48 = vsel %vm1228_vm9, 6, %v4304_v11  ;;  %v5296_v55 = vld [vmem:[#allocation34_spill] sm:$0xff] }
 0x139   : > { %v1201_v39 = vadd.f32 %v4332_v28, %v1200_v19  ;;  %v1395_v32 = vsel %vm1387_vm3, %v5294_v40, %v1379_v50  ;;  %vm1244_vm14 = vcmp.eq.s32.totalorder %v4398_v48, 1  ;;  %vm1260_vm15 = vcmp.eq.s32.totalorder %v4398_v48, 2  ;;  %v5298_v50 = vld [vmem:[#allocation37_spill] sm:$0xff] }
 0x13a   : > { %v4406_v21 = vpop.eup %2311  ;;  %v1411_v56 = vsel %vm1403_vm4, %v5296_v55, %v1395_v32  ;;  %v1252_v9 = vsel %vm1244_vm14, %v5297_v35, 0.0  ;;  %vm1276_vm9 = vcmp.eq.s32.totalorder %v4398_v48, 3  ;;  %vm1292_vm0 = vcmp.eq.s32.totalorder %v4398_v48, 4  ;;  %v5299_v28 = vld [vmem:[#allocation25_spill] sm:$0xff]  ;;  %v5301_v32 = vld [vmem:[#allocation26_spill] sm:$0xff] }
 0x13b   : > { %5295 = vst [vmem:[#allocation23_spill] sm:$0xff] %v4406_v21  ;;  %v1575_v11 = vmul.f32 %v4406_v21, %v4125_v36  ;;  %v1202_v19 = vadd.f32 %v4340_v51, %v1201_v39  ;;  %v1427_v40 = vsel %vm1419_vm5, %v5298_v50, %v1411_v56  ;;  %v1268_v6 = vsel %vm1260_vm15, %v5299_v28, %v1252_v9  ;;  %v5302_v51 = vld [vmem:[#allocation84_spill] sm:$0xff]  ;;  %v5303_v50 = vld [vmem:[#allocation27_spill] sm:$0xff]  ;;  %v5304_v28 = vld [vmem:[#allocation85_spill] sm:$0xff] }
 0x13c   : > { %v1443_v35 = vsel %vm1435_vm6, %v5300_v30, %v1427_v40  ;;  %v1284_v55 = vsel %vm1276_vm9, %v5301_v32, %v1268_v6  ;;  %vm1308_vm1 = vcmp.eq.s32.totalorder %v4398_v48, 5  ;;  %vm1324_vm2 = vcmp.eq.s32.totalorder %v4398_v48, 6  ;;  %v461_v32 = vld [vmem:[%s2707_s29 + $0x20] sm:$0xff] }
 0x13d   : > { %v1583_v21 = vmax.f32 %v1575_v11, 1e-07  ;;  %v1203_v39 = vadd.f32 %v4348_v29, %v1202_v19  ;;  %v1459_v56 = vsel %vm1451_vm7, %v5302_v51, %v1443_v35  ;;  %v1300_v9 = vsel %vm1292_vm0, %v5303_v50, %v1284_v55  ;;  %v5305_v19 = vld [vmem:[#allocation86_spill] sm:$0xff]  ;;  %v5307_v55 = vld [vmem:[#allocation87_spill] sm:$0xff] }
 0x13e   : > { %v1475_v30 = vsel %vm1467_vm8, %v5304_v28, %v1459_v56  ;;  %v1316_v6 = vsel %vm1308_vm1, %v3646_v26, %v1300_v9  ;;  %vm1340_vm3 = vcmp.eq.s32.totalorder %v4398_v48, 7  ;;  %vm1356_vm4 = vcmp.eq.s32.totalorder %v4398_v48, 8  ;;  %v5306_v51 = vld [vmem:[#allocation30_spill] sm:$0xff]  ;;  %v5308_v50 = vld [vmem:[#allocation35_spill] sm:$0xff] }
 0x13f   : > { %1591 = vst [vmem:[%s3550_s27 + $0x30] sm:$0xff] %v1583_v21  ;;  %v1204_v11 = vadd.f32 %v4356_v59, %v1203_v39  ;;  %v1491_v40 = vsel %vm1483_vm10, %v5305_v19, %v1475_v30  ;;  %v1332_v35 = vsel %vm1324_vm2, %v5306_v51, %v1316_v6  ;;  %vm1372_vm5 = vcmp.eq.s32.totalorder %v4398_v48, 9  ;;  %v5309_v39 = vld [vmem:[#allocation88_spill] sm:$0xff]  ;;  %v5310_v30 = vld [vmem:[#allocation39_spill] sm:$0xff]  ;;  %v5311_v6 = vld [vmem:[#allocation89_spill] sm:$0xff] }
 0x140   : > { %v1507_v56 = vsel %vm1499_vm11, %v5307_v55, %v1491_v40  ;;  %v1348_v9 = vsel %vm1340_vm3, %v5308_v50, %v1332_v35  ;;  %vm1388_vm6 = vcmp.eq.s32.totalorder %v4398_v48, 10  ;;  %vm1404_vm7 = vcmp.eq.s32.totalorder %v4398_v48, 11  ;;  %v5312_v59 = vld [vmem:[#allocation53_spill] sm:$0xff]  ;;  %v5314_v50 = vld [vmem:[#allocation92_spill] sm:$0xff] }
 0x141   : > { %v1205_v21 = vadd.f32 %v4362_v27, %v1204_v11  ;;  %v1523_v28 = vsel %vm1515_vm12, %v5309_v39, %v1507_v56  ;;  %v1364_v19 = vsel %vm1356_vm4, %v5310_v30, %v1348_v9  ;;  %vm1420_vm8 = vcmp.eq.s32.totalorder %v4398_v48, 12  ;;  %v5313_v11 = vld [vmem:[#allocation104_spill] sm:$0xff]  ;;  %v5315_v9 = vld [vmem:[#allocation93_spill] sm:$0xff]  ;;  %v5317_v30 = vld [vmem:[#allocation95_spill] sm:$0xff] }
 0x142   : > { %v1539_v51 = vsel %vm1531_vm13, %v5311_v6, %v1523_v28  ;;  %v1380_v40 = vsel %vm1372_vm5, %v5312_v59, %v1364_v19  ;;  %vm1229_vm10 = vcmp.eq.s32.totalorder %v461_v32, 5  ;;  %vm1436_vm11 = vcmp.eq.s32.totalorder %v4398_v48, 13  ;;  %v5316_v28 = vld [vmem:[#allocation94_spill] sm:$0xff] }
 0x143   : > { %v1206_v35 = vadd.f32 %v4368_v37, %v1205_v21  ;;  %v1547_v55 = vmul.f32 %v5313_v11, %v1539_v51  ;;  %v1396_v56 = vsel %vm1388_vm6, %v5314_v50, %v1380_v40  ;;  %vm1452_vm12 = vcmp.eq.s32.totalorder %v4398_v48, 14  ;;  %v5318_v40 = vld [vmem:[#allocation97_spill] sm:$0xff]  ;;  %v5319_v11 = vld [vmem:[#allocation98_spill] sm:$0xff] }
 0x144   : > { %v1412_v39 = vsel %vm1404_vm7, %v5315_v9, %v1396_v56  ;;  %vm1468_vm13 = vcmp.eq.s32.totalorder %v4398_v48, 15  ;;  %vm1484_vm14 = vcmp.eq.s32.totalorder %v4398_v48, 16  ;;  %vm1500_vm15 = vcmp.eq.s32.totalorder %v4398_v48, 17  ;;  %v5320_v50 = vld [vmem:[#allocation41_spill] sm:$0xff] }
 0x145   : > { %v1207_v31 = vadd.f32 %v4373_v44, %v1206_v35  ;;  %v1555_v59 = vmax.f32 %v1547_v55, 1e-07  ;;  %v1428_v21 = vsel %vm1420_vm8, %v5316_v28, %v1412_v39  ;;  %vm1516_vm9 = vcmp.eq.s32.totalorder %v4398_v48, 18  ;;  %v5322_v39 = vld [vmem:[#allocation42_spill] sm:$0xff]  ;;  %v5323_v28 = vld [vmem:[#allocation100_spill] sm:$0xff] }
 0x146   : > { %v1444_v19 = vsel %vm1436_vm11, %v5317_v30, %v1428_v21  ;;  %vm1532_vm0 = vcmp.eq.s32.totalorder %v4398_v48, 19  ;;  %v4477_v6 = vsel %vm1229_vm10, 6, %v461_v32  ;;  %v5321_v32 = vld [vmem:[#allocation99_spill] sm:$0xff] }
 0x147   : > { %v4480_v51 = vadd.f32 %v4381_v52, %v1207_v31  ;;  %1563 = vst [vmem:[%s4252_s8 + $0x10] sm:$0xff] %v1555_v59  ;;  %v1460_v35 = vsel %vm1452_vm12, %v5318_v40, %v1444_v19  ;;  %vm1245_vm1 = vcmp.eq.s32.totalorder %v4477_v6, 1  ;;  %vm1261_vm2 = vcmp.eq.s32.totalorder %v4477_v6, 2  ;;  %v462_v59 = vld [vmem:[%s2707_s29 + $0x28] sm:$0xff]  ;;  %v5324_v30 = vld [vmem:[#allocation103_spill] sm:$0xff] }
 0x148   : > { %v1476_v55 = vsel %vm1468_vm13, %v5319_v11, %v1460_v35  ;;  %v1253_v56 = vsel %vm1245_vm1, %v5320_v50, 0.0  ;;  %vm1277_vm3 = vcmp.eq.s32.totalorder %v4477_v6, 3  ;;  %vm1293_vm4 = vcmp.eq.s32.totalorder %v4477_v6, 4  ;;  %v463_v40 = vld [vmem:[%s2707_s29 + $0x30] sm:$0xff]  ;;  %v5325_v35 = vld [vmem:[#allocation101_spill] sm:$0xff] }
 0x149   : > { %2313 = vrcp.f32 %v4480_v51  ;;  %v1492_v9 = vsel %vm1484_vm14, %v5321_v32, %v1476_v55  ;;  %v1269_v31 = vsel %vm1261_vm2, %v5322_v39, %v1253_v56  ;;  %vm1309_vm5 = vcmp.eq.s32.totalorder %v4477_v6, 5  ;;  %v5326_v50 = vld [vmem:[#allocation43_spill] sm:$0xff]  ;;  %v5327_v39 = vld [vmem:[#allocation105_spill] sm:$0xff] }
 0x14a   : > { %v1508_v21 = vsel %vm1500_vm15, %v5323_v28, %v1492_v9  ;;  %v1285_v19 = vsel %vm1277_vm3, %v5324_v30, %v1269_v31  ;;  %vm1325_vm6 = vcmp.eq.s32.totalorder %v4477_v6, 6  ;;  %vm1341_vm7 = vcmp.eq.s32.totalorder %v4477_v6, 7  ;;  %v5328_v28 = vld [vmem:[#allocation50_spill] sm:$0xff] }
 0x14b   : > { %v1524_v11 = vsel %vm1516_vm9, %v5325_v35, %v1508_v21  ;;  %v1301_v55 = vsel %vm1293_vm4, %v5326_v50, %v1285_v19  ;;  %vm1357_vm8 = vcmp.eq.s32.totalorder %v4477_v6, 8  ;;  %vm1230_vm10 = vcmp.eq.s32.totalorder %v462_v59, 5 }
 0x14c   : > { %v1540_v56 = vsel %vm1532_vm0, %v3756_v2, %v1524_v11  ;;  %v1317_v32 = vsel %vm1309_vm5, %v3822_v12, %v1301_v55  ;;  %vm1373_vm11 = vcmp.eq.s32.totalorder %v4477_v6, 9  ;;  %vm1231_vm12 = vcmp.eq.s32.totalorder %v463_v40, 5 }
 0x14d   : > { %v1548_v9 = vmul.f32 %v3977_v10, %v1540_v56  ;;  %v1333_v31 = vsel %vm1325_vm6, %v5327_v39, %v1317_v32  ;;  %vm1389_vm13 = vcmp.eq.s32.totalorder %v4477_v6, 10  ;;  %vm1405_vm14 = vcmp.eq.s32.totalorder %v4477_v6, 11  ;;  %v5329_v10 = vld [vmem:[#allocation54_spill] sm:$0xff]  ;;  %v5332_v56 = vld [vmem:[#allocation108_spill] sm:$0xff]  ;;  %v5333_v39 = vld [vmem:[#allocation109_spill] sm:$0xff] }
 0x14e   : > { %v1349_v21 = vsel %vm1341_vm7, %v5328_v28, %v1333_v31  ;;  %vm1421_vm15 = vcmp.eq.s32.totalorder %v4477_v6, 12  ;;  %vm1437_vm9 = vcmp.eq.s32.totalorder %v4477_v6, 13  ;;  %vm1453_vm0 = vcmp.eq.s32.totalorder %v4477_v6, 14 }
 0x14f   : > { %v1556_v2 = vmax.f32 %v1548_v9, 1e-07  ;;  %v1365_v48 = vsel %vm1357_vm8, %v3852_v25, %v1349_v21  ;;  %vm1469_vm1 = vcmp.eq.s32.totalorder %v4477_v6, 15  ;;  %vm1485_vm2 = vcmp.eq.s32.totalorder %v4477_v6, 16 }
 0x150   : > { %v1381_v30 = vsel %vm1373_vm11, %v5329_v10, %v1365_v48  ;;  %v4527_v19 = vsel %vm1230_vm10, 6, %v462_v59  ;;  %vm1501_vm6 = vcmp.eq.s32.totalorder %v4477_v6, 17  ;;  %vm1517_vm8 = vcmp.eq.s32.totalorder %v4477_v6, 18 }
 0x151   : > { %1564 = vst [vmem:[%s4252_s8 + $0x18] sm:$0xff] %v1556_v2  ;;  %v1397_v35 = vsel %vm1389_vm13, %v3868_v13, %v1381_v30  ;;  %vm1246_vm3 = vcmp.eq.s32.totalorder %v4527_v19, 1  ;;  %vm1262_vm4 = vcmp.eq.s32.totalorder %v4527_v19, 2  ;;  %vm1278_vm5 = vcmp.eq.s32.totalorder %v4527_v19, 3 }
 0x152   : > { %v1413_v25 = vsel %vm1405_vm14, %v3878_v60, %v1397_v35  ;;  %v1254_v11 = vsel %vm1246_vm3, %v3962_v16, 0.0  ;;  %vm1294_vm7 = vcmp.eq.s32.totalorder %v4527_v19, 4  ;;  %vm1310_vm10 = vcmp.eq.s32.totalorder %v4527_v19, 5  ;;  %v5330_v60 = vld [vmem:[#allocation106_spill] sm:$0xff]  ;;  %v5331_v16 = vld [vmem:[#allocation111_spill] sm:$0xff] }
 0x153   : > { %v1429_v59 = vsel %vm1421_vm15, %v3883_v22, %v1413_v25  ;;  %v1270_v13 = vsel %vm1262_vm4, %v3969_v58, %v1254_v11  ;;  %vm1533_vm11 = vcmp.eq.s32.totalorder %v4477_v6, 19  ;;  %vm1326_vm13 = vcmp.eq.s32.totalorder %v4527_v19, 6  ;;  %v5337_v11 = vld [vmem:[#allocation113_spill] sm:$0xff] }
 0x154   : > { %v1445_v50 = vsel %vm1437_vm9, %v5330_v60, %v1429_v59  ;;  %v1286_v55 = vsel %vm1278_vm5, %v5331_v16, %v1270_v13  ;;  %vm1342_vm14 = vcmp.eq.s32.totalorder %v4527_v19, 7  ;;  %v4557_v32 = vsel %vm1231_vm12, 6, %v463_v40  ;;  %v5334_v40 = vld [vmem:[#allocation110_spill] sm:$0xff]  ;;  %v5339_v13 = vld [vmem:[#allocation51_spill] sm:$0xff] }
 0x155   : > { %v1461_v22 = vsel %vm1453_vm0, %v5332_v56, %v1445_v50  ;;  %v1302_v58 = vsel %vm1294_vm7, %v3992_v23, %v1286_v55  ;;  %vm1358_vm15 = vcmp.eq.s32.totalorder %v4527_v19, 8  ;;  %vm1374_vm9 = vcmp.eq.s32.totalorder %v4527_v19, 9 }
 0x156   : > { %v4560_v9 = vpop.eup %2313  ;;  %v1477_v31 = vsel %vm1469_vm1, %v5333_v39, %v1461_v22  ;;  %v1318_v28 = vsel %vm1310_vm10, %v4002_v0, %v1302_v58  ;;  %vm1390_vm12 = vcmp.eq.s32.totalorder %v4527_v19, 10  ;;  %vm1406_vm0 = vcmp.eq.s32.totalorder %v4527_v19, 11 }
 0x157   : > { %v1576_v23 = vmul.f32 %v4560_v9, %v4279_v33  ;;  %v1493_v21 = vsel %vm1485_vm2, %v5334_v40, %v1477_v31  ;;  %v1334_v2 = vsel %vm1326_vm13, %v4009_v20, %v1318_v28  ;;  %vm1422_vm1 = vcmp.eq.s32.totalorder %v4527_v19, 12 }
 0x158   : > { %v1509_v48 = vsel %vm1501_vm6, %v3910_v1, %v1493_v21  ;;  %v1350_v10 = vsel %vm1342_vm14, %v4013_v17, %v1334_v2  ;;  %vm1438_vm2 = vcmp.eq.s32.totalorder %v4527_v19, 13  ;;  %v5335_v1 = vld [vmem:[#allocation112_spill] sm:$0xff]  ;;  %vm1454_vm3 = vcmp.eq.s32.totalorder %v4527_v19, 14 }
 0x159   : > { %v1584_v30 = vmax.f32 %v1576_v23, 1e-07  ;;  %v1525_v35 = vsel %vm1517_vm8, %v3912_v57, %v1509_v48  ;;  %v1366_v25 = vsel %vm1358_vm15, %v4020_v49, %v1350_v10  ;;  %vm1470_vm4 = vcmp.eq.s32.totalorder %v4527_v19, 15  ;;  %v5336_v49 = vld [vmem:[#allocation57_spill] sm:$0xff] }
 0x15a   : > { %v1541_v17 = vsel %vm1533_vm11, %v3930_v46, %v1525_v35  ;;  %v1382_v57 = vsel %vm1374_vm9, %v5335_v1, %v1366_v25  ;;  %vm1247_vm5 = vcmp.eq.s32.totalorder %v4557_v32, 1  ;;  %vm1263_vm6 = vcmp.eq.s32.totalorder %v4557_v32, 2  ;;  %v5338_v46 = vld [vmem:[#allocation115_spill] sm:$0xff] }
 0x15b   : > { %1592 = vst [vmem:[%s3550_s27 + $0x38] sm:$0xff] %v1584_v30  ;;  %v1549_v20 = vmul.f32 %v5336_v49, %v1541_v17  ;;  %v1398_v59 = vsel %vm1390_vm12, %v5337_v11, %v1382_v57  ;;  %v1255_v60 = vsel %vm1247_vm5, %v5339_v13, 0.0  ;;  %vm1279_vm7 = vcmp.eq.s32.totalorder %v4557_v32, 3 }
 0x15c   : > { %v1414_v6 = vsel %vm1406_vm0, %v5338_v46, %v1398_v59  ;;  %vm1295_vm8 = vcmp.eq.s32.totalorder %v4557_v32, 4 }
 0x15d   : > { %2415 = shalt.err (!%p2412_p7)
}
 0x15e   : > { %s2416_s21 = scalar_lea.hbm %s4595_s26, 1024  ;;  %s2420_s23 = scalar_lea.hbm %s4883_s3, 2048 }
 0x15f   : > { %p2417_p1 = scmp.ne.s32.totalorder %s4595_s26, %s2416_s21  ;;  %p2421_p3 = scmp.lt.s32.totalorder %s4595_s26, %s4883_s3 }
 0x160   : > { %p2422_p8 = scmp.lt.s32.totalorder %s2420_s23, %s2416_s21 }
 0x161   : > { %p2418_p10 = pnand %p2417_p1, %p2633_p9 }
 0x162   : > { %p2423_p0 = por %p2422_p8, %p2421_p3 }
 0x163   : > { %p2419_p13 = pneg %p2418_p10 }
 0x165   : > { %p2424_p2 = pnand %p2423_p0, %p2419_p13 }
 0x167   : > { %2427 = shalt.err (!%p2424_p2)
}
 0x168   : > { %s2549_s18 = smov 128   ;;  %s2550_s25 = smov 8   ;;  %v1557_v50 = vmax.f32 %v1549_v20, 1e-07  ;;  %v5340_v16 = vld [vmem:[#allocation116_spill] sm:$0xff]  ;;  %vm1311_vm10 = vcmp.eq.s32.totalorder %v4557_v32, 5 }
 0x169   : > { %1919 = dma.vmem_to_hbm [thread:$0]  (%p2633_p9), %s4571_s6, 1024, %s4595_s26, %s4620_s9, %s2549_s18, %s2549_s18, %s2550_s25   ;;  %v1430_v55 = vsel %vm1422_vm1, %v5340_v16, %v1414_v6  ;;  %v5341_v56 = vld [vmem:[#allocation52_spill] sm:$0xff]  ;;  %v5342_v58 = vld [vmem:[#allocation117_spill] sm:$0xff]  ;;  %vm1486_vm11 = vcmp.eq.s32.totalorder %v4527_v19, 16  ;;  %v5343_v31 = vld [vmem:[#allocation55_spill] sm:$0xff]  ;;  %vm1327_vm13 = vcmp.eq.s32.totalorder %v4557_v32, 6 }
 0x16a   : > { %v1271_v22 = vsel %vm1263_vm6, %v5341_v56, %v1255_v60  ;;  %v1446_v39 = vsel %vm1438_vm2, %v5342_v58, %v1430_v55  ;;  %1565 = vst [vmem:[%s4252_s8 + $0x20] sm:$0xff] %v1557_v50  ;;  %v5344_v23 = vld [vmem:[#allocation118_spill] sm:$0xff]  ;;  %vm1502_vm14 = vcmp.eq.s32.totalorder %v4527_v19, 17  ;;  %v5345_v21 = vld [vmem:[#allocation56_spill] sm:$0xff]  ;;  %vm1343_vm15 = vcmp.eq.s32.totalorder %v4557_v32, 7  ;;  %v5346_v48 = vld [vmem:[#allocation119_spill] sm:$0xff]  ;;  %s4787_s11 = scalar_lea.hbm %s4882_s2, %s4569_s24 }
 0x16b   : > { %v1287_v28 = vsel %vm1279_vm7, %v5343_v31, %v1271_v22  ;;  %v1462_v40 = vsel %vm1454_vm3, %v5344_v23, %v1446_v39  ;;  %vm1518_vm9 = vcmp.eq.s32.totalorder %v4527_v19, 18  ;;  %vm1359_vm12 = vcmp.eq.s32.totalorder %v4557_v32, 8  ;;  %v5347_v35 = vld [vmem:[#allocation46_spill] sm:$0xff]  ;;  %v5348_v17 = vld [vmem:[#allocation120_spill] sm:$0xff]  ;;  %v5349_v57 = vld [vmem:[#allocation47_spill] sm:$0xff]  ;;  %s1642_s13 = scalar_lea.sflag [#allocation4], %s2692_s22 }
 0x16c   : > { %v1303_v2 = vsel %vm1295_vm8, %v5345_v21, %v1287_v28  ;;  %v1478_v10 = vsel %vm1470_vm4, %v5346_v48, %v1462_v40  ;;  %vm1534_vm0 = vcmp.eq.s32.totalorder %v4527_v19, 19  ;;  %vm1375_vm1 = vcmp.eq.s32.totalorder %v4557_v32, 9  ;;  %v5350_v20 = vld [vmem:[#allocation59_spill] sm:$0xff]  ;;  %v464_v59 = vld [vmem:[%s2707_s29 + $0x38] sm:$0xff]  ;;  %v5352_v19 = vld [vmem:[#allocation49_spill] sm:$0xff]  ;;  %s1667_s29 = sshll.u32 %s4252_s8, 4  ;;  %s4781_s29 = int_to_ptr.vmem [resolvable:$true] %s1667_s29 }
 0x16d   : > { %v1319_v30 = vsel %vm1311_vm10, %v4125_v36, %v1303_v2  ;;  %v1494_v25 = vsel %vm1486_vm11, %v5347_v35, %v1478_v10  ;;  %vm1391_vm2 = vcmp.eq.s32.totalorder %v4557_v32, 10  ;;  %v5351_v46 = vld [vmem:[#allocation48_spill] sm:$0xff]  ;;  %vm1407_vm3 = vcmp.eq.s32.totalorder %v4557_v32, 11  ;;  %s2428_s14 = scalar_lea.vmem %s4781_s29, 1024  ;;  %s2551_s5 = smov [#allocation7]  }
 0x16e   : > { %v1335_v1 = vsel %vm1327_vm13, %v5348_v17, %v1319_v30  ;;  %v1510_v49 = vsel %vm1502_vm14, %v5349_v57, %v1494_v25  ;;  %vm1423_vm4 = vcmp.eq.s32.totalorder %v4557_v32, 12  ;;  %vm1439_vm5 = vcmp.eq.s32.totalorder %v4557_v32, 13  ;;  %v5354_v39 = vld [vmem:[#allocation76_spill] sm:$0xff]  ;;  %v5362_v25 = vld [vmem:[#allocation114_spill] sm:$0xff]  ;;  %p2429_p4 = scmp.ne.s32.totalorder %s4781_s29, %s2428_s14  ;;  %s2432_s21 = sshll.u32 %s2551_s5, 4  ;;  %s2433_s21 = int_to_ptr.vmem [resolvable:$false] %s2432_s21 }
 0x16f   : > { %v1351_v11 = vsel %vm1343_vm15, %v5350_v20, %v1335_v1  ;;  %v1526_v6 = vsel %vm1518_vm9, %v5351_v46, %v1510_v49  ;;  %vm1455_vm6 = vcmp.eq.s32.totalorder %v4557_v32, 14  ;;  %vm1471_vm7 = vcmp.eq.s32.totalorder %v4557_v32, 15  ;;  %v5356_v40 = vld [vmem:[#allocation96_spill] sm:$0xff]  ;;  %v5363_v1 = vld [vmem:[#allocation65_spill] sm:$0xff]  ;;  %v5366_v46 = vld [vmem:[#allocation66_spill] sm:$0xff]  ;;  %s2434_s10 = scalar_lea.vmem %s2433_s21, 2048  ;;  %p2435_p7 = scmp.lt.s32.totalorder %s4781_s29, %s2433_s21 }
 0x170   : > { %v1367_v13 = vsel %vm1359_vm12, %v4147_v8, %v1351_v11  ;;  %v1542_v60 = vsel %vm1534_vm0, %v5352_v19, %v1526_v6  ;;  %vm1232_vm8 = vcmp.eq.s32.totalorder %v464_v59, 5  ;;  %vm1487_vm10 = vcmp.eq.s32.totalorder %v4557_v32, 16  ;;  %v5361_v30 = vld [vmem:[#allocation64_spill] sm:$0xff]  ;;  %v5364_v49 = vld [vmem:[#allocation121_spill] sm:$0xff]  ;;  %p2430_p5 = pnand %p2429_p4, %p2633_p9  ;;  %p2436_p1 = scmp.lt.s32.totalorder %s2434_s10, %s2428_s14 }
 0x171   : > { %v1383_v50 = vsel %vm1375_vm1, %v4156_v18, %v1367_v13  ;;  %v1550_v16 = vmul.f32 %v4262_v14, %v1542_v60  ;;  %vm1503_vm11 = vcmp.eq.s32.totalorder %v4557_v32, 17  ;;  %v4698_v56 = vsel %vm1232_vm8, 6, %v464_v59  ;;  %v5365_v11 = vld [vmem:[#allocation60_spill] sm:$0xff] }
 0x172   : > { %v1399_v55 = vsel %vm1391_vm2, %v4167_v61, %v1383_v50  ;;  %vm1248_vm13 = vcmp.eq.s32.totalorder %v4698_v56, 1  ;;  %vm1264_vm14 = vcmp.eq.s32.totalorder %v4698_v56, 2  ;;  %vm1280_vm15 = vcmp.eq.s32.totalorder %v4698_v56, 3  ;;  %p2431_p6 = pneg %p2430_p5  ;;  %p2437_p10 = por %p2436_p1, %p2435_p7 }
 0x173   : > { %v1415_v8 = vsel %vm1407_vm3, %v4176_v41, %v1399_v55  ;;  %v1558_v18 = vmax.f32 %v1550_v16, 1e-07  ;;  %v1256_v14 = vsel %vm1248_vm13, %v4248_v63, 0.0  ;;  %vm1296_vm9 = vcmp.eq.s32.totalorder %v4698_v56, 4 }
 0x174   : > { %v1431_v22 = vsel %vm1423_vm4, %v4185_v54, %v1415_v8  ;;  %vm1519_vm12 = vcmp.eq.s32.totalorder %v4557_v32, 18  ;;  %v1272_v54 = vsel %vm1264_vm14, %v4257_v62, %v1256_v14  ;;  %vm1312_vm0 = vcmp.eq.s32.totalorder %v4698_v56, 5  ;;  %v5353_v62 = vld [vmem:[#allocation45_spill] sm:$0xff]  ;;  %p2438_p13 = pnand %p2437_p10, %p2431_p6 }
 0x175   : > { %v1447_v61 = vsel %vm1439_vm5, %v4194_v53, %v1431_v22  ;;  %1566 = vst [vmem:[%s4252_s8 + $0x28] sm:$0xff] %v1558_v18  ;;  %vm1535_vm1 = vcmp.eq.s32.totalorder %v4557_v32, 19  ;;  %v1288_v63 = vsel %vm1280_vm15, %v4268_v4, %v1272_v54  ;;  %vm1328_vm2 = vcmp.eq.s32.totalorder %v4698_v56, 6  ;;  %v5355_v4 = vld [vmem:[#allocation83_spill] sm:$0xff] }
 0x176   : > { %v1463_v41 = vsel %vm1455_vm6, %v4199_v38, %v1447_v61  ;;  %v1304_v58 = vsel %vm1296_vm9, %v4274_v34, %v1288_v63  ;;  %vm1344_vm3 = vcmp.eq.s32.totalorder %v4698_v56, 7  ;;  %v1593_v31 = vsub.f32 %v5354_v39, %v5353_v62  ;;  %v5357_v32 = vld [vmem:[#allocation23_spill] sm:$0xff] }
 0x177   : > { %v1479_v53 = vsel %vm1471_vm7, %v4202_v15, %v1463_v41  ;;  %v1320_v28 = vsel %vm1312_vm0, %v4279_v33, %v1304_v58  ;;  %vm1360_vm4 = vcmp.eq.s32.totalorder %v4698_v56, 8  ;;  %v1594_v23 = vsub.f32 %v5355_v4, %v5261_v45  ;;  %v5358_v45 = vld [vmem:[#allocation62_spill] sm:$0xff] }
 0x178   : > { %v1495_v38 = vsel %vm1487_vm10, %v4207_v24, %v1479_v53  ;;  %v1336_v34 = vsel %vm1328_vm2, %v4287_v7, %v1320_v28  ;;  %vm1376_vm5 = vcmp.eq.s32.totalorder %v4698_v56, 9  ;;  %v1595_v21 = vsub.f32 %v5356_v40, %v5289_v47  ;;  %v5359_v7 = vld [vmem:[#allocation63_spill] sm:$0xff] }
 0x179   : > { %v1511_v15 = vsel %vm1503_vm11, %v4210_v5, %v1495_v38  ;;  %v1352_v5 = vsel %vm1344_vm3, %v4295_v42, %v1336_v34  ;;  %vm1392_vm6 = vcmp.eq.s32.totalorder %v4698_v56, 10  ;;  %vm1408_vm7 = vcmp.eq.s32.totalorder %v4698_v56, 11 }
 0x17a   : > { %v1527_v24 = vsel %vm1519_vm12, %v4213_v3, %v1511_v15  ;;  %v1368_v3 = vsel %vm1360_vm4, %v5358_v45, %v1352_v5  ;;  %vm1424_vm8 = vcmp.eq.s32.totalorder %v4698_v56, 12  ;;  %vm1440_vm10 = vcmp.eq.s32.totalorder %v4698_v56, 13 }
 0x17b   : > { %v1543_v2 = vsel %vm1535_vm1, %v4217_v43, %v1527_v24  ;;  %v1384_v10 = vsel %vm1376_vm5, %v5359_v7, %v1368_v3  ;;  %vm1456_vm11 = vcmp.eq.s32.totalorder %v4698_v56, 14  ;;  %2315 = vlog2.f32 %v1593_v31  ;;  %v5360_v43 = vld [vmem:[#allocation107_spill] sm:$0xff] }
 0x17c   : > { %v1551_v48 = vmul.f32 %v5357_v32, %v1543_v2  ;;  %v1596_v42 = vsub.f32 %v5360_v43, %v3646_v26  ;;  %v1400_v35 = vsel %vm1392_vm6, %v5361_v30, %v1384_v10  ;;  %2317 = vlog2.f32 %v1594_v23 }
 0x17d   : > { %v1597_v17 = vsub.f32 %v5362_v25, %v3822_v12  ;;  %v1416_v57 = vsel %vm1408_vm7, %v5363_v1, %v1400_v35  ;;  %2319 = vlog2.f32 %v1595_v21  ;;  %v1598_v20 = vsub.f32 %v5364_v49, %v4002_v0  ;;  %v5367_v12 = vld [vmem:[#allocation67_spill] sm:$0xff] }
 0x17e   : > { %v1559_v47 = vmax.f32 %v1551_v48, 1e-07  ;;  %v1599_v59 = vsub.f32 %v5365_v11, %v4125_v36  ;;  %v1432_v6 = vsel %vm1424_vm8, %v5366_v46, %v1416_v57  ;;  %vm1472_vm13 = vcmp.eq.s32.totalorder %v4698_v56, 15  ;;  %v5368_v36 = vld [vmem:[#allocation21_spill] sm:$0xff] }
 0x17f   : > { %2321 = vlog2.f32 %v1596_v42  ;;  %v1600_v26 = vsub.f32 %v4480_v51, %v4279_v33  ;;  %v1448_v13 = vsel %vm1440_vm10, %v5367_v12, %v1432_v6  ;;  %vm1488_vm14 = vcmp.eq.s32.totalorder %v4698_v56, 16 }
 0x180   : > { %1567 = vst [vmem:[%s4252_s8 + $0x30] sm:$0xff] %v1559_v47  ;;  %2323 = vlog2.f32 %v1597_v17  ;;  %v1464_v0 = vsel %vm1456_vm11, %v4348_v29, %v1448_v13  ;;  %vm1504_vm15 = vcmp.eq.s32.totalorder %v4698_v56, 17  ;;  %vm1520_vm9 = vcmp.eq.s32.totalorder %v4698_v56, 18 }
 0x181   : > { %2325 = vlog2.f32 %v1598_v20  ;;  %v1480_v19 = vsel %vm1472_vm13, %v5368_v36, %v1464_v0  ;;  %vm1536_vm12 = vcmp.eq.s32.totalorder %v4698_v56, 19 }
 0x182   : > { %2327 = vlog2.f32 %v1599_v59  ;;  %v1496_v33 = vsel %vm1488_vm14, %v4362_v27, %v1480_v19 }
 0x183   : > { %2329 = vlog2.f32 %v1600_v26  ;;  %v1512_v51 = vsel %vm1504_vm15, %v4368_v37, %v1496_v33 }
 0x184   : > { %v1528_v29 = vsel %vm1520_vm9, %v4373_v44, %v1512_v51 }
 0x185   : > { %v1544_v60 = vsel %vm1536_vm12, %v4381_v52, %v1528_v29 }
 0x186   : > { %v1552_v50 = vmul.f32 %v4560_v9, %v1544_v60  ;;  %v5369_v9 = vld [vmem:[#allocation38_spill] sm:$0xff] }
 0x188   : > { %v2316_v16 = vpop.eup %2315  ;;  %v1560_v27 = vmax.f32 %v1552_v50, 1e-07 }
 0x189   : > { %v2318_v37 = vpop.eup %2317  ;;  %v1602_v55 = vmul.f32 0.6931472, %v2316_v16 }
 0x18a   : > { %v2320_v44 = vpop.eup %2319  ;;  %1568 = vst [vmem:[%s4252_s8 + $0x38] sm:$0xff] %v1560_v27  ;;  %v1604_v52 = vmul.f32 0.6931472, %v2318_v37 }
 0x18b   : > { %v1617_v56 = vadd.f32 %v1602_v55, %v5369_v9  ;;  %v1606_v18 = vmul.f32 0.6931472, %v2320_v44 }
 0x18c   : > { %v2322_v8 = vpop.eup %2321 }
 0x18d   : > { %2441 = shalt.err (!%p2438_p13)
}
 0x18e   : > { %s2442_s8 = scalar_lea.hbm %s4787_s11, 1024  ;;  %s2446_s23 = scalar_lea.hbm %s4882_s2, 2048 }
 0x18f   : > { %p2443_p3 = scmp.ne.s32.totalorder %s4787_s11, %s2442_s8  ;;  %p2447_p2 = scmp.lt.s32.totalorder %s4787_s11, %s4882_s2 }
 0x190   : > { %p2448_p4 = scmp.lt.s32.totalorder %s2446_s23, %s2442_s8 }
 0x191   : > { %p2444_p8 = pnand %p2443_p3, %p2633_p9 }
 0x192   : > { %p2449_p5 = por %p2448_p4, %p2447_p2 }
 0x193   : > { %p2445_p0 = pneg %p2444_p8 }
 0x195   : > { %p2450_p6 = pnand %p2449_p5, %p2445_p0 }
 0x197   : > { %2453 = shalt.err (!%p2450_p6)
}
 0x198   : > { %1918 = dma.vmem_to_hbm [thread:$0]  (%p2633_p9), %s4781_s29, 1024, %s4787_s11, %s1642_s13, %s2549_s18, %s2549_s18, %s2550_s25   ;;  %v2324_v22 = vpop.eup %2323  ;;  %v5370_v61 = vld [vmem:[#allocation40_spill] sm:$0xff]  ;;  %v1608_v41 = vmul.f32 0.6931472, %v2322_v8  ;;  %v1625_v53 = vmul.f32 %v1617_v56, %v1617_v56  ;;  %v5371_v63 = vld [vmem:[#allocation61_spill] sm:$0xff]  ;;  %v5372_v31 = vld [vmem:[#allocation79_spill] sm:$0xff] }
 0x199   : > { %v1618_v14 = vadd.f32 %v1604_v52, %v5370_v61  ;;  %v2326_v54 = vpop.eup %2325  ;;  %v1619_v38 = vadd.f32 %v1606_v18, %v5371_v63  ;;  %v1610_v58 = vmul.f32 0.6931472, %v2324_v22  ;;  %s299_s6 = scalar_lea.vmem [#allocation10], %s2703_s0  ;;  %v5373_v24 = vld [vmem:[#allocation90_spill] sm:$0xff]  ;;  %v5375_v45 = vld [vmem:[#allocation44_spill] sm:$0xff]  ;;  %s4829_s11 = scalar_lea.hbm %s4884_s4, %s4569_s24 }
 0x19a   : > { %v2328_v62 = vpop.eup %2327  ;;  %v1620_v15 = vadd.f32 %v1608_v41, %v5372_v31  ;;  %v1612_v28 = vmul.f32 0.6931472, %v2326_v54  ;;  %1633 = vst [vmem:[%s299_s6] sm:$0xff] %v1625_v53  ;;  %v5374_v2 = vld [vmem:[#allocation102_spill] sm:$0xff]  ;;  %s1703_s29 = sshll.u32 %s299_s6, 4  ;;  %s2552_s14 = smov [#allocation10]   ;;  %s4823_s29 = int_to_ptr.vmem [resolvable:$true] %s1703_s29 }
 0x19b   : > { %v1626_v39 = vmul.f32 %v1618_v14, %v1618_v14  ;;  %v2330_v4 = vpop.eup %2329  ;;  %v1627_v23 = vmul.f32 %v1619_v38, %v1619_v38  ;;  %v1621_v34 = vadd.f32 %v1610_v58, %v5373_v24  ;;  %v1614_v40 = vmul.f32 0.6931472, %v2328_v62  ;;  %v5376_v10 = vld [vmem:[#allocation58_spill] sm:$0xff]  ;;  %s2454_s13 = scalar_lea.vmem %s4823_s29, 1024  ;;  %s2458_s5 = sshll.u32 %s2552_s14, 4  ;;  %s2459_s5 = int_to_ptr.vmem [resolvable:$false] %s2458_s5 }
 0x19c   : > { %v1628_v21 = vmul.f32 %v1620_v15, %v1620_v15  ;;  %v1622_v5 = vadd.f32 %v1612_v28, %v5374_v2  ;;  %v1616_v32 = vmul.f32 0.6931472, %v2330_v4  ;;  %p2455_p7 = scmp.ne.s32.totalorder %s4823_s29, %s2454_s13  ;;  %s2460_s21 = scalar_lea.vmem %s2459_s5, 2048 }
 0x19d   : > { %1634 = vst [vmem:[%s299_s6 + $0x8] sm:$0xff] %v1626_v39  ;;  %1635 = vst [vmem:[%s299_s6 + $0x10] sm:$0xff] %v1627_v23  ;;  %v1629_v48 = vmul.f32 %v1621_v34, %v1621_v34  ;;  %v1623_v3 = vadd.f32 %v1614_v40, %v5375_v45  ;;  %p2461_p13 = scmp.lt.s32.totalorder %s4823_s29, %s2459_s5  ;;  %p2462_p3 = scmp.lt.s32.totalorder %s2460_s21, %s2454_s13 }
 0x19e   : > { %1636 = vst [vmem:[%s299_s6 + $0x18] sm:$0xff] %v1628_v21  ;;  %v1630_v7 = vmul.f32 %v1622_v5, %v1622_v5  ;;  %v1624_v43 = vadd.f32 %v1616_v32, %v5376_v10  ;;  %p2456_p1 = pnand %p2455_p7, %p2633_p9 }
 0x19f   : > { %1637 = vst [vmem:[%s299_s6 + $0x20] sm:$0xff] %v1629_v48  ;;  %v1631_v42 = vmul.f32 %v1623_v3, %v1623_v3  ;;  %p2463_p8 = por %p2462_p3, %p2461_p13 }
 0x1a0   : > { %1638 = vst [vmem:[%s299_s6 + $0x28] sm:$0xff] %v1630_v7  ;;  %v1632_v47 = vmul.f32 %v1624_v43, %v1624_v43  ;;  %p2457_p10 = pneg %p2456_p1 }
 0x1a1   : > { %1639 = vst [vmem:[%s299_s6 + $0x30] sm:$0xff] %v1631_v42 }
 0x1a2   : > { %1640 = vst [vmem:[%s299_s6 + $0x38] sm:$0xff] %v1632_v47  ;;  %p2464_p0 = pnand %p2463_p8, %p2457_p10 }
 0x1a4   : > { %2467 = shalt.err (!%p2464_p0)
}
 0x1a5   : > { %s2468_s24 = scalar_lea.hbm %s4829_s11, 1024  ;;  %s2472_s22 = scalar_lea.hbm %s4884_s4, 2048 }
 0x1a6   : > { %p2469_p2 = scmp.ne.s32.totalorder %s4829_s11, %s2468_s24  ;;  %p2473_p6 = scmp.lt.s32.totalorder %s4829_s11, %s4884_s4 }
 0x1a7   : > { %p2474_p7 = scmp.lt.s32.totalorder %s2472_s22, %s2468_s24 }
 0x1a8   : > { %p2470_p4 = pnand %p2469_p2, %p2633_p9 }
 0x1a9   : > { %p2475_p1 = por %p2474_p7, %p2473_p6 }
 0x1aa   : > { %p2471_p5 = pneg %p2470_p4 }
 0x1ac   : > { %p2476_p10 = pnand %p2475_p1, %p2471_p5 }
 0x1ae   : > { %2479 = shalt.err (!%p2476_p10)
}
 0x1af   : > { %1920 = dma.vmem_to_hbm [thread:$0]  (%p2633_p9), %s4823_s29, 1024, %s4829_s11, %s4620_s9, %s2549_s18, %s2549_s18, %s2550_s25  }
 0x1b0 PF: > { %s1718_s27 = sand.u32 1, %s2522_s15   ;;  %p1932_p13 = pnand %p1886_p12, %p2642_p11 }
 0x1b1   : > { %s1719_s7 = scalar_lea.sflag [#allocation4], %s1718_s27 }
 0x1b2   : > { %p1933_p3 = pneg %p1932_p13 }
 0x1b4   : > { %2513 = dma.done.wait (%p1933_p3), %s1719_s7, 1024  }
 0x1b5   : > { %2515 = vsyncadd (%p1933_p3), %s1719_s7, 4294966272  ;;  %s5377_s28 = sadd.s32 4294967294, %s2542_s20  }
 0x1b6   : > { %s1727_s6 = sand.u32 1, %s5377_s28  }
 0x1b7   : > { %s1728_s0 = scalar_lea.sflag [#allocation9], %s1727_s6 }
 0x1b8   : > { %2517 = dma.done.wait (%p1933_p3), %s1728_s0, 2048  }
 0x1b9   : > { %2519 = vsyncadd (%p1933_p3), %s1728_s0, 4294965248  ;;  %s27_s20 = sadd.s32 1, %s2542_s20   ;;  %s5378_s9 = sld [smem:[#allocation16_spill]] }
 0x1ba   : > { %p24_p9 = scmp.ge.s32.totalorder %s27_s20, 4   ;;  %s5379_s30 = sld [smem:[#allocation15_spill]] }
 0x1bb   : > { %s5380_s15 = smov %s2526_s16  ;;  %s5381_s16 = smov %s2530_s17 }
 0x1bc   : > { %s5383_s18 = smov %s2538_s19  ;;  %26 = sbr.rel (!%p24_p9) target bundleno = 12 (0xc), region = 118 }
 0x1bf   : > { %s5382_s17 = smov %s5378_s9 }
 0x1c0   : > { %s5384_s19 = smov %s5379_s30 }
 0x1c1   :  { %1742 = vsyncpa [#allocation3], 1 }
 0x1c2   :  { %1744 = vsyncpa [#allocation3 + $0x1], 1 }
 0x1c3   :  { %1745 = vsyncpa [#allocation6], 1 }
 0x1c4   :  { %1747 = vsyncpa [#allocation6 + $0x1], 1 }
 0x1c5   :  { %1748 = vsyncpa [#allocation4], 1 }
 0x1c6   :  { %1750 = vsyncpa [#allocation4 + $0x1], 1 }
 0x1c7   :  { %1751 = vsyncpa [#allocation9], 1 }
 0x1c8   :  { %1753 = vsyncpa [#allocation9 + $0x1], 1 }

</bundles_post_ra>
